<compile_context>
chip_gen: v6e
topology: v6e:2x2x1
jax: 0.10.0
libtpu: 0.0.40
codegen_flags: <defaults>
</compile_context>

<pallas_src>
import functools

import jax
import jax.numpy as jnp
from jax.experimental import pallas as pl
from jax.experimental.pallas import tpu as pltpu

SIGMA = 2    # HeatmapGenerator default is sigma=10 @ 352x352; scaled for small shapes.
KSIZE = 31   # avg_pool2d kernel size from structure_loss.


def _flanet_fused_kernel(w_ref, mean_ref, x0_ref, y0_ref, x_ref, m_ref,
                         sloss_ref, hloss_ref, xpad_ref,
                         *, C, H, W, ksize, sigma):
    b = pl.program_id(0)
    f32 = jnp.float32

    # ---- normalization prologue (the /std is folded into w_ref by the wrapper)
    # ---- plus zero padding done entirely in VMEM scratch (no HBM pad copy).
    xpad_ref[...] = jnp.zeros((C, H + 2, W + 2), f32)
    for c in range(C):
        xpad_ref[c, 1:1 + H, 1:1 + W] = x_ref[0, c] - mean_ref[c]

    # ---- stand-in 3x3 conv, 2 heads; each shifted slab materialized once and
    # ---- reused by both heads (halves the XLU/relayout work of the old kernel).
    pre = jnp.zeros((H, W), f32)       # head 0: segmentation logits
    hm_pred = jnp.zeros((H, W), f32)   # head 1: heatmap prediction
    for c in range(C):
        for dy in range(3):
            for dx in range(3):
                slab = xpad_ref[c, dy:dy + H, dx:dx + W]
                pre = pre + w_ref[0, c, dy, dx] * slab
                hm_pred = hm_pred + w_ref[1, c, dy, dx] * slab

    # ---- F.avg_pool2d(mask, 31, stride=1, padding=15) (count_include_pad) as
    # ---- two band-matrix matmuls on the MXU: box = Bh @ mask @ Bw.
    rad = (ksize - 1) // 2
    mask = m_ref[0, 0]
    ri = jax.lax.broadcasted_iota(jnp.int32, (H, H), 0)
    rj = jax.lax.broadcasted_iota(jnp.int32, (H, H), 1)
    band_h = (jnp.abs(ri - rj) <= rad).astype(f32)
    ci = jax.lax.broadcasted_iota(jnp.int32, (W, W), 0)
    cj = jax.lax.broadcasted_iota(jnp.int32, (W, W), 1)
    band_w = (jnp.abs(ci - cj) <= rad).astype(f32)
    box = jnp.dot(band_h, jnp.dot(mask, band_w, preferred_element_type=f32),
                  preferred_element_type=f32)
    avg = box * (1.0 / float(ksize * ksize))

    # ---- structure loss: weighted BCE-with-logits + weighted IoU.
    # Single transcendental e = exp(-|pre|) feeds both the stable BCE term and
    # the overflow-free sigmoid; the vector reciprocal runs on the EUP.
    weit = 1.0 + 5.0 * jnp.abs(avg - mask)
    e = jnp.exp(-jnp.abs(pre))
    bce = jnp.maximum(pre, 0.0) - pre * mask + jnp.log(1.0 + e)
    sig = jnp.where(pre >= 0.0, 1.0, e) * pl.reciprocal(1.0 + e, approx=True)
    wbce = jnp.sum(weit * bce) / jnp.sum(weit)
    inter = jnp.sum(sig * mask * weit)
    union = jnp.sum((sig + mask) * weit)
    wiou = 1.0 - (inter + 1.0) / (union - inter + 1.0)
    s_loss = wbce + wiou

    # ---- heatmap GT generated in-register. Reproduces HeatmapGenerator exactly,
    # including the ToTensor + permute(1,0,2) transpose: axis 0 <-> x, axis 1 <-> y.
    x0 = x0_ref[b]
    y0 = y0_ref[b]
    ii = jax.lax.broadcasted_iota(jnp.int32, (H, W), 0).astype(f32)   # <-> x
    jj = jax.lax.broadcasted_iota(jnp.int32, (H, W), 1).astype(f32)   # <-> y
    g = jnp.exp(-((ii - x0) ** 2 + (jj - y0) ** 2) * (1.0 / (2.0 * float(sigma) ** 2)))
    lo = 3.0 * float(sigma) + 1.0
    hi = 3.0 * float(sigma) + 2.0
    in_box = ((ii >= x0 - lo) & (ii < x0 + hi) & (jj >= y0 - lo) & (jj < y0 + hi))
    valid = (x0 >= 0.0) & (x0 < float(H)) & (y0 >= 0.0) & (y0 < float(H))
    hm_gt = jnp.where(in_box & valid, g, 0.0)

    # ---- heatmap (MSE) loss on the resident head tile.
    d = hm_pred - hm_gt
    h_loss = jnp.sum(d * d) * (1.0 / float(H * W))

    # ---- lane-dense scalar writebacks: one full (1,1,128) block per sample.
    sloss_ref[...] = jnp.full(sloss_ref.shape, s_loss, f32)
    hloss_ref[...] = jnp.full(hloss_ref.shape, h_loss, f32)


def flanet_forward(videos, gt_masks, boxes, params):
    """videos: (B,3,H,W); gt_masks: (B,1,H,W); boxes: (B,4) cxcywh in [0,1]."""
    B, C, H, W = videos.shape
    assert H == W, "HeatmapGenerator produces a square (res, res) heatmap"

    # Fold the per-channel /std into the conv weights (w' = w / std); the -mean
    # shift is applied in-kernel before zero padding, which is exactly
    # equivalent to normalize -> zero-pad -> conv.
    w_folded = (params["head_w"] /
                params["pixel_std"][None, :, None, None]).astype(jnp.float32)

    # HeatmapGenerator uses int() truncation; centers are non-negative here,
    # so floor is identical. Keep that invariant documented.
    x0 = jnp.floor(boxes[:, 0] * W).astype(jnp.float32)
    y0 = jnp.floor(boxes[:, 1] * H).astype(jnp.float32)

    kernel = functools.partial(_flanet_fused_kernel, C=C, H=H, W=W,
                               ksize=KSIZE, sigma=SIGMA)
    smem = pl.BlockSpec(memory_space=pltpu.MemorySpace.SMEM)

    out_s, out_h = pl.pallas_call(
        kernel,
        out_shape=(jax.ShapeDtypeStruct((B, 1, 128), jnp.float32),
                   jax.ShapeDtypeStruct((B, 1, 128), jnp.float32)),
        grid=(B,),
        in_specs=[
            smem,                                              # folded conv weights (2,C,3,3)
            smem,                                              # pixel_mean (C,)
            smem,                                              # heatmap center x0 (B,)
            smem,                                              # heatmap center y0 (B,)
            pl.BlockSpec((1, C, H, W), lambda b: (b, 0, 0, 0)),   # videos
            pl.BlockSpec((1, 1, H, W), lambda b: (b, 0, 0, 0)),   # gt masks
        ],
        out_specs=(pl.BlockSpec((1, 1, 128), lambda b: (b, 0, 0)),
                   pl.BlockSpec((1, 1, 128), lambda b: (b, 0, 0))),
        scratch_shapes=[pltpu.VMEM((C, H + 2, W + 2), jnp.float32)],
        compiler_params=pltpu.CompilerParams(dimension_semantics=("parallel",)),
    )(w_folded, params["pixel_mean"], x0, y0, videos, gt_masks)

    losses = {"structure": jnp.mean(out_s[:, 0, 0]),
              "hm": jnp.mean(out_h[:, 0, 0])}
    loss_weight = {"structure": 1.0, "hm": 0.5}
    return losses, loss_weight


if __name__ == "__main__":
    B, C, H, W = 2, 3, 32, 32
    key = jax.random.PRNGKey(0)
    k1, k2, k3, k4 = jax.random.split(key, 4)

    videos = jax.random.uniform(k1, (B, C, H, W), jnp.float32)
    gt_masks = (jax.random.uniform(k2, (B, 1, H, W)) > 0.5).astype(jnp.float32)
    boxes = jax.random.uniform(k3, (B, 4), jnp.float32, minval=0.2, maxval=0.8)

    params = {
        "pixel_mean": jnp.array([0.485, 0.456, 0.406], jnp.float32),
        "pixel_std": jnp.array([0.229, 0.224, 0.225], jnp.float32),
        "head_w": 0.1 * jax.random.normal(k4, (2, C, 3, 3), jnp.float32),
    }

    losses, weights = flanet_forward(videos, gt_masks, boxes, params)
    jax.block_until_ready(losses)
    print("KERNEL_OK")
</pallas_src>

<mosaic_0001>
module attributes {stable_mosaic.version = 11 : i64} {
  func.func @_flanet_fused_kernel(%arg0: i32, %arg1: memref<2x3x3x3xf32, #tpu.memory_space<smem>>, %arg2: memref<3xf32, #tpu.memory_space<smem>>, %arg3: memref<2xf32, #tpu.memory_space<smem>>, %arg4: memref<2xf32, #tpu.memory_space<smem>>, %arg5: memref<1x3x32x32xf32, #tpu.memory_space<vmem>>, %arg6: memref<1x1x32x32xf32, #tpu.memory_space<vmem>>, %arg7: memref<1x1x128xf32, #tpu.memory_space<vmem>>, %arg8: memref<1x1x128xf32, #tpu.memory_space<vmem>>, %arg9: memref<3x34x34xf32, #tpu.memory_space<vmem>>) attributes {dimension_semantics = [#tpu.dimension_semantics<parallel>], iteration_bounds = array<i64: 2>, scalar_prefetch = 0 : i64, scratch_operands = 1 : i64, tpu.core_type = #tpu.core_type<tc>, window_params = [{transform_indices = @transform_0, window_bounds = array<i64: 2, 3, 3, 3>}, {transform_indices = @transform_1, window_bounds = array<i64: 3>}, {transform_indices = @transform_2, window_bounds = array<i64: 2>}, {transform_indices = @transform_3, window_bounds = array<i64: 2>}, {transform_indices = @transform_4, window_bounds = array<i64: 1, 3, 32, 32>}, {transform_indices = @transform_5, window_bounds = array<i64: 1, 1, 32, 32>}, {transform_indices = @transform_6, window_bounds = array<i64: 1, 1, 128>}, {transform_indices = @transform_7, window_bounds = array<i64: 1, 1, 128>}]} {
    %cst = arith.constant 0.000000e+00 : f32
    %0 = vector.broadcast %cst : f32 to vector<3x34x34xf32>
    %c0 = arith.constant 0 : index
    %c0_0 = arith.constant 0 : index
    %c0_1 = arith.constant 0 : index
    %1 = vector.load %arg9[%c0, %c0_0, %c0_1] : memref<3x34x34xf32, #tpu.memory_space<vmem>>, vector<3x34x34xf32>
    tpu.vector_store %arg9[%c0, %c0_0, %c0_1], %0 {strides = array<i32>} : memref<3x34x34xf32, #tpu.memory_space<vmem>>, vector<3x34x34xf32>,
    %c0_2 = arith.constant 0 : index
    %c0_3 = arith.constant 0 : index
    %c0_4 = arith.constant 0 : index
    %c0_5 = arith.constant 0 : index
    %2 = vector.load %arg5[%c0_2, %c0_3, %c0_4, %c0_5] : memref<1x3x32x32xf32, #tpu.memory_space<vmem>>, vector<1x1x32x32xf32>
    %3 = vector.shape_cast %2 : vector<1x1x32x32xf32> to vector<32x32xf32>
    %c0_6 = arith.constant 0 : index
    %4 = memref.load %arg2[%c0_6] : memref<3xf32, #tpu.memory_space<smem>>
    %5 = vector.broadcast %4 : f32 to vector<32x32xf32>
    %6 = arith.subf %3, %5 : vector<32x32xf32>
    %c0_7 = arith.constant 0 : index
    %c1 = arith.constant 1 : index
    %c1_8 = arith.constant 1 : index
    %7 = vector.load %arg9[%c0_7, %c1, %c1_8] : memref<3x34x34xf32, #tpu.memory_space<vmem>>, vector<1x32x32xf32>
    %8 = vector.shape_cast %7 : vector<1x32x32xf32> to vector<32x32xf32>
    %9 = vector.shape_cast %6 : vector<32x32xf32> to vector<1x32x32xf32>
    tpu.vector_store %arg9[%c0_7, %c1, %c1_8], %9 {strides = array<i32>} : memref<3x34x34xf32, #tpu.memory_space<vmem>>, vector<1x32x32xf32>,
    %c0_9 = arith.constant 0 : index
    %c1_10 = arith.constant 1 : index
    %c0_11 = arith.constant 0 : index
    %c0_12 = arith.constant 0 : index
    %10 = vector.load %arg5[%c0_9, %c1_10, %c0_11, %c0_12] : memref<1x3x32x32xf32, #tpu.memory_space<vmem>>, vector<1x1x32x32xf32>
    %11 = vector.shape_cast %10 : vector<1x1x32x32xf32> to vector<32x32xf32>
    %c1_13 = arith.constant 1 : index
    %12 = memref.load %arg2[%c1_13] : memref<3xf32, #tpu.memory_space<smem>>
    %13 = vector.broadcast %12 : f32 to vector<32x32xf32>
    %14 = arith.subf %11, %13 : vector<32x32xf32>
    %c1_14 = arith.constant 1 : index
    %c1_15 = arith.constant 1 : index
    %c1_16 = arith.constant 1 : index
    %15 = vector.load %arg9[%c1_14, %c1_15, %c1_16] : memref<3x34x34xf32, #tpu.memory_space<vmem>>, vector<1x32x32xf32>
    %16 = vector.shape_cast %15 : vector<1x32x32xf32> to vector<32x32xf32>
    %17 = vector.shape_cast %14 : vector<32x32xf32> to vector<1x32x32xf32>
    tpu.vector_store %arg9[%c1_14, %c1_15, %c1_16], %17 {strides = array<i32>} : memref<3x34x34xf32, #tpu.memory_space<vmem>>, vector<1x32x32xf32>,
    %c0_17 = arith.constant 0 : index
    %c2 = arith.constant 2 : index
    %c0_18 = arith.constant 0 : index
    %c0_19 = arith.constant 0 : index
    %18 = vector.load %arg5[%c0_17, %c2, %c0_18, %c0_19] : memref<1x3x32x32xf32, #tpu.memory_space<vmem>>, vector<1x1x32x32xf32>
    %19 = vector.shape_cast %18 : vector<1x1x32x32xf32> to vector<32x32xf32>
    %c2_20 = arith.constant 2 : index
    %20 = memref.load %arg2[%c2_20] : memref<3xf32, #tpu.memory_space<smem>>
    %21 = vector.broadcast %20 : f32 to vector<32x32xf32>
    %22 = arith.subf %19, %21 : vector<32x32xf32>
    %c2_21 = arith.constant 2 : index
    %c1_22 = arith.constant 1 : index
    %c1_23 = arith.constant 1 : index
    %23 = vector.load %arg9[%c2_21, %c1_22, %c1_23] : memref<3x34x34xf32, #tpu.memory_space<vmem>>, vector<1x32x32xf32>
    %24 = vector.shape_cast %23 : vector<1x32x32xf32> to vector<32x32xf32>
    %25 = vector.shape_cast %22 : vector<32x32xf32> to vector<1x32x32xf32>
    tpu.vector_store %arg9[%c2_21, %c1_22, %c1_23], %25 {strides = array<i32>} : memref<3x34x34xf32, #tpu.memory_space<vmem>>, vector<1x32x32xf32>,
    %cst_24 = arith.constant 0.000000e+00 : f32
    %26 = vector.broadcast %cst_24 : f32 to vector<32x32xf32>
    %cst_25 = arith.constant 0.000000e+00 : f32
    %27 = vector.broadcast %cst_25 : f32 to vector<32x32xf32>
    %c0_26 = arith.constant 0 : index
    %c0_27 = arith.constant 0 : index
    %c0_28 = arith.constant 0 : index
    %28 = vector.load %arg9[%c0_26, %c0_27, %c0_28] : memref<3x34x34xf32, #tpu.memory_space<vmem>>, vector<1x32x32xf32>
    %29 = vector.shape_cast %28 : vector<1x32x32xf32> to vector<32x32xf32>
    %c0_29 = arith.constant 0 : index
    %c0_30 = arith.constant 0 : index
    %c0_31 = arith.constant 0 : index
    %c0_32 = arith.constant 0 : index
    %30 = memref.load %arg1[%c0_29, %c0_30, %c0_31, %c0_32] : memref<2x3x3x3xf32, #tpu.memory_space<smem>>
    %31 = vector.broadcast %30 : f32 to vector<32x32xf32>
    %32 = arith.mulf %31, %29 : vector<32x32xf32>
    %33 = arith.addf %26, %32 : vector<32x32xf32>
    %c1_33 = arith.constant 1 : index
    %c0_34 = arith.constant 0 : index
    %c0_35 = arith.constant 0 : index
    %c0_36 = arith.constant 0 : index
    %34 = memref.load %arg1[%c1_33, %c0_34, %c0_35, %c0_36] : memref<2x3x3x3xf32, #tpu.memory_space<smem>>
    %35 = vector.broadcast %34 : f32 to vector<32x32xf32>
    %36 = arith.mulf %35, %29 : vector<32x32xf32>
    %37 = arith.addf %27, %36 : vector<32x32xf32>
    %c0_37 = arith.constant 0 : index
    %c0_38 = arith.constant 0 : index
    %c1_39 = arith.constant 1 : index
    %38 = vector.load %arg9[%c0_37, %c0_38, %c1_39] : memref<3x34x34xf32, #tpu.memory_space<vmem>>, vector<1x32x32xf32>
    %39 = vector.shape_cast %38 : vector<1x32x32xf32> to vector<32x32xf32>
    %c0_40 = arith.constant 0 : index
    %c0_41 = arith.constant 0 : index
    %c0_42 = arith.constant 0 : index
    %c1_43 = arith.constant 1 : index
    %40 = memref.load %arg1[%c0_40, %c0_41, %c0_42, %c1_43] : memref<2x3x3x3xf32, #tpu.memory_space<smem>>
    %41 = vector.broadcast %40 : f32 to vector<32x32xf32>
    %42 = arith.mulf %41, %39 : vector<32x32xf32>
    %43 = arith.addf %33, %42 : vector<32x32xf32>
    %c1_44 = arith.constant 1 : index
    %c0_45 = arith.constant 0 : index
    %c0_46 = arith.constant 0 : index
    %c1_47 = arith.constant 1 : index
    %44 = memref.load %arg1[%c1_44, %c0_45, %c0_46, %c1_47] : memref<2x3x3x3xf32, #tpu.memory_space<smem>>
    %45 = vector.broadcast %44 : f32 to vector<32x32xf32>
    %46 = arith.mulf %45, %39 : vector<32x32xf32>
    %47 = arith.addf %37, %46 : vector<32x32xf32>
    %c0_48 = arith.constant 0 : index
    %c0_49 = arith.constant 0 : index
    %c2_50 = arith.constant 2 : index
    %48 = vector.load %arg9[%c0_48, %c0_49, %c2_50] : memref<3x34x34xf32, #tpu.memory_space<vmem>>, vector<1x32x32xf32>
    %49 = vector.shape_cast %48 : vector<1x32x32xf32> to vector<32x32xf32>
    %c0_51 = arith.constant 0 : index
    %c0_52 = arith.constant 0 : index
    %c0_53 = arith.constant 0 : index
    %c2_54 = arith.constant 2 : index
    %50 = memref.load %arg1[%c0_51, %c0_52, %c0_53, %c2_54] : memref<2x3x3x3xf32, #tpu.memory_space<smem>>
    %51 = vector.broadcast %50 : f32 to vector<32x32xf32>
    %52 = arith.mulf %51, %49 : vector<32x32xf32>
    %53 = arith.addf %43, %52 : vector<32x32xf32>
    %c1_55 = arith.constant 1 : index
    %c0_56 = arith.constant 0 : index
    %c0_57 = arith.constant 0 : index
    %c2_58 = arith.constant 2 : index
    %54 = memref.load %arg1[%c1_55, %c0_56, %c0_57, %c2_58] : memref<2x3x3x3xf32, #tpu.memory_space<smem>>
    %55 = vector.broadcast %54 : f32 to vector<32x32xf32>
    %56 = arith.mulf %55, %49 : vector<32x32xf32>
    %57 = arith.addf %47, %56 : vector<32x32xf32>
    %c0_59 = arith.constant 0 : index
    %c1_60 = arith.constant 1 : index
    %c0_61 = arith.constant 0 : index
    %58 = vector.load %arg9[%c0_59, %c1_60, %c0_61] : memref<3x34x34xf32, #tpu.memory_space<vmem>>, vector<1x32x32xf32>
    %59 = vector.shape_cast %58 : vector<1x32x32xf32> to vector<32x32xf32>
    %c0_62 = arith.constant 0 : index
    %c0_63 = arith.constant 0 : index
    %c1_64 = arith.constant 1 : index
    %c0_65 = arith.constant 0 : index
    %60 = memref.load %arg1[%c0_62, %c0_63, %c1_64, %c0_65] : memref<2x3x3x3xf32, #tpu.memory_space<smem>>
    %61 = vector.broadcast %60 : f32 to vector<32x32xf32>
    %62 = arith.mulf %61, %59 : vector<32x32xf32>
    %63 = arith.addf %53, %62 : vector<32x32xf32>
    %c1_66 = arith.constant 1 : index
    %c0_67 = arith.constant 0 : index
    %c1_68 = arith.constant 1 : index
    %c0_69 = arith.constant 0 : index
    %64 = memref.load %arg1[%c1_66, %c0_67, %c1_68, %c0_69] : memref<2x3x3x3xf32, #tpu.memory_space<smem>>
    %65 = vector.broadcast %64 : f32 to vector<32x32xf32>
    %66 = arith.mulf %65, %59 : vector<32x32xf32>
    %67 = arith.addf %57, %66 : vector<32x32xf32>
    %c0_70 = arith.constant 0 : index
    %c1_71 = arith.constant 1 : index
    %c1_72 = arith.constant 1 : index
    %68 = vector.load %arg9[%c0_70, %c1_71, %c1_72] : memref<3x34x34xf32, #tpu.memory_space<vmem>>, vector<1x32x32xf32>
    %69 = vector.shape_cast %68 : vector<1x32x32xf32> to vector<32x32xf32>
    %c0_73 = arith.constant 0 : index
    %c0_74 = arith.constant 0 : index
    %c1_75 = arith.constant 1 : index
    %c1_76 = arith.constant 1 : index
    %70 = memref.load %arg1[%c0_73, %c0_74, %c1_75, %c1_76] : memref<2x3x3x3xf32, #tpu.memory_space<smem>>
    %71 = vector.broadcast %70 : f32 to vector<32x32xf32>
    %72 = arith.mulf %71, %69 : vector<32x32xf32>
    %73 = arith.addf %63, %72 : vector<32x32xf32>
    %c1_77 = arith.constant 1 : index
    %c0_78 = arith.constant 0 : index
    %c1_79 = arith.constant 1 : index
    %c1_80 = arith.constant 1 : index
    %74 = memref.load %arg1[%c1_77, %c0_78, %c1_79, %c1_80] : memref<2x3x3x3xf32, #tpu.memory_space<smem>>
    %75 = vector.broadcast %74 : f32 to vector<32x32xf32>
    %76 = arith.mulf %75, %69 : vector<32x32xf32>
    %77 = arith.addf %67, %76 : vector<32x32xf32>
    %c0_81 = arith.constant 0 : index
    %c1_82 = arith.constant 1 : index
    %c2_83 = arith.constant 2 : index
    %78 = vector.load %arg9[%c0_81, %c1_82, %c2_83] : memref<3x34x34xf32, #tpu.memory_space<vmem>>, vector<1x32x32xf32>
    %79 = vector.shape_cast %78 : vector<1x32x32xf32> to vector<32x32xf32>
    %c0_84 = arith.constant 0 : index
    %c0_85 = arith.constant 0 : index
    %c1_86 = arith.constant 1 : index
    %c2_87 = arith.constant 2 : index
    %80 = memref.load %arg1[%c0_84, %c0_85, %c1_86, %c2_87] : memref<2x3x3x3xf32, #tpu.memory_space<smem>>
    %81 = vector.broadcast %80 : f32 to vector<32x32xf32>
    %82 = arith.mulf %81, %79 : vector<32x32xf32>
    %83 = arith.addf %73, %82 : vector<32x32xf32>
    %c1_88 = arith.constant 1 : index
    %c0_89 = arith.constant 0 : index
    %c1_90 = arith.constant 1 : index
    %c2_91 = arith.constant 2 : index
    %84 = memref.load %arg1[%c1_88, %c0_89, %c1_90, %c2_91] : memref<2x3x3x3xf32, #tpu.memory_space<smem>>
    %85 = vector.broadcast %84 : f32 to vector<32x32xf32>
    %86 = arith.mulf %85, %79 : vector<32x32xf32>
    %87 = arith.addf %77, %86 : vector<32x32xf32>
    %c0_92 = arith.constant 0 : index
    %c2_93 = arith.constant 2 : index
    %c0_94 = arith.constant 0 : index
    %88 = vector.load %arg9[%c0_92, %c2_93, %c0_94] : memref<3x34x34xf32, #tpu.memory_space<vmem>>, vector<1x32x32xf32>
    %89 = vector.shape_cast %88 : vector<1x32x32xf32> to vector<32x32xf32>
    %c0_95 = arith.constant 0 : index
    %c0_96 = arith.constant 0 : index
    %c2_97 = arith.constant 2 : index
    %c0_98 = arith.constant 0 : index
    %90 = memref.load %arg1[%c0_95, %c0_96, %c2_97, %c0_98] : memref<2x3x3x3xf32, #tpu.memory_space<smem>>
    %91 = vector.broadcast %90 : f32 to vector<32x32xf32>
    %92 = arith.mulf %91, %89 : vector<32x32xf32>
    %93 = arith.addf %83, %92 : vector<32x32xf32>
    %c1_99 = arith.constant 1 : index
    %c0_100 = arith.constant 0 : index
    %c2_101 = arith.constant 2 : index
    %c0_102 = arith.constant 0 : index
    %94 = memref.load %arg1[%c1_99, %c0_100, %c2_101, %c0_102] : memref<2x3x3x3xf32, #tpu.memory_space<smem>>
    %95 = vector.broadcast %94 : f32 to vector<32x32xf32>
    %96 = arith.mulf %95, %89 : vector<32x32xf32>
    %97 = arith.addf %87, %96 : vector<32x32xf32>
    %c0_103 = arith.constant 0 : index
    %c2_104 = arith.constant 2 : index
    %c1_105 = arith.constant 1 : index
    %98 = vector.load %arg9[%c0_103, %c2_104, %c1_105] : memref<3x34x34xf32, #tpu.memory_space<vmem>>, vector<1x32x32xf32>
    %99 = vector.shape_cast %98 : vector<1x32x32xf32> to vector<32x32xf32>
    %c0_106 = arith.constant 0 : index
    %c0_107 = arith.constant 0 : index
    %c2_108 = arith.constant 2 : index
    %c1_109 = arith.constant 1 : index
    %100 = memref.load %arg1[%c0_106, %c0_107, %c2_108, %c1_109] : memref<2x3x3x3xf32, #tpu.memory_space<smem>>
    %101 = vector.broadcast %100 : f32 to vector<32x32xf32>
    %102 = arith.mulf %101, %99 : vector<32x32xf32>
    %103 = arith.addf %93, %102 : vector<32x32xf32>
    %c1_110 = arith.constant 1 : index
    %c0_111 = arith.constant 0 : index
    %c2_112 = arith.constant 2 : index
    %c1_113 = arith.constant 1 : index
    %104 = memref.load %arg1[%c1_110, %c0_111, %c2_112, %c1_113] : memref<2x3x3x3xf32, #tpu.memory_space<smem>>
    %105 = vector.broadcast %104 : f32 to vector<32x32xf32>
    %106 = arith.mulf %105, %99 : vector<32x32xf32>
    %107 = arith.addf %97, %106 : vector<32x32xf32>
    %c0_114 = arith.constant 0 : index
    %c2_115 = arith.constant 2 : index
    %c2_116 = arith.constant 2 : index
    %108 = vector.load %arg9[%c0_114, %c2_115, %c2_116] : memref<3x34x34xf32, #tpu.memory_space<vmem>>, vector<1x32x32xf32>
    %109 = vector.shape_cast %108 : vector<1x32x32xf32> to vector<32x32xf32>
    %c0_117 = arith.constant 0 : index
    %c0_118 = arith.constant 0 : index
    %c2_119 = arith.constant 2 : index
    %c2_120 = arith.constant 2 : index
    %110 = memref.load %arg1[%c0_117, %c0_118, %c2_119, %c2_120] : memref<2x3x3x3xf32, #tpu.memory_space<smem>>
    %111 = vector.broadcast %110 : f32 to vector<32x32xf32>
    %112 = arith.mulf %111, %109 : vector<32x32xf32>
    %113 = arith.addf %103, %112 : vector<32x32xf32>
    %c1_121 = arith.constant 1 : index
    %c0_122 = arith.constant 0 : index
    %c2_123 = arith.constant 2 : index
    %c2_124 = arith.constant 2 : index
    %114 = memref.load %arg1[%c1_121, %c0_122, %c2_123, %c2_124] : memref<2x3x3x3xf32, #tpu.memory_space<smem>>
    %115 = vector.broadcast %114 : f32 to vector<32x32xf32>
    %116 = arith.mulf %115, %109 : vector<32x32xf32>
    %117 = arith.addf %107, %116 : vector<32x32xf32>
    %c1_125 = arith.constant 1 : index
    %c0_126 = arith.constant 0 : index
    %c0_127 = arith.constant 0 : index
    %118 = vector.load %arg9[%c1_125, %c0_126, %c0_127] : memref<3x34x34xf32, #tpu.memory_space<vmem>>, vector<1x32x32xf32>
    %119 = vector.shape_cast %118 : vector<1x32x32xf32> to vector<32x32xf32>
    %c0_128 = arith.constant 0 : index
    %c1_129 = arith.constant 1 : index
    %c0_130 = arith.constant 0 : index
    %c0_131 = arith.constant 0 : index
    %120 = memref.load %arg1[%c0_128, %c1_129, %c0_130, %c0_131] : memref<2x3x3x3xf32, #tpu.memory_space<smem>>
    %121 = vector.broadcast %120 : f32 to vector<32x32xf32>
    %122 = arith.mulf %121, %119 : vector<32x32xf32>
    %123 = arith.addf %113, %122 : vector<32x32xf32>
    %c1_132 = arith.constant 1 : index
    %c1_133 = arith.constant 1 : index
    %c0_134 = arith.constant 0 : index
    %c0_135 = arith.constant 0 : index
    %124 = memref.load %arg1[%c1_132, %c1_133, %c0_134, %c0_135] : memref<2x3x3x3xf32, #tpu.memory_space<smem>>
    %125 = vector.broadcast %124 : f32 to vector<32x32xf32>
    %126 = arith.mulf %125, %119 : vector<32x32xf32>
    %127 = arith.addf %117, %126 : vector<32x32xf32>
    %c1_136 = arith.constant 1 : index
    %c0_137 = arith.constant 0 : index
    %c1_138 = arith.constant 1 : index
    %128 = vector.load %arg9[%c1_136, %c0_137, %c1_138] : memref<3x34x34xf32, #tpu.memory_space<vmem>>, vector<1x32x32xf32>
    %129 = vector.shape_cast %128 : vector<1x32x32xf32> to vector<32x32xf32>
    %c0_139 = arith.constant 0 : index
    %c1_140 = arith.constant 1 : index
    %c0_141 = arith.constant 0 : index
    %c1_142 = arith.constant 1 : index
    %130 = memref.load %arg1[%c0_139, %c1_140, %c0_141, %c1_142] : memref<2x3x3x3xf32, #tpu.memory_space<smem>>
    %131 = vector.broadcast %130 : f32 to vector<32x32xf32>
    %132 = arith.mulf %131, %129 : vector<32x32xf32>
    %133 = arith.addf %123, %132 : vector<32x32xf32>
    %c1_143 = arith.constant 1 : index
    %c1_144 = arith.constant 1 : index
    %c0_145 = arith.constant 0 : index
    %c1_146 = arith.constant 1 : index
    %134 = memref.load %arg1[%c1_143, %c1_144, %c0_145, %c1_146] : memref<2x3x3x3xf32, #tpu.memory_space<smem>>
    %135 = vector.broadcast %134 : f32 to vector<32x32xf32>
    %136 = arith.mulf %135, %129 : vector<32x32xf32>
    %137 = arith.addf %127, %136 : vector<32x32xf32>
    %c1_147 = arith.constant 1 : index
    %c0_148 = arith.constant 0 : index
    %c2_149 = arith.constant 2 : index
    %138 = vector.load %arg9[%c1_147, %c0_148, %c2_149] : memref<3x34x34xf32, #tpu.memory_space<vmem>>, vector<1x32x32xf32>
    %139 = vector.shape_cast %138 : vector<1x32x32xf32> to vector<32x32xf32>
    %c0_150 = arith.constant 0 : index
    %c1_151 = arith.constant 1 : index
    %c0_152 = arith.constant 0 : index
    %c2_153 = arith.constant 2 : index
    %140 = memref.load %arg1[%c0_150, %c1_151, %c0_152, %c2_153] : memref<2x3x3x3xf32, #tpu.memory_space<smem>>
    %141 = vector.broadcast %140 : f32 to vector<32x32xf32>
    %142 = arith.mulf %141, %139 : vector<32x32xf32>
    %143 = arith.addf %133, %142 : vector<32x32xf32>
    %c1_154 = arith.constant 1 : index
    %c1_155 = arith.constant 1 : index
    %c0_156 = arith.constant 0 : index
    %c2_157 = arith.constant 2 : index
    %144 = memref.load %arg1[%c1_154, %c1_155, %c0_156, %c2_157] : memref<2x3x3x3xf32, #tpu.memory_space<smem>>
    %145 = vector.broadcast %144 : f32 to vector<32x32xf32>
    %146 = arith.mulf %145, %139 : vector<32x32xf32>
    %147 = arith.addf %137, %146 : vector<32x32xf32>
    %c1_158 = arith.constant 1 : index
    %c1_159 = arith.constant 1 : index
    %c0_160 = arith.constant 0 : index
    %148 = vector.load %arg9[%c1_158, %c1_159, %c0_160] : memref<3x34x34xf32, #tpu.memory_space<vmem>>, vector<1x32x32xf32>
    %149 = vector.shape_cast %148 : vector<1x32x32xf32> to vector<32x32xf32>
    %c0_161 = arith.constant 0 : index
    %c1_162 = arith.constant 1 : index
    %c1_163 = arith.constant 1 : index
    %c0_164 = arith.constant 0 : index
    %150 = memref.load %arg1[%c0_161, %c1_162, %c1_163, %c0_164] : memref<2x3x3x3xf32, #tpu.memory_space<smem>>
    %151 = vector.broadcast %150 : f32 to vector<32x32xf32>
    %152 = arith.mulf %151, %149 : vector<32x32xf32>
    %153 = arith.addf %143, %152 : vector<32x32xf32>
    %c1_165 = arith.constant 1 : index
    %c1_166 = arith.constant 1 : index
    %c1_167 = arith.constant 1 : index
    %c0_168 = arith.constant 0 : index
    %154 = memref.load %arg1[%c1_165, %c1_166, %c1_167, %c0_168] : memref<2x3x3x3xf32, #tpu.memory_space<smem>>
    %155 = vector.broadcast %154 : f32 to vector<32x32xf32>
    %156 = arith.mulf %155, %149 : vector<32x32xf32>
    %157 = arith.addf %147, %156 : vector<32x32xf32>
    %c1_169 = arith.constant 1 : index
    %c1_170 = arith.constant 1 : index
    %c1_171 = arith.constant 1 : index
    %158 = vector.load %arg9[%c1_169, %c1_170, %c1_171] : memref<3x34x34xf32, #tpu.memory_space<vmem>>, vector<1x32x32xf32>
    %159 = vector.shape_cast %158 : vector<1x32x32xf32> to vector<32x32xf32>
    %c0_172 = arith.constant 0 : index
    %c1_173 = arith.constant 1 : index
    %c1_174 = arith.constant 1 : index
    %c1_175 = arith.constant 1 : index
    %160 = memref.load %arg1[%c0_172, %c1_173, %c1_174, %c1_175] : memref<2x3x3x3xf32, #tpu.memory_space<smem>>
    %161 = vector.broadcast %160 : f32 to vector<32x32xf32>
    %162 = arith.mulf %161, %159 : vector<32x32xf32>
    %163 = arith.addf %153, %162 : vector<32x32xf32>
    %c1_176 = arith.constant 1 : index
    %c1_177 = arith.constant 1 : index
    %c1_178 = arith.constant 1 : index
    %c1_179 = arith.constant 1 : index
    %164 = memref.load %arg1[%c1_176, %c1_177, %c1_178, %c1_179] : memref<2x3x3x3xf32, #tpu.memory_space<smem>>
    %165 = vector.broadcast %164 : f32 to vector<32x32xf32>
    %166 = arith.mulf %165, %159 : vector<32x32xf32>
    %167 = arith.addf %157, %166 : vector<32x32xf32>
    %c1_180 = arith.constant 1 : index
    %c1_181 = arith.constant 1 : index
    %c2_182 = arith.constant 2 : index
    %168 = vector.load %arg9[%c1_180, %c1_181, %c2_182] : memref<3x34x34xf32, #tpu.memory_space<vmem>>, vector<1x32x32xf32>
    %169 = vector.shape_cast %168 : vector<1x32x32xf32> to vector<32x32xf32>
    %c0_183 = arith.constant 0 : index
    %c1_184 = arith.constant 1 : index
    %c1_185 = arith.constant 1 : index
    %c2_186 = arith.constant 2 : index
    %170 = memref.load %arg1[%c0_183, %c1_184, %c1_185, %c2_186] : memref<2x3x3x3xf32, #tpu.memory_space<smem>>
    %171 = vector.broadcast %170 : f32 to vector<32x32xf32>
    %172 = arith.mulf %171, %169 : vector<32x32xf32>
    %173 = arith.addf %163, %172 : vector<32x32xf32>
    %c1_187 = arith.constant 1 : index
    %c1_188 = arith.constant 1 : index
    %c1_189 = arith.constant 1 : index
    %c2_190 = arith.constant 2 : index
    %174 = memref.load %arg1[%c1_187, %c1_188, %c1_189, %c2_190] : memref<2x3x3x3xf32, #tpu.memory_space<smem>>
    %175 = vector.broadcast %174 : f32 to vector<32x32xf32>
    %176 = arith.mulf %175, %169 : vector<32x32xf32>
    %177 = arith.addf %167, %176 : vector<32x32xf32>
    %c1_191 = arith.constant 1 : index
    %c2_192 = arith.constant 2 : index
    %c0_193 = arith.constant 0 : index
    %178 = vector.load %arg9[%c1_191, %c2_192, %c0_193] : memref<3x34x34xf32, #tpu.memory_space<vmem>>, vector<1x32x32xf32>
    %179 = vector.shape_cast %178 : vector<1x32x32xf32> to vector<32x32xf32>
    %c0_194 = arith.constant 0 : index
    %c1_195 = arith.constant 1 : index
    %c2_196 = arith.constant 2 : index
    %c0_197 = arith.constant 0 : index
    %180 = memref.load %arg1[%c0_194, %c1_195, %c2_196, %c0_197] : memref<2x3x3x3xf32, #tpu.memory_space<smem>>
    %181 = vector.broadcast %180 : f32 to vector<32x32xf32>
    %182 = arith.mulf %181, %179 : vector<32x32xf32>
    %183 = arith.addf %173, %182 : vector<32x32xf32>
    %c1_198 = arith.constant 1 : index
    %c1_199 = arith.constant 1 : index
    %c2_200 = arith.constant 2 : index
    %c0_201 = arith.constant 0 : index
    %184 = memref.load %arg1[%c1_198, %c1_199, %c2_200, %c0_201] : memref<2x3x3x3xf32, #tpu.memory_space<smem>>
    %185 = vector.broadcast %184 : f32 to vector<32x32xf32>
    %186 = arith.mulf %185, %179 : vector<32x32xf32>
    %187 = arith.addf %177, %186 : vector<32x32xf32>
    %c1_202 = arith.constant 1 : index
    %c2_203 = arith.constant 2 : index
    %c1_204 = arith.constant 1 : index
    %188 = vector.load %arg9[%c1_202, %c2_203, %c1_204] : memref<3x34x34xf32, #tpu.memory_space<vmem>>, vector<1x32x32xf32>
    %189 = vector.shape_cast %188 : vector<1x32x32xf32> to vector<32x32xf32>
    %c0_205 = arith.constant 0 : index
    %c1_206 = arith.constant 1 : index
    %c2_207 = arith.constant 2 : index
    %c1_208 = arith.constant 1 : index
    %190 = memref.load %arg1[%c0_205, %c1_206, %c2_207, %c1_208] : memref<2x3x3x3xf32, #tpu.memory_space<smem>>
    %191 = vector.broadcast %190 : f32 to vector<32x32xf32>
    %192 = arith.mulf %191, %189 : vector<32x32xf32>
    %193 = arith.addf %183, %192 : vector<32x32xf32>
    %c1_209 = arith.constant 1 : index
    %c1_210 = arith.constant 1 : index
    %c2_211 = arith.constant 2 : index
    %c1_212 = arith.constant 1 : index
    %194 = memref.load %arg1[%c1_209, %c1_210, %c2_211, %c1_212] : memref<2x3x3x3xf32, #tpu.memory_space<smem>>
    %195 = vector.broadcast %194 : f32 to vector<32x32xf32>
    %196 = arith.mulf %195, %189 : vector<32x32xf32>
    %197 = arith.addf %187, %196 : vector<32x32xf32>
    %c1_213 = arith.constant 1 : index
    %c2_214 = arith.constant 2 : index
    %c2_215 = arith.constant 2 : index
    %198 = vector.load %arg9[%c1_213, %c2_214, %c2_215] : memref<3x34x34xf32, #tpu.memory_space<vmem>>, vector<1x32x32xf32>
    %199 = vector.shape_cast %198 : vector<1x32x32xf32> to vector<32x32xf32>
    %c0_216 = arith.constant 0 : index
    %c1_217 = arith.constant 1 : index
    %c2_218 = arith.constant 2 : index
    %c2_219 = arith.constant 2 : index
    %200 = memref.load %arg1[%c0_216, %c1_217, %c2_218, %c2_219] : memref<2x3x3x3xf32, #tpu.memory_space<smem>>
    %201 = vector.broadcast %200 : f32 to vector<32x32xf32>
    %202 = arith.mulf %201, %199 : vector<32x32xf32>
    %203 = arith.addf %193, %202 : vector<32x32xf32>
    %c1_220 = arith.constant 1 : index
    %c1_221 = arith.constant 1 : index
    %c2_222 = arith.constant 2 : index
    %c2_223 = arith.constant 2 : index
    %204 = memref.load %arg1[%c1_220, %c1_221, %c2_222, %c2_223] : memref<2x3x3x3xf32, #tpu.memory_space<smem>>
    %205 = vector.broadcast %204 : f32 to vector<32x32xf32>
    %206 = arith.mulf %205, %199 : vector<32x32xf32>
    %207 = arith.addf %197, %206 : vector<32x32xf32>
    %c2_224 = arith.constant 2 : index
    %c0_225 = arith.constant 0 : index
    %c0_226 = arith.constant 0 : index
    %208 = vector.load %arg9[%c2_224, %c0_225, %c0_226] : memref<3x34x34xf32, #tpu.memory_space<vmem>>, vector<1x32x32xf32>
    %209 = vector.shape_cast %208 : vector<1x32x32xf32> to vector<32x32xf32>
    %c0_227 = arith.constant 0 : index
    %c2_228 = arith.constant 2 : index
    %c0_229 = arith.constant 0 : index
    %c0_230 = arith.constant 0 : index
    %210 = memref.load %arg1[%c0_227, %c2_228, %c0_229, %c0_230] : memref<2x3x3x3xf32, #tpu.memory_space<smem>>
    %211 = vector.broadcast %210 : f32 to vector<32x32xf32>
    %212 = arith.mulf %211, %209 : vector<32x32xf32>
    %213 = arith.addf %203, %212 : vector<32x32xf32>
    %c1_231 = arith.constant 1 : index
    %c2_232 = arith.constant 2 : index
    %c0_233 = arith.constant 0 : index
    %c0_234 = arith.constant 0 : index
    %214 = memref.load %arg1[%c1_231, %c2_232, %c0_233, %c0_234] : memref<2x3x3x3xf32, #tpu.memory_space<smem>>
    %215 = vector.broadcast %214 : f32 to vector<32x32xf32>
    %216 = arith.mulf %215, %209 : vector<32x32xf32>
    %217 = arith.addf %207, %216 : vector<32x32xf32>
    %c2_235 = arith.constant 2 : index
    %c0_236 = arith.constant 0 : index
    %c1_237 = arith.constant 1 : index
    %218 = vector.load %arg9[%c2_235, %c0_236, %c1_237] : memref<3x34x34xf32, #tpu.memory_space<vmem>>, vector<1x32x32xf32>
    %219 = vector.shape_cast %218 : vector<1x32x32xf32> to vector<32x32xf32>
    %c0_238 = arith.constant 0 : index
    %c2_239 = arith.constant 2 : index
    %c0_240 = arith.constant 0 : index
    %c1_241 = arith.constant 1 : index
    %220 = memref.load %arg1[%c0_238, %c2_239, %c0_240, %c1_241] : memref<2x3x3x3xf32, #tpu.memory_space<smem>>
    %221 = vector.broadcast %220 : f32 to vector<32x32xf32>
    %222 = arith.mulf %221, %219 : vector<32x32xf32>
    %223 = arith.addf %213, %222 : vector<32x32xf32>
    %c1_242 = arith.constant 1 : index
    %c2_243 = arith.constant 2 : index
    %c0_244 = arith.constant 0 : index
    %c1_245 = arith.constant 1 : index
    %224 = memref.load %arg1[%c1_242, %c2_243, %c0_244, %c1_245] : memref<2x3x3x3xf32, #tpu.memory_space<smem>>
    %225 = vector.broadcast %224 : f32 to vector<32x32xf32>
    %226 = arith.mulf %225, %219 : vector<32x32xf32>
    %227 = arith.addf %217, %226 : vector<32x32xf32>
    %c2_246 = arith.constant 2 : index
    %c0_247 = arith.constant 0 : index
    %c2_248 = arith.constant 2 : index
    %228 = vector.load %arg9[%c2_246, %c0_247, %c2_248] : memref<3x34x34xf32, #tpu.memory_space<vmem>>, vector<1x32x32xf32>
    %229 = vector.shape_cast %228 : vector<1x32x32xf32> to vector<32x32xf32>
    %c0_249 = arith.constant 0 : index
    %c2_250 = arith.constant 2 : index
    %c0_251 = arith.constant 0 : index
    %c2_252 = arith.constant 2 : index
    %230 = memref.load %arg1[%c0_249, %c2_250, %c0_251, %c2_252] : memref<2x3x3x3xf32, #tpu.memory_space<smem>>
    %231 = vector.broadcast %230 : f32 to vector<32x32xf32>
    %232 = arith.mulf %231, %229 : vector<32x32xf32>
    %233 = arith.addf %223, %232 : vector<32x32xf32>
    %c1_253 = arith.constant 1 : index
    %c2_254 = arith.constant 2 : index
    %c0_255 = arith.constant 0 : index
    %c2_256 = arith.constant 2 : index
    %234 = memref.load %arg1[%c1_253, %c2_254, %c0_255, %c2_256] : memref<2x3x3x3xf32, #tpu.memory_space<smem>>
    %235 = vector.broadcast %234 : f32 to vector<32x32xf32>
    %236 = arith.mulf %235, %229 : vector<32x32xf32>
    %237 = arith.addf %227, %236 : vector<32x32xf32>
    %c2_257 = arith.constant 2 : index
    %c1_258 = arith.constant 1 : index
    %c0_259 = arith.constant 0 : index
    %238 = vector.load %arg9[%c2_257, %c1_258, %c0_259] : memref<3x34x34xf32, #tpu.memory_space<vmem>>, vector<1x32x32xf32>
    %239 = vector.shape_cast %238 : vector<1x32x32xf32> to vector<32x32xf32>
    %c0_260 = arith.constant 0 : index
    %c2_261 = arith.constant 2 : index
    %c1_262 = arith.constant 1 : index
    %c0_263 = arith.constant 0 : index
    %240 = memref.load %arg1[%c0_260, %c2_261, %c1_262, %c0_263] : memref<2x3x3x3xf32, #tpu.memory_space<smem>>
    %241 = vector.broadcast %240 : f32 to vector<32x32xf32>
    %242 = arith.mulf %241, %239 : vector<32x32xf32>
    %243 = arith.addf %233, %242 : vector<32x32xf32>
    %c1_264 = arith.constant 1 : index
    %c2_265 = arith.constant 2 : index
    %c1_266 = arith.constant 1 : index
    %c0_267 = arith.constant 0 : index
    %244 = memref.load %arg1[%c1_264, %c2_265, %c1_266, %c0_267] : memref<2x3x3x3xf32, #tpu.memory_space<smem>>
    %245 = vector.broadcast %244 : f32 to vector<32x32xf32>
    %246 = arith.mulf %245, %239 : vector<32x32xf32>
    %247 = arith.addf %237, %246 : vector<32x32xf32>
    %c2_268 = arith.constant 2 : index
    %c1_269 = arith.constant 1 : index
    %c1_270 = arith.constant 1 : index
    %248 = vector.load %arg9[%c2_268, %c1_269, %c1_270] : memref<3x34x34xf32, #tpu.memory_space<vmem>>, vector<1x32x32xf32>
    %249 = vector.shape_cast %248 : vector<1x32x32xf32> to vector<32x32xf32>
    %c0_271 = arith.constant 0 : index
    %c2_272 = arith.constant 2 : index
    %c1_273 = arith.constant 1 : index
    %c1_274 = arith.constant 1 : index
    %250 = memref.load %arg1[%c0_271, %c2_272, %c1_273, %c1_274] : memref<2x3x3x3xf32, #tpu.memory_space<smem>>
    %251 = vector.broadcast %250 : f32 to vector<32x32xf32>
    %252 = arith.mulf %251, %249 : vector<32x32xf32>
    %253 = arith.addf %243, %252 : vector<32x32xf32>
    %c1_275 = arith.constant 1 : index
    %c2_276 = arith.constant 2 : index
    %c1_277 = arith.constant 1 : index
    %c1_278 = arith.constant 1 : index
    %254 = memref.load %arg1[%c1_275, %c2_276, %c1_277, %c1_278] : memref<2x3x3x3xf32, #tpu.memory_space<smem>>
    %255 = vector.broadcast %254 : f32 to vector<32x32xf32>
    %256 = arith.mulf %255, %249 : vector<32x32xf32>
    %257 = arith.addf %247, %256 : vector<32x32xf32>
    %c2_279 = arith.constant 2 : index
    %c1_280 = arith.constant 1 : index
    %c2_281 = arith.constant 2 : index
    %258 = vector.load %arg9[%c2_279, %c1_280, %c2_281] : memref<3x34x34xf32, #tpu.memory_space<vmem>>, vector<1x32x32xf32>
    %259 = vector.shape_cast %258 : vector<1x32x32xf32> to vector<32x32xf32>
    %c0_282 = arith.constant 0 : index
    %c2_283 = arith.constant 2 : index
    %c1_284 = arith.constant 1 : index
    %c2_285 = arith.constant 2 : index
    %260 = memref.load %arg1[%c0_282, %c2_283, %c1_284, %c2_285] : memref<2x3x3x3xf32, #tpu.memory_space<smem>>
    %261 = vector.broadcast %260 : f32 to vector<32x32xf32>
    %262 = arith.mulf %261, %259 : vector<32x32xf32>
    %263 = arith.addf %253, %262 : vector<32x32xf32>
    %c1_286 = arith.constant 1 : index
    %c2_287 = arith.constant 2 : index
    %c1_288 = arith.constant 1 : index
    %c2_289 = arith.constant 2 : index
    %264 = memref.load %arg1[%c1_286, %c2_287, %c1_288, %c2_289] : memref<2x3x3x3xf32, #tpu.memory_space<smem>>
    %265 = vector.broadcast %264 : f32 to vector<32x32xf32>
    %266 = arith.mulf %265, %259 : vector<32x32xf32>
    %267 = arith.addf %257, %266 : vector<32x32xf32>
    %c2_290 = arith.constant 2 : index
    %c2_291 = arith.constant 2 : index
    %c0_292 = arith.constant 0 : index
    %268 = vector.load %arg9[%c2_290, %c2_291, %c0_292] : memref<3x34x34xf32, #tpu.memory_space<vmem>>, vector<1x32x32xf32>
    %269 = vector.shape_cast %268 : vector<1x32x32xf32> to vector<32x32xf32>
    %c0_293 = arith.constant 0 : index
    %c2_294 = arith.constant 2 : index
    %c2_295 = arith.constant 2 : index
    %c0_296 = arith.constant 0 : index
    %270 = memref.load %arg1[%c0_293, %c2_294, %c2_295, %c0_296] : memref<2x3x3x3xf32, #tpu.memory_space<smem>>
    %271 = vector.broadcast %270 : f32 to vector<32x32xf32>
    %272 = arith.mulf %271, %269 : vector<32x32xf32>
    %273 = arith.addf %263, %272 : vector<32x32xf32>
    %c1_297 = arith.constant 1 : index
    %c2_298 = arith.constant 2 : index
    %c2_299 = arith.constant 2 : index
    %c0_300 = arith.constant 0 : index
    %274 = memref.load %arg1[%c1_297, %c2_298, %c2_299, %c0_300] : memref<2x3x3x3xf32, #tpu.memory_space<smem>>
    %275 = vector.broadcast %274 : f32 to vector<32x32xf32>
    %276 = arith.mulf %275, %269 : vector<32x32xf32>
    %277 = arith.addf %267, %276 : vector<32x32xf32>
    %c2_301 = arith.constant 2 : index
    %c2_302 = arith.constant 2 : index
    %c1_303 = arith.constant 1 : index
    %278 = vector.load %arg9[%c2_301, %c2_302, %c1_303] : memref<3x34x34xf32, #tpu.memory_space<vmem>>, vector<1x32x32xf32>
    %279 = vector.shape_cast %278 : vector<1x32x32xf32> to vector<32x32xf32>
    %c0_304 = arith.constant 0 : index
    %c2_305 = arith.constant 2 : index
    %c2_306 = arith.constant 2 : index
    %c1_307 = arith.constant 1 : index
    %280 = memref.load %arg1[%c0_304, %c2_305, %c2_306, %c1_307] : memref<2x3x3x3xf32, #tpu.memory_space<smem>>
    %281 = vector.broadcast %280 : f32 to vector<32x32xf32>
    %282 = arith.mulf %281, %279 : vector<32x32xf32>
    %283 = arith.addf %273, %282 : vector<32x32xf32>
    %c1_308 = arith.constant 1 : index
    %c2_309 = arith.constant 2 : index
    %c2_310 = arith.constant 2 : index
    %c1_311 = arith.constant 1 : index
    %284 = memref.load %arg1[%c1_308, %c2_309, %c2_310, %c1_311] : memref<2x3x3x3xf32, #tpu.memory_space<smem>>
    %285 = vector.broadcast %284 : f32 to vector<32x32xf32>
    %286 = arith.mulf %285, %279 : vector<32x32xf32>
    %287 = arith.addf %277, %286 : vector<32x32xf32>
    %c2_312 = arith.constant 2 : index
    %c2_313 = arith.constant 2 : index
    %c2_314 = arith.constant 2 : index
    %288 = vector.load %arg9[%c2_312, %c2_313, %c2_314] : memref<3x34x34xf32, #tpu.memory_space<vmem>>, vector<1x32x32xf32>
    %289 = vector.shape_cast %288 : vector<1x32x32xf32> to vector<32x32xf32>
    %c0_315 = arith.constant 0 : index
    %c2_316 = arith.constant 2 : index
    %c2_317 = arith.constant 2 : index
    %c2_318 = arith.constant 2 : index
    %290 = memref.load %arg1[%c0_315, %c2_316, %c2_317, %c2_318] : memref<2x3x3x3xf32, #tpu.memory_space<smem>>
    %291 = vector.broadcast %290 : f32 to vector<32x32xf32>
    %292 = arith.mulf %291, %289 : vector<32x32xf32>
    %293 = arith.addf %283, %292 : vector<32x32xf32>
    %c1_319 = arith.constant 1 : index
    %c2_320 = arith.constant 2 : index
    %c2_321 = arith.constant 2 : index
    %c2_322 = arith.constant 2 : index
    %294 = memref.load %arg1[%c1_319, %c2_320, %c2_321, %c2_322] : memref<2x3x3x3xf32, #tpu.memory_space<smem>>
    %295 = vector.broadcast %294 : f32 to vector<32x32xf32>
    %296 = arith.mulf %295, %289 : vector<32x32xf32>
    %297 = arith.addf %287, %296 : vector<32x32xf32>
    %c0_323 = arith.constant 0 : index
    %c0_324 = arith.constant 0 : index
    %c0_325 = arith.constant 0 : index
    %c0_326 = arith.constant 0 : index
    %298 = vector.load %arg6[%c0_323, %c0_324, %c0_325, %c0_326] : memref<1x1x32x32xf32, #tpu.memory_space<vmem>>, vector<1x1x32x32xf32>
    %299 = vector.shape_cast %298 : vector<1x1x32x32xf32> to vector<32x32xf32>
    %300 = tpu.iota {dimensions = array<i32: 0>} : vector<32x32xi32>
    %301 = tpu.iota {dimensions = array<i32: 1>} : vector<32x32xi32>
    %302 = arith.subi %300, %301 : vector<32x32xi32>
    %303 = math.absi %302 : vector<32x32xi32>
    %c15_i32 = arith.constant 15 : i32
    %304 = vector.broadcast %c15_i32 : i32 to vector<32x32xi32>
    %305 = arith.cmpi sle, %303, %304 : vector<32x32xi32>
    %306 = arith.extui %305 : vector<32x32xi1> to vector<32x32xi32>
    %307 = arith.sitofp %306 : vector<32x32xi32> to vector<32x32xf32>
    %308 = tpu.iota {dimensions = array<i32: 0>} : vector<32x32xi32>
    %309 = tpu.iota {dimensions = array<i32: 1>} : vector<32x32xi32>
    %310 = arith.subi %308, %309 : vector<32x32xi32>
    %311 = math.absi %310 : vector<32x32xi32>
    %c15_i32_327 = arith.constant 15 : i32
    %312 = vector.broadcast %c15_i32_327 : i32 to vector<32x32xi32>
    %313 = arith.cmpi sle, %311, %312 : vector<32x32xi32>
    %314 = arith.extui %313 : vector<32x32xi1> to vector<32x32xi32>
    %315 = arith.sitofp %314 : vector<32x32xi32> to vector<32x32xf32>
    %cst_328 = arith.constant dense<0.000000e+00> : vector<32x32xf32>
    %316 = tpu.matmul %299, %315, %cst_328 {dimension_numbers = #tpu.dot_dimension_numbers<[1], [0], [0], [1], [0, 0, 1, 1], [], []>} : vector<32x32xf32>, vector<32x32xf32>, vector<32x32xf32> -> vector<32x32xf32>
    %cst_329 = arith.constant dense<0.000000e+00> : vector<32x32xf32>
    %317 = tpu.matmul %307, %316, %cst_329 {dimension_numbers = #tpu.dot_dimension_numbers<[1], [0], [0], [1], [0, 0, 1, 1], [], []>} : vector<32x32xf32>, vector<32x32xf32>, vector<32x32xf32> -> vector<32x32xf32>
    %cst_330 = arith.constant 0.00104058278 : f32
    %318 = vector.broadcast %cst_330 : f32 to vector<32x32xf32>
    %319 = arith.mulf %317, %318 : vector<32x32xf32>
    %320 = arith.subf %319, %299 : vector<32x32xf32>
    %321 = math.absf %320 : vector<32x32xf32>
    %cst_331 = arith.constant 5.000000e+00 : f32
    %322 = vector.broadcast %cst_331 : f32 to vector<32x32xf32>
    %323 = arith.mulf %322, %321 : vector<32x32xf32>
    %cst_332 = arith.constant 1.000000e+00 : f32
    %324 = vector.broadcast %cst_332 : f32 to vector<32x32xf32>
    %325 = arith.addf %324, %323 : vector<32x32xf32>
    %326 = math.absf %293 : vector<32x32xf32>
    %cst_333 = arith.constant 0.000000e+00 : f32
    %327 = vector.broadcast %cst_333 : f32 to vector<32x32xf32>
    %328 = arith.subf %327, %326 : vector<32x32xf32>
    %329 = math.exp %328 : vector<32x32xf32>
    %cst_334 = arith.constant 0.000000e+00 : f32
    %330 = vector.broadcast %cst_334 : f32 to vector<32x32xf32>
    %331 = arith.maximumf %293, %330 : vector<32x32xf32>
    %332 = arith.mulf %293, %299 : vector<32x32xf32>
    %333 = arith.subf %331, %332 : vector<32x32xf32>
    %cst_335 = arith.constant 1.000000e+00 : f32
    %334 = vector.broadcast %cst_335 : f32 to vector<32x32xf32>
    %335 = arith.addf %334, %329 : vector<32x32xf32>
    %336 = math.log %335 : vector<32x32xf32>
    %337 = arith.addf %333, %336 : vector<32x32xf32>
    %cst_336 = arith.constant 0.000000e+00 : f32
    %338 = vector.broadcast %cst_336 : f32 to vector<32x32xf32>
    %339 = arith.cmpf oge, %293, %338 : vector<32x32xf32>
    %cst_337 = arith.constant 1.000000e+00 : f32
    %340 = vector.broadcast %cst_337 : f32 to vector<32x32xf32>
    %341 = arith.select %339, %340, %329 : vector<32x32xi1>, vector<32x32xf32>
    %cst_338 = arith.constant 1.000000e+00 : f32
    %342 = vector.broadcast %cst_338 : f32 to vector<32x32xf32>
    %343 = arith.addf %342, %329 : vector<32x32xf32>
    %344 = tpu.reciprocal %343 {approx = true} : vector<32x32xf32> -> vector<32x32xf32>
    %345 = arith.mulf %341, %344 : vector<32x32xf32>
    %346 = arith.mulf %325, %337 : vector<32x32xf32>
    %347 = vector.shape_cast %346 : vector<32x32xf32> to vector<1x32x32xf32>
    %cst_339 = arith.constant dense<0.000000e+00> : vector<1xf32>
    %348 = vector.multi_reduction <add>, %347, %cst_339 [1, 2] : vector<1x32x32xf32> to vector<1xf32>
    %349 = vector.shape_cast %348 : vector<1xf32> to vector<1x1x1xf32>
    %350 = vector.extract %349[0, 0, 0] : f32 from vector<1x1x1xf32>
    %351 = vector.shape_cast %325 : vector<32x32xf32> to vector<1x32x32xf32>
    %cst_340 = arith.constant dense<0.000000e+00> : vector<1xf32>
    %352 = vector.multi_reduction <add>, %351, %cst_340 [1, 2] : vector<1x32x32xf32> to vector<1xf32>
    %353 = vector.shape_cast %352 : vector<1xf32> to vector<1x1x1xf32>
    %354 = vector.extract %353[0, 0, 0] : f32 from vector<1x1x1xf32>
    %355 = arith.divf %350, %354 : f32
    %356 = arith.mulf %345, %299 : vector<32x32xf32>
    %357 = arith.mulf %356, %325 : vector<32x32xf32>
    %358 = vector.shape_cast %357 : vector<32x32xf32> to vector<1x32x32xf32>
    %cst_341 = arith.constant dense<0.000000e+00> : vector<1xf32>
    %359 = vector.multi_reduction <add>, %358, %cst_341 [1, 2] : vector<1x32x32xf32> to vector<1xf32>
    %360 = vector.shape_cast %359 : vector<1xf32> to vector<1x1x1xf32>
    %361 = vector.extract %360[0, 0, 0] : f32 from vector<1x1x1xf32>
    %362 = arith.addf %345, %299 : vector<32x32xf32>
    %363 = arith.mulf %362, %325 : vector<32x32xf32>
    %364 = vector.shape_cast %363 : vector<32x32xf32> to vector<1x32x32xf32>
    %cst_342 = arith.constant dense<0.000000e+00> : vector<1xf32>
    %365 = vector.multi_reduction <add>, %364, %cst_342 [1, 2] : vector<1x32x32xf32> to vector<1xf32>
    %366 = vector.shape_cast %365 : vector<1xf32> to vector<1x1x1xf32>
    %367 = vector.extract %366[0, 0, 0] : f32 from vector<1x1x1xf32>
    %cst_343 = arith.constant 1.000000e+00 : f32
    %368 = arith.addf %361, %cst_343 : f32
    %369 = arith.subf %367, %361 : f32
    %cst_344 = arith.constant 1.000000e+00 : f32
    %370 = arith.addf %369, %cst_344 : f32
    %371 = arith.divf %368, %370 : f32
    %cst_345 = arith.constant 1.000000e+00 : f32
    %372 = arith.subf %cst_345, %371 : f32
    %373 = arith.addf %355, %372 : f32
    %374 = arith.index_cast %arg0 : i32 to index
    %375 = memref.load %arg3[%374] : memref<2xf32, #tpu.memory_space<smem>>
    %376 = arith.index_cast %arg0 : i32 to index
    %377 = memref.load %arg4[%376] : memref<2xf32, #tpu.memory_space<smem>>
    %378 = tpu.iota {dimensions = array<i32: 0>} : vector<32x32xi32>
    %379 = arith.sitofp %378 : vector<32x32xi32> to vector<32x32xf32>
    %380 = tpu.iota {dimensions = array<i32: 1>} : vector<32x32xi32>
    %381 = arith.sitofp %380 : vector<32x32xi32> to vector<32x32xf32>
    %382 = vector.broadcast %375 : f32 to vector<32x32xf32>
    %383 = arith.subf %379, %382 : vector<32x32xf32>
    %384 = arith.mulf %383, %383 : vector<32x32xf32>
    %385 = vector.broadcast %377 : f32 to vector<32x32xf32>
    %386 = arith.subf %381, %385 : vector<32x32xf32>
    %387 = arith.mulf %386, %386 : vector<32x32xf32>
    %388 = arith.addf %384, %387 : vector<32x32xf32>
    %cst_346 = arith.constant 0.000000e+00 : f32
    %389 = vector.broadcast %cst_346 : f32 to vector<32x32xf32>
    %390 = arith.subf %389, %388 : vector<32x32xf32>
    %cst_347 = arith.constant 1.250000e-01 : f32
    %391 = vector.broadcast %cst_347 : f32 to vector<32x32xf32>
    %392 = arith.mulf %390, %391 : vector<32x32xf32>
    %393 = math.exp %392 : vector<32x32xf32>
    %cst_348 = arith.constant 7.000000e+00 : f32
    %394 = arith.subf %375, %cst_348 : f32
    %395 = vector.broadcast %394 : f32 to vector<32x32xf32>
    %396 = arith.cmpf oge, %379, %395 : vector<32x32xf32>
    %cst_349 = arith.constant 8.000000e+00 : f32
    %397 = arith.addf %375, %cst_349 : f32
    %398 = vector.broadcast %397 : f32 to vector<32x32xf32>
    %399 = arith.cmpf olt, %379, %398 : vector<32x32xf32>
    %400 = arith.andi %396, %399 : vector<32x32xi1>
    %cst_350 = arith.constant 7.000000e+00 : f32
    %401 = arith.subf %377, %cst_350 : f32
    %402 = vector.broadcast %401 : f32 to vector<32x32xf32>
    %403 = arith.cmpf oge, %381, %402 : vector<32x32xf32>
    %404 = arith.andi %400, %403 : vector<32x32xi1>
    %cst_351 = arith.constant 8.000000e+00 : f32
    %405 = arith.addf %377, %cst_351 : f32
    %406 = vector.broadcast %405 : f32 to vector<32x32xf32>
    %407 = arith.cmpf olt, %381, %406 : vector<32x32xf32>
    %408 = arith.andi %404, %407 : vector<32x32xi1>
    %cst_352 = arith.constant 0.000000e+00 : f32
    %409 = arith.cmpf oge, %375, %cst_352 : f32
    %cst_353 = arith.constant 3.200000e+01 : f32
    %410 = arith.cmpf olt, %375, %cst_353 : f32
    %411 = arith.andi %409, %410 : i1
    %cst_354 = arith.constant 0.000000e+00 : f32
    %412 = arith.cmpf oge, %377, %cst_354 : f32
    %413 = arith.andi %411, %412 : i1
    %cst_355 = arith.constant 3.200000e+01 : f32
    %414 = arith.cmpf olt, %377, %cst_355 : f32
    %415 = arith.andi %413, %414 : i1
    %416 = vector.broadcast %415 : i1 to vector<32x32xi1>
    %417 = arith.andi %408, %416 : vector<32x32xi1>
    %cst_356 = arith.constant 0.000000e+00 : f32
    %418 = vector.broadcast %cst_356 : f32 to vector<32x32xf32>
    %419 = arith.select %417, %393, %418 : vector<32x32xi1>, vector<32x32xf32>
    %420 = arith.subf %297, %419 : vector<32x32xf32>
    %421 = arith.mulf %420, %420 : vector<32x32xf32>
    %422 = vector.shape_cast %421 : vector<32x32xf32> to vector<1x32x32xf32>
    %cst_357 = arith.constant dense<0.000000e+00> : vector<1xf32>
    %423 = vector.multi_reduction <add>, %422, %cst_357 [1, 2] : vector<1x32x32xf32> to vector<1xf32>
    %424 = vector.shape_cast %423 : vector<1xf32> to vector<1x1x1xf32>
    %425 = vector.extract %424[0, 0, 0] : f32 from vector<1x1x1xf32>
    %cst_358 = arith.constant 9.765625E-4 : f32
    %426 = arith.mulf %425, %cst_358 : f32
    %427 = vector.broadcast %373 : f32 to vector<1x1x128xf32>
    %c0_359 = arith.constant 0 : index
    %c0_360 = arith.constant 0 : index
    %c0_361 = arith.constant 0 : index
    %428 = vector.load %arg7[%c0_359, %c0_360, %c0_361] : memref<1x1x128xf32, #tpu.memory_space<vmem>>, vector<1x1x128xf32>
    tpu.vector_store %arg7[%c0_359, %c0_360, %c0_361], %427 {strides = array<i32>} : memref<1x1x128xf32, #tpu.memory_space<vmem>>, vector<1x1x128xf32>,
    %429 = vector.broadcast %426 : f32 to vector<1x1x128xf32>
    %c0_362 = arith.constant 0 : index
    %c0_363 = arith.constant 0 : index
    %c0_364 = arith.constant 0 : index
    %430 = vector.load %arg8[%c0_362, %c0_363, %c0_364] : memref<1x1x128xf32, #tpu.memory_space<vmem>>, vector<1x1x128xf32>
    tpu.vector_store %arg8[%c0_362, %c0_363, %c0_364], %429 {strides = array<i32>} : memref<1x1x128xf32, #tpu.memory_space<vmem>>, vector<1x1x128xf32>,
    return
  }
  func.func @transform_0(%arg0: i32) -> (i32, i32, i32, i32) {
    %c0_i32 = arith.constant 0 : i32
    %c0_i32_0 = arith.constant 0 : i32
    %c0_i32_1 = arith.constant 0 : i32
    %c0_i32_2 = arith.constant 0 : i32
    %c0_i32_3 = arith.constant 0 : i32
    return %c0_i32, %c0_i32_0, %c0_i32_1, %c0_i32_2 : i32, i32, i32, i32
  }
  func.func @transform_1(%arg0: i32) -> i32 {
    %c0_i32 = arith.constant 0 : i32
    %c0_i32_0 = arith.constant 0 : i32
    return %c0_i32 : i32
  }
  func.func @transform_2(%arg0: i32) -> i32 {
    %c0_i32 = arith.constant 0 : i32
    %c0_i32_0 = arith.constant 0 : i32
    return %c0_i32 : i32
  }
  func.func @transform_3(%arg0: i32) -> i32 {
    %c0_i32 = arith.constant 0 : i32
    %c0_i32_0 = arith.constant 0 : i32
    return %c0_i32 : i32
  }
  func.func @transform_4(%arg0: i32) -> (i32, i32, i32, i32) {
    %c0_i32 = arith.constant 0 : i32
    %c0_i32_0 = arith.constant 0 : i32
    %c0_i32_1 = arith.constant 0 : i32
    %c0_i32_2 = arith.constant 0 : i32
    return %arg0, %c0_i32, %c0_i32_0, %c0_i32_1 : i32, i32, i32, i32
  }
  func.func @transform_5(%arg0: i32) -> (i32, i32, i32, i32) {
    %c0_i32 = arith.constant 0 : i32
    %c0_i32_0 = arith.constant 0 : i32
    %c0_i32_1 = arith.constant 0 : i32
    %c0_i32_2 = arith.constant 0 : i32
    return %arg0, %c0_i32, %c0_i32_0, %c0_i32_1 : i32, i32, i32, i32
  }
  func.func @transform_6(%arg0: i32) -> (i32, i32, i32) {
    %c0_i32 = arith.constant 0 : i32
    %c0_i32_0 = arith.constant 0 : i32
    %c0_i32_1 = arith.constant 0 : i32
    return %arg0, %c0_i32, %c0_i32_0 : i32, i32, i32
  }
  func.func @transform_7(%arg0: i32) -> (i32, i32, i32) {
    %c0_i32 = arith.constant 0 : i32
    %c0_i32_0 = arith.constant 0 : i32
    %c0_i32_1 = arith.constant 0 : i32
    return %arg0, %c0_i32, %c0_i32_0 : i32, i32, i32
  }
}

</mosaic_0001>

<bundles_post_ra>
// kernel: tpu_custom_call.1
= control target key start
LH: loop header
LB: loop body
LE: loop exit
PB: predicated region body
PF: predicated region fallthrough
CT: control target
= control target key end

     0   :  { %s4146_s0 = inlined_call_operand.vmem [shape: f32[2,3,3,3], index: 0, kind: input, shape index: {}]   ;;  %s4147_s1 = inlined_call_operand.vmem [shape: f32[3], index: 1, kind: input, shape index: {}]   ;;  %s4148_s2 = inlined_call_operand.vmem [shape: f32[2], index: 2, kind: input, shape index: {}]   ;;  %s4149_s3 = inlined_call_operand.vmem [shape: f32[2], index: 3, kind: input, shape index: {}]   ;;  %s4150_s4 = inlined_call_operand.hbm [shape: f32[2,3,32,32], index: 4, kind: input, shape index: {}]   ;;  %s4151_s5 = inlined_call_operand.hbm [shape: f32[2,1,32,32], index: 5, kind: input, shape index: {}]   ;;  %s4152_s6 = inlined_call_operand.hbm [shape: f32[2,1,128], index: 6, kind: output, shape index: {0}]   ;;  %s4153_s7 = inlined_call_operand.hbm [shape: f32[2,1,128], index: 7, kind: output, shape index: {1}]  }
   0x1   :  { %4160 = sst [smem:[#allocation28_spill]] %s4146_s0 }
   0x2   :  { %4161 = sst [smem:[#allocation29_spill]] %s4147_s1 }
   0x3   :  { %4162 = sst [smem:[#allocation30_spill]] %s4148_s2 }
   0x4   :  { %4163 = sst [smem:[#allocation31_spill]] %s4149_s3 }
   0x5   :  { %13 = vsyncpa [#allocation6], 0 }
   0x6   :  { %14 = vsyncpa [#allocation8], 0 }
   0x7   :  { %15 = vsyncpa [#allocation11], 0 }
   0x8   :  { %16 = vsyncpa [#allocation4], 0 }
   0x9   :  { %18 = vsyncpa [#allocation4 + $0x1], 0 }
   0xa   :  { %19 = vsyncpa [#allocation14], 0 }
   0xb   :  { %21 = vsyncpa [#allocation14 + $0x1], 0 }
   0xc   :  { %22 = vsyncpa [#allocation5], 0 }
   0xd   :  { %24 = vsyncpa [#allocation5 + $0x1], 0 }
   0xe   :  { %25 = vsyncpa [#allocation17], 0 }
   0xf   :  { %27 = vsyncpa [#allocation17 + $0x1], 0  ;;  %s3018_s24 = smov 0   ;;  %s3020_s25 = smov 0  }
  0x10   :  { %s3022_s26 = smov 0   ;;  %s3024_s27 = smov 0  }
  0x11 LB: > { %s3039_s28 = sadd.s32 4294967295, %s2959_s27   ;;  %s2382_s29 = sadd.s32 4294967294, %s2959_s27   ;;  %s2959_s27 = sphi %s3024_s27, %s4196_s27   ;;  %s2955_s26 = sphi %s3022_s26, %s4195_s26   ;;  %s2951_s25 = sphi %s3020_s25, %s4194_s25   ;;  %s2947_s24 = sphi %s3018_s24, %s4193_s24  }
  0x12   : > { %p137_p0 = scmp.ne.s32.totalorder %s2951_s25, %s2947_s24  ;;  %p4154_p1 = scmp.eq.s32.totalorder %s3039_s28, 0 }
  0x13   : > { %p193_p3 = scmp.eq.s32.totalorder %s2382_s29, 1  ;;  %p2383_p5 = scmp.ge.s32.totalorder %s2959_s27, 1 }
  0x14   : > { %p3048_p4 = por %p4154_p1, %p137_p0  ;;  %p226_p7 = scmp.lt.s32.totalorder %s2959_s27, 3 }
  0x15   : > { %p3053_p6 = por %p193_p3, %p137_p0  ;;  %s4166_s1 = sld [smem:[#allocation29_spill]] }
  0x16   : > { %s4164_s30 = scalar_select %p3048_p4, 1, 0 }
  0x17   : > { %s4165_s8 = scalar_select %p3053_p6, 1, 0 }
  0x18   : > { %p3061_p8 = pnand %p2383_p5, %p226_p7  ;;  %s4168_s0 = sld [smem:[#allocation28_spill]] }
  0x19   : > { %s4170_s2 = sld [smem:[#allocation30_spill]] }
  0x1a   : > { %s4167_s12 = scalar_select %p3061_p8, 1, 0 }
  0x1b   : > { %s252_s11 = sshll.u32 %s4166_s1, 4  ;;  %p2575_p10 = pneg %p3061_p8  ;;  %s253_s11 = int_to_ptr.vmem [resolvable:$true] %s252_s11 }
  0x1c   : > { %s2733_s20 = scalar_lea.vmem %s253_s11, 16  ;;  %p2741_p5 = scmp.lt.s32.totalorder %s253_s11, %s253_s11 }
  0x1d   : > { %p3075_p11 = pnand %p2575_p10, %p4154_p1  ;;  %p2734_p12 = scmp.ne.s32.totalorder %s253_s11, %s2733_s20 }
  0x1e   : > { %s238_s15 = sshll.u32 %s4168_s0, 4  ;;  %p2742_p7 = scmp.lt.s32.totalorder %s2733_s20, %s2733_s20  ;;  %s3071_s15 = int_to_ptr.vmem [resolvable:$true] %s238_s15 }
  0x1f   : > { %s263_s19 = sshll.u32 %s4170_s2, 4  ;;  %p2735_p13 = pneg %p3075_p11  ;;  %s3082_s19 = int_to_ptr.vmem [resolvable:$true] %s263_s19 }
  0x20   : > { %p2743_p10 = por %p2742_p7, %p2741_p5 }
  0x21   : > { %p2736_p0 = pnand %p2735_p13, %p2734_p12 }
  0x23   : > { %p2737_p3 = pneg %p2736_p0 }
  0x25   : > { %p2744_p9 = pnand %p2743_p10, %p2737_p3 }
  0x27   : > { %2747 = shalt.err (!%p2744_p9)
}
  0x28   : > { %s2961_s21 = smov [#allocation7]   ;;  %s2748_s22 = scalar_lea.vmem %s3071_s15, 384 }
  0x29   : > { %2581 = dma.vmem_to_smem (!%p3075_p11), %s253_s11, 16, %s2961_s21, [#allocation8]  }
  0x2a   : > { %p2749_p1 = scmp.ne.s32.totalorder %s3071_s15, %s2748_s22  ;;  %p2756_p0 = scmp.lt.s32.totalorder %s3071_s15, %s3071_s15 }
  0x2b   : > { %p2757_p6 = scmp.lt.s32.totalorder %s2748_s22, %s2748_s22 }
  0x2c   : > { %p2751_p2 = pnand %p2749_p1, %p2735_p13 }
  0x2d   : > { %p2758_p5 = por %p2757_p6, %p2756_p0 }
  0x2e   : > { %p2752_p12 = pneg %p2751_p2 }
  0x30   : > { %p2759_p3 = pnand %p2758_p5, %p2752_p12 }
  0x32   : > { %2762 = shalt.err (!%p2759_p3)
}
  0x33   : > { %s2962_s23 = smov [#allocation3]   ;;  %s2963_s29 = smov 64  }
  0x34   : > { %s2964_s9 = smov 4   ;;  %s4171_s3 = sld [smem:[#allocation31_spill]] }
  0x35   : > { %2578 = dma.vmem_to_smem (!%p3075_p11), %s3071_s15, 384, %s2962_s23, [#allocation6], %s2963_s29, %s2963_s29, %s2964_s9  }
  0x36   : > { %s2763_s14 = scalar_lea.vmem %s3082_s19, 16  ;;  %p2771_p9 = scmp.lt.s32.totalorder %s3082_s19, %s3082_s19 }
  0x37   : > { %p2764_p1 = scmp.ne.s32.totalorder %s3082_s19, %s2763_s14  ;;  %p2772_p7 = scmp.lt.s32.totalorder %s2763_s14, %s2763_s14 }
  0x39   : > { %p2766_p2 = pnand %p2764_p1, %p2735_p13  ;;  %p2773_p10 = por %p2772_p7, %p2771_p9 }
  0x3a   : > { %s274_s13 = sshll.u32 %s4171_s3, 4  ;;  %s275_s13 = int_to_ptr.vmem [resolvable:$true] %s274_s13 }
  0x3b   : > { %p2767_p6 = pneg %p2766_p2 }
  0x3d   : > { %p2774_p12 = pnand %p2773_p10, %p2767_p6 }
  0x3f   : > { %2777 = shalt.err (!%p2774_p12)
}
  0x40   : > { %s2965_s17 = smov [#allocation9]   ;;  %s2778_s15 = scalar_lea.vmem %s275_s13, 16 }
  0x41   : > { %2584 = dma.vmem_to_smem (!%p3075_p11), %s3082_s19, 16, %s2965_s17, [#allocation8]  }
  0x42   : > { %p2779_p0 = scmp.ne.s32.totalorder %s275_s13, %s2778_s15  ;;  %p2786_p1 = scmp.lt.s32.totalorder %s275_s13, %s275_s13 }
  0x43   : > { %p2787_p2 = scmp.lt.s32.totalorder %s2778_s15, %s2778_s15 }
  0x44   : > { %p2781_p5 = pnand %p2779_p0, %p2735_p13 }
  0x45   : > { %p2788_p4 = por %p2787_p2, %p2786_p1 }
  0x46   : > { %p2782_p3 = pneg %p2781_p5 }
  0x48   : > { %p2789_p8 = pnand %p2788_p4, %p2782_p3 }
  0x4a   : > { %2792 = shalt.err (!%p2789_p8)
}
  0x4b   : > { %s2966_s18 = smov [#allocation10]   ;;  %s3120_s19 = sadd.s32 1, %s2959_s27  }
  0x4c   : > { %2587 = dma.vmem_to_smem (!%p3075_p11), %s275_s13, 16, %s2966_s18, [#allocation11]  }
  0x4d   : > { %s121_s20 = ssub.s32 %s2959_s27, %s3120_s19  ;;  %s124_s21 = sadd.s32 1, %s2955_s26 }
  0x4e   : > { %p122_p4 = scmp.eq.s32.totalorder %s121_s20, 0  ;;  %p131_p8 = scmp.ne.s32.totalorder %s2955_s26, %s2951_s25 }
  0x4f   : > { %p132_p13 = scmp.eq.s32.totalorder %s2959_s27, 0  ;;  %p4172_p9 = scmp.eq.s32.totalorder %s3039_s28, 1 }
  0x50   : > { %s3129_s16 = scalar_select %p122_p4, %s2955_s26, %s124_s21  }
  0x51   : > { %p133_p6 = por %p132_p13, %p131_p8  ;;  %p3133_p7 = por %p4172_p9, %p131_p8 }
  0x52   : > { %p2606_p10 = scmp.lt.s32.totalorder %s2959_s27, 2  ;;  %s3139_s23 = sand.u32 1, %s2955_s26  }
  0x53   : > { %s2534_s29 = smul.u32 96, %s3139_s23  ;;  %s286_s18 = scalar_lea.sflag [#allocation4], %s3139_s23 }
  0x54   : > { %s2535_s9 = smul.u32 1536, %s2959_s27  ;;  %p3143_p11 = pnand %p2606_p10, %p133_p6 }
  0x55   : > { %s289_s17 = scalar_lea.vmem [#allocation12], %s2534_s29 }
  0x56   : > { %s3150_s14 = scalar_lea.hbm %s4150_s4, %s2535_s9  ;;  %s296_s15 = sshll.u32 %s289_s17, 4  ;;  %s3152_s15 = int_to_ptr.vmem [resolvable:$true] %s296_s15 }
  0x57   : > { %s2793_s20 = scalar_lea.hbm %s3150_s14, 1536  ;;  %p2795_p0 = pneg %p3143_p11 }
  0x58   : > { %p2794_p12 = scmp.ne.s32.totalorder %s3150_s14, %s2793_s20  ;;  %s2798_s9 = scalar_lea.hbm %s4150_s4, 3072 }
  0x59   : > { %p2799_p1 = scmp.lt.s32.totalorder %s3150_s14, %s4150_s4  ;;  %p2800_p2 = scmp.lt.s32.totalorder %s2798_s9, %s2793_s20 }
  0x5a   : > { %p2796_p5 = pnand %p2795_p0, %p2794_p12 }
  0x5b   : > { %p2801_p4 = por %p2800_p2, %p2799_p1 }
  0x5c   : > { %p2797_p3 = pneg %p2796_p5 }
  0x5e   : > { %p2802_p8 = pnand %p2801_p4, %p2797_p3 }
  0x60   : > { %2805 = shalt.err (!%p2802_p8)
}
  0x61   : > { %s2806_s29 = scalar_lea.vmem %s3152_s15, 1536  ;;  %s2967_s17 = smov [#allocation12]  }
  0x62   : > { %p2807_p13 = scmp.ne.s32.totalorder %s3152_s15, %s2806_s29  ;;  %s2811_s21 = sshll.u32 %s2967_s17, 4  ;;  %s2812_s21 = int_to_ptr.vmem [resolvable:$false] %s2811_s21 }
  0x63   : > { %s2813_s11 = scalar_lea.vmem %s2812_s21, 3072  ;;  %p2814_p10 = scmp.lt.s32.totalorder %s3152_s15, %s2812_s21 }
  0x64   : > { %p2809_p6 = pnand %p2807_p13, %p2795_p0  ;;  %p2815_p12 = scmp.lt.s32.totalorder %s2813_s11, %s2806_s29 }
  0x66   : > { %p2810_p9 = pneg %p2809_p6  ;;  %p2816_p5 = por %p2815_p12, %p2814_p10 }
  0x68   : > { %p2817_p1 = pnand %p2816_p5, %p2810_p9 }
  0x6a   : > { %2820 = shalt.err (!%p2817_p1)
}
  0x6b   : > { %s2968_s0 = smov 128   ;;  %s2969_s20 = smov 8  }
  0x6c   : > { %2591 = dma.hbm_to_vmem [thread:$0]  (!%p3143_p11), %s3150_s14, 1536, %s3152_s15, %s286_s18, %s2968_s0, %s2968_s0, %s2969_s20  }
  0x6d   : > { %s2390_s9 = sshll.u32 %s3139_s23, 5  ;;  %s2489_s13 = sshll.u32 %s2959_s27, 9 }
  0x6e   : > { %s3189_s21 = scalar_lea.hbm %s4151_s5, %s2489_s13  ;;  %s310_s11 = scalar_lea.vmem [#allocation13], %s2390_s9 }
  0x6f   : > { %s317_s1 = sshll.u32 %s310_s11, 4  ;;  %s307_s2 = scalar_lea.sflag [#allocation14], %s3139_s23  ;;  %s3191_s1 = int_to_ptr.vmem [resolvable:$true] %s317_s1 }
  0x70   : > { %s2821_s3 = scalar_lea.hbm %s3189_s21, 512  ;;  %s2826_s18 = scalar_lea.hbm %s4151_s5, 1024 }
  0x71   : > { %p2822_p3 = scmp.ne.s32.totalorder %s3189_s21, %s2821_s3  ;;  %p2827_p8 = scmp.lt.s32.totalorder %s3189_s21, %s4151_s5 }
  0x72   : > { %p2828_p13 = scmp.lt.s32.totalorder %s2826_s18, %s2821_s3 }
  0x73   : > { %p2824_p2 = pnand %p2822_p3, %p2795_p0 }
  0x74   : > { %p2829_p6 = por %p2828_p13, %p2827_p8 }
  0x75   : > { %p2825_p4 = pneg %p2824_p2 }
  0x77   : > { %p2830_p9 = pnand %p2829_p6, %p2825_p4 }
  0x79   : > { %2833 = shalt.err (!%p2830_p9)
}
  0x7a   : > { %s2834_s23 = scalar_lea.vmem %s3191_s1, 512  ;;  %s2970_s9 = smov [#allocation13]  }
  0x7b   : > { %p2835_p10 = scmp.ne.s32.totalorder %s3191_s1, %s2834_s23  ;;  %s2839_s17 = sshll.u32 %s2970_s9, 4  ;;  %s2840_s17 = int_to_ptr.vmem [resolvable:$false] %s2839_s17 }
  0x7c   : > { %s2841_s11 = scalar_lea.vmem %s2840_s17, 1024  ;;  %p2842_p1 = scmp.lt.s32.totalorder %s3191_s1, %s2840_s17 }
  0x7d   : > { %p2837_p12 = pnand %p2835_p10, %p2795_p0  ;;  %p2843_p3 = scmp.lt.s32.totalorder %s2841_s11, %s2834_s23 }
  0x7f   : > { %p2838_p5 = pneg %p2837_p12  ;;  %p2844_p2 = por %p2843_p3, %p2842_p1 }
  0x81   : > { %p2845_p8 = pnand %p2844_p2, %p2838_p5 }
  0x83   : > { %2848 = shalt.err (!%p2845_p8)
}
  0x84   : > { %2594 = dma.hbm_to_vmem [thread:$0]  (!%p3143_p11), %s3189_s21, 512, %s3191_s1, %s307_s2, %s2968_s0, %s2968_s0, %s2969_s20  }
  0x85   : > { %p4175_p0 = scmp.ne.s32.totalorder %s4167_s12, 0 }
  0x87   : > { %329 = sbr.rel (%p4175_p0) target bundleno = 1039 (0x40f), region = 44 }
  0x8c   : > { %p4176_p4 = scmp.eq.s32.totalorder %s3039_s28, 0 }
  0x8e   : > { %2918 = dma.done.wait (%p4176_p4), [#allocation6], 384   ;;  %p4177_p13 = pmov %p4176_p4 }
  0x8f   : > { %p4178_p6 = pmov %p4176_p4 }
  0x90   : > { %2920 = vsyncadd (%p4177_p13), [#allocation6], 4294966912 }
  0x91   : > { %2922 = dma.done.wait (%p4178_p6), [#allocation8], 32   ;;  %p4179_p9 = pmov %p4176_p4 }
  0x92   : > { %p4180_p10 = pmov %p4176_p4 }
  0x93   : > { %2924 = vsyncadd (%p4179_p9), [#allocation8], 4294967264 }
  0x94   : > { %2926 = dma.done.wait (%p4180_p10), [#allocation11], 16   ;;  %p4181_p11 = pmov %p4176_p4 }
  0x95   : > { %s3234_s1 = sand.u32 1, %s2951_s25   ;;  %p4182_p12 = scmp.ne.s32.totalorder %s4164_s30, 0 }
  0x96   : > { %2928 = vsyncadd (%p4181_p11), [#allocation11], 4294967280  ;;  %s2536_s2 = smul.u32 96, %s3234_s1  ;;  %s348_s3 = scalar_lea.sflag [#allocation4], %s3234_s1 }
  0x98   : > { %s3238_s12 = scalar_lea.vmem [#allocation12], %s2536_s2 }
  0x99   : > { %2930 = dma.done.wait (%p4182_p12), %s348_s3, 1536  }
  0x9a   : > { %2932 = vsyncadd (%p4182_p12), %s348_s3, 4294965760  ;;  %s2398_s10 = sshll.u32 %s3234_s1, 5  ;;  %s357_s0 = scalar_lea.sflag [#allocation14], %s3234_s1 }
  0x9b   : > { %s3246_s20 = scalar_lea.vmem [#allocation13], %s2398_s10 }
  0x9c   : > { %2934 = dma.done.wait (%p4182_p12), %s357_s0, 512  }
  0x9d   : > { %2936 = vsyncadd (%p4182_p12), %s357_s0, 4294966784 }
  0x9e   : > { %365 = sfence }
  0x9f   : > { %s421_s21 = sld [smem:[#allocation7]]  ;;  %v1668_v0 = vlaneseq  ;;  %v1664_v1 = vld [vmem:[%s3246_s20] sm:$0xff]  ;;  %vm1703_vm0 = vcmask 261120   ;;  %vm400_vm1 = vcmask 277504   ;;  %v419_v6 = vld [vmem:[%s3238_s12 + $0x10] sm:$0xff]  ;;  %v2971_v8 = vmov 0.0  }
  0xa0   : > { %2514 = vmatprep.mubr.msk.f32.mxu0 %vm1703_vm0, %v1664_v1  ;;  %s3258_s14 = sld [smem:[#allocation7 + $0x1]]  ;;  %v417_v4 = vld [vmem:[%s3238_s12] sm:$0xff]  ;;  %401 = vst.msk [vmem:[#allocation2] sm:$0xff] %vm400_vm1, %v2971_v8  ;;  %402 = vst.msk [vmem:[#allocation2 + $0x8] sm:$0xff] %vm400_vm1, %v2971_v8  ;;  %vm405_vm2 = vcmask 271360   ;;  %v418_v13 = vld [vmem:[%s3238_s12 + $0x8] sm:$0xff] }
  0xa1   : > { %v3253_v2 = vshrl.u32 %v1668_v0, 7  ;;  %v3255_v3 = vand.u32 127, %v1668_v0  ;;  %403 = vst.msk [vmem:[#allocation2 + $0x10] sm:$0xff] %vm400_vm1, %v2971_v8  ;;  %404 = vst.msk [vmem:[#allocation2 + $0x18] sm:$0xff] %vm400_vm1, %v2971_v8  ;;  %v420_v17 = vld [vmem:[%s3238_s12 + $0x18] sm:$0xff]  ;;  %s2972_s30 = smov 1  }
  0xa2   : > { %407 = vst.msk [vmem:[#allocation2 + $0x28] sm:$0xff] %vm400_vm1, %v2971_v8  ;;  %408 = vst.msk [vmem:[#allocation2 + $0x30] sm:$0xff] %vm400_vm1, %v2971_v8  ;;  %v2399_v26 = vld [vmem:[%s3238_s12 + $0x20] sm:$0xff]  ;;  %s2408_s15 = sld [smem:[#allocation7 + $0x2]]  ;;  %v2400_v29 = vld [vmem:[%s3238_s12 + $0x28] sm:$0xff]  ;;  %v2973_v31 = vmov 1.0  }
  0xa3   : > { %v3262_v5 = vadd.s32 24, %v3253_v2  ;;  %v3266_v7 = vadd.s32 16, %v3253_v2  ;;  %409 = vst.msk [vmem:[#allocation2 + $0x38] sm:$0xff] %vm400_vm1, %v2971_v8  ;;  %410 = vst.msk [vmem:[#allocation2 + $0x40] sm:$0xff] %vm400_vm1, %v2971_v8  ;;  %v3293_v9 = vadd.s32 8, %v3253_v2  ;;  %v1675_v10 = vsub.s32 %v3253_v2, %v3255_v3  ;;  %v2401_v35 = vld [vmem:[%s3238_s12 + $0x30] sm:$0xff] }
  0xa4   : > { %412 = vst.msk [vmem:[#allocation2 + $0x50] sm:$0xff] %vm400_vm1, %v2971_v8  ;;  %413 = vst.msk [vmem:[#allocation2 + $0x58] sm:$0xff] %vm400_vm1, %v2971_v8  ;;  %v2402_v36 = vld [vmem:[%s3238_s12 + $0x38] sm:$0xff]  ;;  %v1665_v38 = vld [vmem:[%s3246_s20 + $0x8] sm:$0xff]  ;;  %vm443_vm7 = vcmask 269320   ;;  %s2410_s18 = sld [smem:[#allocation3 + $0x1]] }
  0xa5   : > { %4183 = vst [vmem:[#allocation25_spill] sm:$0xff] %v3262_v5  ;;  %4184 = vst [vmem:[#allocation26_spill] sm:$0xff] %v3266_v7  ;;  %v422_v11 = vstv %s421_s21  ;;  %v1678_v12 = vsub.s32 %v3262_v5, %v3255_v3  ;;  %v1677_v14 = vsub.s32 %v3266_v7, %v3255_v3  ;;  %v1676_v21 = vsub.s32 %v3293_v9, %v3255_v3  ;;  %v2404_v40 = vld [vmem:[%s3238_s12 + $0x40] sm:$0xff]  ;;  %v1666_v42 = vld [vmem:[%s3246_s20 + $0x10] sm:$0xff]  ;;  %s2412_s13 = sld [smem:[#allocation3 + $0x2]]  ;;  %s2974_s29 = smov 127  }
  0xa6   : > { %414 = vst.msk [vmem:[#allocation2 + $0x60] sm:$0xff] %vm400_vm1, %v2971_v8  ;;  %415 = vst.msk [vmem:[#allocation2 + $0x68] sm:$0xff] %vm400_vm1, %v2971_v8  ;;  %v423_v15 = vsub.f32 %v417_v4, %v422_v11  ;;  %v425_v16 = vsub.f32 %v419_v6, %v422_v11  ;;  %v424_v20 = vsub.f32 %v418_v13, %v422_v11  ;;  %v1680_v22 = vsub.s32 0, %v1675_v10  ;;  %v2405_v43 = vld [vmem:[%s3238_s12 + $0x48] sm:$0xff]  ;;  %v1667_v45 = vld [vmem:[%s3246_s20 + $0x18] sm:$0xff]  ;;  %s2416_s23 = sld [smem:[#allocation3 + $0x81]] }
  0xa7   : > { %4185 = vst [vmem:[#allocation27_spill] sm:$0xff] %v3293_v9  ;;  %406 = vst.msk [vmem:[#allocation2 + $0x20] sm:$0x3] %vm405_vm2, %v2971_v8  ;;  %v1689_v18 = vsub.s32 0, %v1678_v12  ;;  %v1686_v19 = vsub.s32 0, %v1677_v14  ;;  %v426_v25 = vsub.f32 %v420_v17, %v422_v11  ;;  %v1683_v27 = vsub.s32 0, %v1676_v21 }
  0xa8   : > { %411 = vst.msk [vmem:[#allocation2 + $0x48] sm:$0x3] %vm405_vm2, %v2971_v8  ;;  %416 = vst.msk [vmem:[#allocation2 + $0x70] sm:$0x3] %vm405_vm2, %v2971_v8  ;;  %431 = vrot.lane.b32.xlu0 %v423_v15, %s2972_s30  ;;  %435 = vrot.lane.b32.xlu1 %v425_v16, %s2972_s30  ;;  %v454_v28 = vstv %s3258_s14  ;;  %v2462_v30 = vmin.u32 %v1680_v22, %v1675_v10  ;;  %v486_v41 = vstv %s2408_s15  ;;  %s2975_s9 = smov 126   ;;  %s2418_s17 = sld [smem:[#allocation3 + $0x82]] }
  0xa9   : > { %v3310_v23 = vmin.u32 %v1689_v18, %v1678_v12  ;;  %v3312_v24 = vmin.u32 %v1686_v19, %v1677_v14  ;;  %v3322_v32 = vmin.u32 %v1683_v27, %v1676_v21  ;;  %v455_v33 = vsub.f32 %v2399_v26, %v454_v28  ;;  %v2406_v47 = vld [vmem:[%s3238_s12 + $0x50] sm:$0xff]  ;;  %v2407_v48 = vld [vmem:[%s3238_s12 + $0x58] sm:$0xff]  ;;  %s2422_s11 = sld [smem:[#allocation3 + $0x101]] }
  0xaa   : > { %v456_v34 = vsub.f32 %v2400_v29, %v454_v28  ;;  %vm1691_vm6 = vcmp.le.s32.totalorder %v2462_v30, 15  ;;  %v457_v37 = vsub.f32 %v2401_v35, %v454_v28  ;;  %v458_v39 = vsub.f32 %v2402_v36, %v454_v28  ;;  %s2424_s2 = sld [smem:[#allocation3 + $0x102]] }
  0xab   : > { %vm1694_vm3 = vcmp.le.s32.totalorder %v3310_v23, 15  ;;  %vm1693_vm4 = vcmp.le.s32.totalorder %v3312_v24, 15  ;;  %vm1692_vm5 = vcmp.le.s32.totalorder %v3322_v32, 15  ;;  %v487_v44 = vsub.f32 %v2404_v40, %v486_v41  ;;  %s2428_s3 = sld [smem:[#allocation3 + $0x201]] }
  0xac   : > { %2506 = vmatprep.subr.msk.mxu0 %vm1694_vm3, %v2973_v31  ;;  %433 = vrot.lane.b32.xlu0 %v424_v20, %s2972_s30  ;;  %v488_v46 = vsub.f32 %v2405_v43, %v486_v41  ;;  %v489_v49 = vsub.f32 %v2406_v47, %v486_v41  ;;  %v490_v50 = vsub.f32 %v2407_v48, %v486_v41  ;;  %v2466_v51 = vsel %vm1691_vm6, 1.0, %v2971_v8  ;;  %s2430_s12 = sld [smem:[#allocation3 + $0x202]] }
  0xad   : > { %2507 = vmatpush3.msk.msra.mxu0 %vm1694_vm3, %v2973_v31  ;;  %437 = vrot.lane.b32.xlu1 %v426_v25, %s2972_s30  ;;  %v537_v56 = vstv %s2410_s18  ;;  %v589_v6 = vstv %s2412_s13  ;;  %v665_v20 = vstv %s2416_s23  ;;  %s2461_s10 = sld [smem:[#allocation3 + $0xb02]]  ;;  %v2469_v24 = vsel %vm1694_vm3, 1.0, %v2971_v8 }
  0xae   : > { %2508 = vmatprep.subr.msk.mxu0 %vm1693_vm4, %v2973_v31  ;;  %2528 = vmatprep.mubr.msk.f32.mxu1 %vm1703_vm0, %v2466_v51  ;;  %v717_v29 = vstv %s2418_s17  ;;  %s2434_s0 = sld [smem:[#allocation3 + $0x281]] }
  0xaf   : > { %2509 = vmatpush3.msk.msra.mxu0 %vm1693_vm4, %v2973_v31  ;;  %s2436_s21 = sld [smem:[#allocation3 + $0x282]] }
  0xb0   : > { %2510 = vmatprep.subr.msk.mxu0 %vm1692_vm5, %v2973_v31  ;;  %463 = vrot.lane.b32.xlu0 %v455_v33, %s2972_s30  ;;  %s2440_s14 = sld [smem:[#allocation3 + $0x301]] }
  0xb1   : > { %2511 = vmatpush3.msk.msra.mxu0 %vm1692_vm5, %v2973_v31  ;;  %465 = vrot.lane.b32.xlu1 %v456_v34, %s2972_s30  ;;  %s2446_s15 = sld [smem:[#allocation3 + $0x401]] }
  0xb2   : > { %2512 = vmatprep.subr.msk.mxu0 %vm1691_vm6, %v2973_v31  ;;  %s2448_s18 = sld [smem:[#allocation3 + $0x402]] }
  0xb3   : > { %2513 = vmatpush3.msk.msra.mxu0 %vm1691_vm6, %v2973_v31  ;;  %s2452_s13 = sld [smem:[#allocation3 + $0x481]] }
  0xb4   : > { %2515 = vmatmul.mubr.msk.f32.vlgmr.msra.gmra.mxu0 %vm1703_vm0, %v1665_v38  ;;  %467 = vrot.lane.b32.xlu0 %v457_v37, %s2972_s30  ;;  %v793_v37 = vstv %s2422_s11  ;;  %s2454_s23 = sld [smem:[#allocation3 + $0x482]] }
  0xb5   : > { %2517 = vmatprep.mubr.msk.f32.mxu0 %vm1703_vm0, %v1666_v42  ;;  %469 = vrot.lane.b32.xlu1 %v458_v39, %s2972_s30  ;;  %s516_s17 = sld [smem:[#allocation3]] }
  0xb6   : > { %s2414_s11 = sld [smem:[#allocation3 + $0x80]] }
  0xb8   : > { %2518 = vmatmul.mubr.msk.f32.gmra.mxu0 %vm1703_vm0, %v1667_v45  ;;  %495 = vrot.lane.b32.xlu0 %v487_v44, %s2972_s30  ;;  %v845_v44 = vstv %s2424_s2  ;;  %v1357_v23 = vstv %s2448_s18  ;;  %s2458_s2 = sld [smem:[#allocation3 + $0x501]] }
  0xb9   : > { %497 = vrot.lane.b32.xlu1 %v488_v46, %s2972_s30  ;;  %s2423_s18 = sld [smem:[#allocation3 + $0x701]] }
  0xbc   : > { %499 = vrot.lane.b32.xlu0 %v489_v49, %s2972_s30  ;;  %v921_v49 = vstv %s2428_s3  ;;  %s2460_s3 = sld [smem:[#allocation3 + $0x502]] }
  0xbd   : > { %501 = vrot.lane.b32.xlu1 %v490_v50, %s2972_s30  ;;  %s2442_s30 = sld [smem:[#allocation3 + $0x302]] }
 0x11a   : > { %v432_v52 = vpop.permute.xlu0 %431  ;;  %v436_v53 = vpop.permute.xlu1 %435 }
 0x11b   : > { %444 = vst.msk [vmem:[#allocation2 + $0x1] sm:$0xff] %vm443_vm7, %v432_v52  ;;  %446 = vst.msk [vmem:[#allocation2 + $0x11] sm:$0xff] %vm443_vm7, %v436_v53 }
 0x11e   : > { %v434_v54 = vpop.permute.xlu0 %433 }
 0x11f   : > { %445 = vst.msk [vmem:[#allocation2 + $0x9] sm:$0xff] %vm443_vm7, %v434_v54  ;;  %v438_v55 = vpop.permute.xlu1 %437 }
 0x120   : > { %447 = vst.msk [vmem:[#allocation2 + $0x19] sm:$0xff] %vm443_vm7, %v438_v55 }
 0x122   : > { %v3365_v57 = vld [vmem:[#allocation2] sm:$0xff]  ;;  %v464_v58 = vpop.permute.xlu0 %463  ;;  %v3401_v26 = vld [vmem:[#allocation2 + $0x11] sm:$0xff] }
 0x123   : > { %v538_v59 = vmul.f32 %v537_v56, %v3365_v57  ;;  %476 = vst.msk [vmem:[#allocation2 + $0x29] sm:$0xff] %vm443_vm7, %v464_v58  ;;  %v466_v60 = vpop.permute.xlu1 %465  ;;  %v590_v11 = vmul.f32 %v589_v6, %v3365_v57  ;;  %v3392_v19 = vld [vmem:[#allocation2 + $0x1] sm:$0xff]  ;;  %v668_v28 = vmul.f32 %v665_v20, %v3401_v26  ;;  %v720_v35 = vmul.f32 %v717_v29, %v3401_v26 }
 0x124   : > { %477 = vst.msk [vmem:[#allocation2 + $0x31] sm:$0xff] %vm443_vm7, %v466_v60  ;;  %v666_v22 = vmul.f32 %v665_v20, %v3392_v19  ;;  %v718_v30 = vmul.f32 %v717_v29, %v3392_v19 }
 0x125   : > { %546 = vrot.lane.b32.xlu0 %v538_v59, %s2974_s29  ;;  %v973_v59 = vstv %s2430_s12  ;;  %s2420_s12 = sld [smem:[#allocation3 + $0x100]] }
 0x126   : > { %v3371_v61 = vld [vmem:[#allocation2 + $0x8] sm:$0xff]  ;;  %v3373_v62 = vld [vmem:[#allocation2 + $0x10] sm:$0xff]  ;;  %v468_v63 = vpop.permute.xlu0 %467 }
 0x127   : > { %v539_v0 = vmul.f32 %v537_v56, %v3371_v61  ;;  %v540_v1 = vmul.f32 %v537_v56, %v3373_v62  ;;  %478 = vst.msk [vmem:[#allocation2 + $0x39] sm:$0xff] %vm443_vm7, %v468_v63  ;;  %v470_v4 = vpop.permute.xlu1 %469  ;;  %v591_v12 = vmul.f32 %v589_v6, %v3371_v61  ;;  %v3384_v14 = vld [vmem:[#allocation2 + $0x18] sm:$0xff]  ;;  %v592_v17 = vmul.f32 %v589_v6, %v3373_v62  ;;  %v3399_v25 = vld [vmem:[#allocation2 + $0x9] sm:$0xff] }
 0x128   : > { %479 = vst.msk [vmem:[#allocation2 + $0x41] sm:$0xff] %vm443_vm7, %v470_v4  ;;  %v541_v16 = vmul.f32 %v537_v56, %v3384_v14  ;;  %v593_v21 = vmul.f32 %v589_v6, %v3384_v14  ;;  %v667_v27 = vmul.f32 %v665_v20, %v3399_v25  ;;  %v719_v31 = vmul.f32 %v717_v29, %v3399_v25  ;;  %v3411_v33 = vld [vmem:[#allocation2 + $0x19] sm:$0xff]  ;;  %v3417_v36 = vld [vmem:[#allocation2 + $0x2] sm:$0xff]  ;;  %v3423_v40 = vld [vmem:[#allocation2 + $0xa] sm:$0xff] }
 0x129   : > { %548 = vrot.lane.b32.xlu1 %v539_v0, %s2974_s29  ;;  %550 = vrot.lane.b32.xlu0 %v540_v1, %s2974_s29  ;;  %v669_v34 = vmul.f32 %v665_v20, %v3411_v33  ;;  %v721_v38 = vmul.f32 %v717_v29, %v3411_v33  ;;  %v794_v39 = vmul.f32 %v793_v37, %v3417_v36  ;;  %v3425_v41 = vld [vmem:[#allocation2 + $0x12] sm:$0xff]  ;;  %v3435_v47 = vld [vmem:[#allocation2 + $0x1a] sm:$0xff]  ;;  %v3463_v1 = vstv %s2461_s10  ;;  %s2411_s10 = sld [smem:[#allocation3 + $0x601]] }
 0x12a   : > { %v496_v10 = vpop.permute.xlu0 %495  ;;  %v795_v42 = vmul.f32 %v793_v37, %v3423_v40  ;;  %v796_v43 = vmul.f32 %v793_v37, %v3425_v41  ;;  %v846_v45 = vmul.f32 %v845_v44, %v3417_v36  ;;  %v847_v46 = vmul.f32 %v845_v44, %v3423_v40  ;;  %v3439_v48 = vld [vmem:[#allocation2 + $0x28] sm:$0xff] }
 0x12b   : > { %508 = vst.msk [vmem:[#allocation2 + $0x51] sm:$0xff] %vm443_vm7, %v496_v10  ;;  %v498_v13 = vpop.permute.xlu1 %497  ;;  %v797_v50 = vmul.f32 %v793_v37, %v3435_v47  ;;  %v848_v51 = vmul.f32 %v845_v44, %v3425_v41  ;;  %v922_v52 = vmul.f32 %v921_v49, %v3439_v48  ;;  %v3446_v53 = vld [vmem:[#allocation2 + $0x30] sm:$0xff]  ;;  %v849_v55 = vmul.f32 %v845_v44, %v3435_v47 }
 0x12c   : > { %509 = vst.msk [vmem:[#allocation2 + $0x59] sm:$0xff] %vm443_vm7, %v498_v13  ;;  %v923_v56 = vmul.f32 %v921_v49, %v3446_v53  ;;  %v974_v4 = vmul.f32 %v973_v59, %v3439_v48  ;;  %v975_v6 = vmul.f32 %v973_v59, %v3446_v53  ;;  %v3485_v20 = vld [vmem:[#allocation2 + $0x31] sm:$0xff] }
 0x12d   : > { %598 = vrot.lane.b32.xlu1 %v590_v11, %s2975_s9  ;;  %600 = vrot.lane.b32.xlu0 %v591_v12, %s2975_s9  ;;  %v3503_v37 = vld [vmem:[#allocation2 + $0x2a] sm:$0xff] }
 0x12e   : > { %v500_v15 = vpop.permute.xlu0 %499  ;;  %v3448_v54 = vld [vmem:[#allocation2 + $0x38] sm:$0xff] }
 0x12f   : > { %510 = vst.msk [vmem:[#allocation2 + $0x61] sm:$0xff] %vm443_vm7, %v500_v15  ;;  %v502_v18 = vpop.permute.xlu1 %501  ;;  %v924_v58 = vmul.f32 %v921_v49, %v3448_v54  ;;  %v3461_v0 = vld [vmem:[#allocation2 + $0x40] sm:$0xff]  ;;  %v976_v13 = vmul.f32 %v973_v59, %v3448_v54  ;;  %v3479_v15 = vld [vmem:[#allocation2 + $0x29] sm:$0xff]  ;;  %v3509_v44 = vld [vmem:[#allocation2 + $0x32] sm:$0xff] }
 0x130   : > { %511 = vst.msk [vmem:[#allocation2 + $0x69] sm:$0xff] %vm443_vm7, %v502_v18  ;;  %v925_v12 = vmul.f32 %v921_v49, %v3461_v0 }
 0x131   : > { %552 = vrot.lane.b32.xlu1 %v541_v16, %s2974_s29  ;;  %602 = vrot.lane.b32.xlu0 %v592_v17, %s2975_s9  ;;  %v1049_v16 = vstv %s2434_s0  ;;  %v977_v17 = vmul.f32 %v973_v59, %v3461_v0  ;;  %v3521_v59 = vld [vmem:[#allocation2 + $0x42] sm:$0xff]  ;;  %s2413_s0 = sld [smem:[#allocation3 + $0x602]] }
 0x132   : > { %v1050_v18 = vmul.f32 %v1049_v16, %v3479_v15 }
 0x135   : > { %604 = vrot.lane.b32.xlu1 %v593_v21, %s2975_s9  ;;  %674 = vrot.lane.b32.xlu0 %v666_v22, %s2974_s29  ;;  %v3487_v21 = vld [vmem:[#allocation2 + $0x39] sm:$0xff]  ;;  %v1051_v22 = vmul.f32 %v1049_v16, %v3485_v20 }
 0x136   : > { %v3599_v5 = vld [vmem:[#allocation2 + $0x5a] sm:$0xff] }
 0x137   : > { %v3455_v60 = vld [vmem:[#allocation2 + $0x62] sm:$0xff]  ;;  %v3457_v63 = vld [vmem:[#allocation2 + $0x6a] sm:$0xff] }
 0x138   : > { %v3469_v10 = vmul.f32 %v3463_v1, %v3455_v60  ;;  %v3473_v11 = vmul.f32 %v3463_v1, %v3457_v63 }
 0x139   : > { %676 = vrot.lane.b32.xlu1 %v667_v27, %s2974_s29  ;;  %678 = vrot.lane.b32.xlu0 %v668_v28, %s2974_s29  ;;  %v1052_v27 = vmul.f32 %v1049_v16, %v3487_v21  ;;  %v1101_v28 = vstv %s2436_s21  ;;  %s2426_s21 = sld [smem:[#allocation3 + $0x200]] }
 0x13a   : > { %v1102_v29 = vmul.f32 %v1101_v28, %v3479_v15 }
 0x13d   : > { %726 = vrot.lane.b32.xlu1 %v718_v30, %s2975_s9  ;;  %728 = vrot.lane.b32.xlu0 %v719_v31, %s2975_s9  ;;  %v1103_v30 = vmul.f32 %v1101_v28, %v3485_v20  ;;  %v3497_v31 = vld [vmem:[#allocation2 + $0x41] sm:$0xff] }
 0x141   : > { %680 = vrot.lane.b32.xlu1 %v669_v34, %s2974_s29  ;;  %730 = vrot.lane.b32.xlu0 %v720_v35, %s2975_s9  ;;  %v1053_v34 = vmul.f32 %v1049_v16, %v3497_v31  ;;  %v1104_v35 = vmul.f32 %v1101_v28, %v3487_v21  ;;  %v1305_v16 = vstv %s2446_s15  ;;  %s2432_s15 = sld [smem:[#allocation3 + $0x280]] }
 0x145   : > { %732 = vrot.lane.b32.xlu1 %v721_v38, %s2975_s9  ;;  %802 = vrot.lane.b32.xlu0 %v794_v39, %s2974_s29  ;;  %v1177_v38 = vstv %s2440_s14  ;;  %v1105_v39 = vmul.f32 %v1101_v28, %v3497_v31  ;;  %s2417_s14 = sld [smem:[#allocation3 + $0x681]] }
 0x146   : > { %v1179_v49 = vmul.f32 %v1177_v38, %v3509_v44 }
 0x149   : > { %804 = vrot.lane.b32.xlu1 %v795_v42, %s2974_s29  ;;  %806 = vrot.lane.b32.xlu0 %v796_v43, %s2974_s29  ;;  %v1178_v42 = vmul.f32 %v1177_v38, %v3503_v37 }
 0x14d   : > { %854 = vrot.lane.b32.xlu1 %v846_v45, %s2975_s9  ;;  %856 = vrot.lane.b32.xlu0 %v847_v46, %s2975_s9  ;;  %v3513_v45 = vld [vmem:[#allocation2 + $0x3a] sm:$0xff] }
 0x151   : > { %808 = vrot.lane.b32.xlu1 %v797_v50, %s2974_s29  ;;  %858 = vrot.lane.b32.xlu0 %v848_v51, %s2975_s9  ;;  %v1180_v51 = vmul.f32 %v1177_v38, %v3513_v45 }
 0x155   : > { %860 = vrot.lane.b32.xlu1 %v849_v55, %s2975_s9  ;;  %930 = vrot.lane.b32.xlu0 %v922_v52, %s2974_s29  ;;  %v1229_v52 = vstv %s2442_s30  ;;  %s2419_s30 = sld [smem:[#allocation3 + $0x682]] }
 0x159   : > { %932 = vrot.lane.b32.xlu1 %v923_v56, %s2974_s29  ;;  %934 = vrot.lane.b32.xlu0 %v924_v58, %s2974_s29  ;;  %v1230_v56 = vmul.f32 %v1229_v52, %v3503_v37  ;;  %v1231_v58 = vmul.f32 %v1229_v52, %v3509_v44 }
 0x15d   : > { %982 = vrot.lane.b32.xlu1 %v974_v4, %s2975_s9  ;;  %984 = vrot.lane.b32.xlu0 %v975_v6, %s2975_s9  ;;  %v2467_v4 = vsel %vm1692_vm5, 1.0, %v2971_v8  ;;  %v1181_v6 = vmul.f32 %v1177_v38, %v3521_v59 }
 0x161   : > { %936 = vrot.lane.b32.xlu1 %v925_v12, %s2974_s29  ;;  %986 = vrot.lane.b32.xlu0 %v976_v13, %s2975_s9  ;;  %v2468_v12 = vsel %vm1693_vm4, 1.0, %v2971_v8  ;;  %v3532_v13 = vld [vmem:[#allocation2 + $0x50] sm:$0xff]  ;;  %v3555_v8 = vld [vmem:[#allocation2 + $0x68] sm:$0xff] }
 0x162   : > { %v1306_v32 = vmul.f32 %v1305_v16, %v3532_v13 }
 0x165   : > { %988 = vrot.lane.b32.xlu1 %v977_v17, %s2975_s9  ;;  %1058 = vrot.lane.b32.xlu0 %v1050_v18, %s2974_s29  ;;  %v1232_v17 = vmul.f32 %v1229_v52, %v3513_v45  ;;  %v3543_v18 = vld [vmem:[#allocation2 + $0x58] sm:$0xff] }
 0x166   : > { %v1307_v28 = vmul.f32 %v1305_v16, %v3543_v18 }
 0x169   : > { %1060 = vrot.lane.b32.xlu1 %v1051_v22, %s2974_s29  ;;  %1062 = vrot.lane.b32.xlu0 %v1052_v27, %s2974_s29  ;;  %v1233_v22 = vmul.f32 %v1229_v52, %v3521_v59  ;;  %v3546_v27 = vld [vmem:[#allocation2 + $0x60] sm:$0xff] }
 0x16a   : > { %v1360_v38 = vmul.f32 %v1357_v23, %v3546_v27 }
 0x16d   : > { %1110 = vrot.lane.b32.xlu1 %v1102_v29, %s2975_s9  ;;  %1112 = vrot.lane.b32.xlu0 %v1103_v30, %s2975_s9  ;;  %v1308_v29 = vmul.f32 %v1305_v16, %v3546_v27  ;;  %v1358_v30 = vmul.f32 %v1357_v23, %v3532_v13 }
 0x171   : > { %1064 = vrot.lane.b32.xlu1 %v1053_v34, %s2974_s29  ;;  %1114 = vrot.lane.b32.xlu0 %v1104_v35, %s2975_s9  ;;  %v1359_v34 = vmul.f32 %v1357_v23, %v3543_v18  ;;  %v1309_v35 = vmul.f32 %v1305_v16, %v3555_v8 }
 0x174   : > { %v2516_v43 = vpop.f32.mrf.mxu0 }
 0x175   : > { %1116 = vrot.lane.b32.xlu1 %v1105_v39, %s2975_s9  ;;  %1186 = vrot.lane.b32.xlu0 %v1178_v42, %s2974_s29  ;;  %v3564_v39 = vld [vmem:[#allocation2 + $0x51] sm:$0xff]  ;;  %v1433_v42 = vstv %s2452_s13  ;;  %s2425_s13 = sld [smem:[#allocation3 + $0x702]] }
 0x176   : > { %v1782_v46 = vpop.f32.mrf.mxu0 }
 0x178   : > { %v2519_v50 = vpop.f32.mrf.mxu0 }
 0x179   : > { %2520 = vmatprep.subr.mxu1 %v2519_v50  ;;  %1188 = vrot.lane.b32.xlu1 %v1179_v49, %s2974_s29  ;;  %v3569_v49 = vld [vmem:[#allocation2 + $0x59] sm:$0xff] }
 0x17a   : > { %1190 = vrot.lane.b32.xlu0 %v1180_v51, %s2974_s29  ;;  %v1792_v55 = vpop.f32.mrf.mxu0  ;;  %2521 = vmatpush3.msra.mxu1 %v2519_v50  ;;  %v3572_v50 = vld [vmem:[#allocation2 + $0x61] sm:$0xff]  ;;  %v1435_v52 = vmul.f32 %v1433_v42, %v3569_v49 }
 0x17b   : > { %2522 = vmatprep.subr.mxu1 %v1792_v55 }
 0x17c   : > { %2523 = vmatpush3.msra.mxu1 %v1792_v55  ;;  %v1436_v55 = vmul.f32 %v1433_v42, %v3572_v50 }
 0x17d   : > { %2524 = vmatprep.subr.mxu1 %v2516_v43  ;;  %1238 = vrot.lane.b32.xlu1 %v1230_v56, %s2975_s9  ;;  %v1485_v56 = vstv %s2454_s23  ;;  %s2438_s23 = sld [smem:[#allocation3 + $0x300]] }
 0x17e   : > { %1240 = vrot.lane.b32.xlu0 %v1231_v58, %s2975_s9  ;;  %2525 = vmatpush3.msra.mxu1 %v2516_v43  ;;  %v1361_v43 = vmul.f32 %v1357_v23, %v3555_v8  ;;  %v517_v58 = vstv %s516_s17  ;;  %s2429_s17 = sld [smem:[#allocation3 + $0x801]] }
 0x17f   : > { %2526 = vmatprep.subr.mxu1 %v1782_v46  ;;  %v518_v16 = vmul.f32 %v517_v58, %v3365_v57  ;;  %v520_v23 = vmul.f32 %v517_v58, %v3373_v62 }
 0x180   : > { %2527 = vmatpush3.msra.mxu1 %v1782_v46  ;;  %v1434_v46 = vmul.f32 %v1433_v42, %v3564_v39 }
 0x181   : > { %2529 = vmatmul.mubr.msk.f32.vlgmr.msra.gmra.mxu1 %vm1703_vm0, %v2467_v4  ;;  %1192 = vrot.lane.b32.xlu1 %v1181_v6, %s2974_s29 }
 0x182   : > { %1242 = vrot.lane.b32.xlu0 %v1232_v17, %s2975_s9  ;;  %2531 = vmatprep.mubr.msk.f32.mxu1 %vm1703_vm0, %v2468_v12  ;;  %v1486_v12 = vmul.f32 %v1485_v56, %v3564_v39  ;;  %v519_v17 = vmul.f32 %v517_v58, %v3371_v61 }
 0x185   : > { %2532 = vmatmul.mubr.msk.f32.gmra.mxu1 %vm1703_vm0, %v2469_v24  ;;  %1244 = vrot.lane.b32.xlu1 %v1233_v22, %s2975_s9  ;;  %v1487_v24 = vmul.f32 %v1485_v56, %v3569_v49  ;;  %v645_v22 = vstv %s2414_s11  ;;  %s2431_s11 = sld [smem:[#allocation3 + $0x802]] }
 0x186   : > { %1314 = vrot.lane.b32.xlu0 %v1306_v32, %s2974_s29  ;;  %v3583_v32 = vld [vmem:[#allocation2 + $0x69] sm:$0xff] }
 0x189   : > { %1316 = vrot.lane.b32.xlu1 %v1307_v28, %s2974_s29 }
 0x18a   : > { %1318 = vrot.lane.b32.xlu0 %v1308_v29, %s2974_s29 }
 0x18d   : > { %1366 = vrot.lane.b32.xlu1 %v1358_v30, %s2975_s9 }
 0x18e   : > { %1368 = vrot.lane.b32.xlu0 %v1359_v34, %s2975_s9 }
 0x191   : > { %1320 = vrot.lane.b32.xlu1 %v1309_v35, %s2974_s29  ;;  %v1437_v35 = vmul.f32 %v1433_v42, %v3583_v32 }
 0x192   : > { %1370 = vrot.lane.b32.xlu0 %v1360_v38, %s2975_s9  ;;  %v646_v38 = vmul.f32 %v645_v22, %v3392_v19 }
 0x195   : > { %1372 = vrot.lane.b32.xlu1 %v1361_v43, %s2975_s9 }
 0x196   : > { %1442 = vrot.lane.b32.xlu0 %v1434_v46, %s2974_s29 }
 0x197   : > { %v547_v51 = vpop.permute.xlu0 %546 }
 0x198   : > { %v558_v28 = vadd.f32 %v547_v51, %v518_v16  ;;  %v3593_v51 = vld [vmem:[#allocation2 + $0x52] sm:$0xff] }
 0x199   : > { %1444 = vrot.lane.b32.xlu1 %v1435_v52, %s2974_s29  ;;  %v1488_v52 = vmul.f32 %v1485_v56, %v3572_v50 }
 0x19a   : > { %1446 = vrot.lane.b32.xlu0 %v1436_v55, %s2974_s29  ;;  %v647_v55 = vmul.f32 %v645_v22, %v3399_v25 }
 0x19b   : > { %v549_v4 = vpop.permute.xlu1 %548  ;;  %v551_v6 = vpop.permute.xlu0 %550 }
 0x19c   : > { %v559_v29 = vadd.f32 %v549_v4, %v519_v17  ;;  %v1561_v4 = vstv %s2458_s2  ;;  %s2444_s2 = sld [smem:[#allocation3 + $0x400]] }
 0x19d   : > { %1494 = vrot.lane.b32.xlu1 %v1486_v12, %s2975_s9  ;;  %v560_v12 = vadd.f32 %v551_v6, %v520_v23 }
 0x19e   : > { %1496 = vrot.lane.b32.xlu0 %v1487_v24, %s2975_s9 }
 0x19f   : > { %v599_v30 = vpop.permute.xlu1 %598  ;;  %v601_v34 = vpop.permute.xlu0 %600 }
 0x1a0   : > { %v610_v43 = vadd.f32 %v599_v30, %v558_v28  ;;  %v611_v46 = vadd.f32 %v601_v34, %v559_v29  ;;  %v1489_v28 = vmul.f32 %v1485_v56, %v3583_v32  ;;  %v521_v29 = vmul.f32 %v517_v58, %v3384_v14 }
 0x1a1   : > { %1448 = vrot.lane.b32.xlu1 %v1437_v35, %s2974_s29  ;;  %v1562_v34 = vmul.f32 %v1561_v4, %v3593_v51  ;;  %v648_v35 = vmul.f32 %v645_v22, %v3401_v26  ;;  %v1563_v56 = vmul.f32 %v1561_v4, %v3599_v5  ;;  %v1564_v58 = vmul.f32 %v1561_v4, %v3455_v60 }
 0x1a2   : > { %1498 = vrot.lane.b32.xlu0 %v1488_v52, %s2975_s9  ;;  %v650_v16 = vadd.f32 %v646_v38, %v610_v43  ;;  %v651_v17 = vadd.f32 %v647_v55, %v611_v46  ;;  %v1613_v52 = vstv %s2460_s3  ;;  %v649_v55 = vmul.f32 %v645_v22, %v3411_v33  ;;  %s2435_s3 = sld [smem:[#allocation3 + $0x881]] }
 0x1a3   : > { %v553_v42 = vpop.permute.xlu1 %552  ;;  %v603_v24 = vpop.permute.xlu0 %602 }
 0x1a4   : > { %v612_v30 = vadd.f32 %v603_v24, %v560_v12  ;;  %v561_v6 = vadd.f32 %v553_v42, %v521_v29  ;;  %v1615_v29 = vmul.f32 %v1613_v52, %v3599_v5 }
 0x1a5   : > { %1500 = vrot.lane.b32.xlu1 %v1489_v28, %s2975_s9  ;;  %v1614_v28 = vmul.f32 %v1613_v52, %v3593_v51 }
 0x1a6   : > { %1570 = vrot.lane.b32.xlu0 %v1562_v34, %s2974_s29  ;;  %v652_v23 = vadd.f32 %v648_v35, %v612_v30  ;;  %v773_v30 = vstv %s2420_s12  ;;  %s2437_s12 = sld [smem:[#allocation3 + $0x882]] }
 0x1a7   : > { %v605_v38 = vpop.permute.xlu1 %604  ;;  %v675_v43 = vpop.permute.xlu0 %674  ;;  %v775_v7 = vmul.f32 %v773_v30, %v3423_v40 }
 0x1a8   : > { %v613_v46 = vadd.f32 %v605_v38, %v561_v6  ;;  %v686_v34 = vadd.f32 %v675_v43, %v650_v16  ;;  %v1565_v38 = vmul.f32 %v1561_v4, %v3457_v63  ;;  %v1617_v4 = vmul.f32 %v1613_v52, %v3457_v63 }
 0x1a9   : > { %1572 = vrot.lane.b32.xlu1 %v1563_v56, %s2974_s29  ;;  %v774_v56 = vmul.f32 %v773_v30, %v3417_v36 }
 0x1aa   : > { %1574 = vrot.lane.b32.xlu0 %v1564_v58, %s2974_s29  ;;  %v653_v12 = vadd.f32 %v649_v55, %v613_v46  ;;  %v1616_v55 = vmul.f32 %v1613_v52, %v3455_v60  ;;  %v615_v52 = vstv %s2413_s0  ;;  %s2441_s0 = sld [smem:[#allocation3 + $0x901]] }
 0x1ab   : > { %v677_v42 = vpop.permute.xlu1 %676  ;;  %v679_v24 = vpop.permute.xlu0 %678 }
 0x1ac   : > { %v687_v35 = vadd.f32 %v677_v42, %v651_v17  ;;  %v688_v16 = vadd.f32 %v679_v24, %v652_v23 }
 0x1ad   : > { %1622 = vrot.lane.b32.xlu1 %v1614_v28, %s2975_s9  ;;  %v563_v28 = vstv %s2411_s10  ;;  %s2450_s10 = sld [smem:[#allocation3 + $0x480]] }
 0x1ae   : > { %1624 = vrot.lane.b32.xlu0 %v1615_v29, %s2975_s9 }
 0x1af   : > { %v727_v22 = vpop.permute.xlu1 %726  ;;  %v729_v6 = vpop.permute.xlu0 %728 }
 0x1b0   : > { %v738_v46 = vadd.f32 %v727_v22, %v686_v34  ;;  %v739_v58 = vadd.f32 %v729_v6, %v687_v35  ;;  %v564_v34 = vmul.f32 %v563_v28, %v3365_v57  ;;  %v776_v35 = vmul.f32 %v773_v30, %v3425_v41 }
 0x1b1   : > { %1576 = vrot.lane.b32.xlu1 %v1565_v38, %s2974_s29 }
 0x1b2   : > { %1626 = vrot.lane.b32.xlu0 %v1616_v55, %s2975_s9  ;;  %v778_v17 = vadd.f32 %v774_v56, %v738_v46  ;;  %v779_v43 = vadd.f32 %v775_v7, %v739_v58  ;;  %v565_v7 = vmul.f32 %v563_v28, %v3371_v61  ;;  %v566_v56 = vmul.f32 %v563_v28, %v3373_v62 }
 0x1b3   : > { %v681_v42 = vpop.permute.xlu1 %680  ;;  %v731_v29 = vpop.permute.xlu0 %730  ;;  %v777_v46 = vmul.f32 %v773_v30, %v3435_v47 }
 0x1b4   : > { %v740_v9 = vadd.f32 %v731_v29, %v688_v16  ;;  %v689_v22 = vadd.f32 %v681_v42, %v653_v12  ;;  %v617_v16 = vmul.f32 %v615_v52, %v3371_v61  ;;  %v901_v42 = vstv %s2426_s21  ;;  %s2443_s21 = sld [smem:[#allocation3 + $0x902]] }
 0x1b5   : > { %1628 = vrot.lane.b32.xlu1 %v1617_v4, %s2975_s9  ;;  %v691_v61 = vstv %s2417_s14  ;;  %s2456_s14 = sld [smem:[#allocation3 + $0x500]] }
 0x1b6   : > { %572 = vrot.lane.b32.xlu0 %v564_v34, %s2974_s29  ;;  %v780_v23 = vadd.f32 %v776_v35, %v740_v9  ;;  %v616_v9 = vmul.f32 %v615_v52, %v3365_v57  ;;  %v567_v35 = vmul.f32 %v563_v28, %v3384_v14  ;;  %v903_v57 = vmul.f32 %v901_v42, %v3446_v53 }
 0x1b7   : > { %v733_v24 = vpop.permute.xlu1 %732  ;;  %v803_v6 = vpop.permute.xlu0 %802  ;;  %v619_v28 = vmul.f32 %v615_v52, %v3384_v14  ;;  %v743_v14 = vstv %s2419_s30  ;;  %s2447_s30 = sld [smem:[#allocation3 + $0xa01]] }
 0x1b8   : > { %v741_v38 = vadd.f32 %v733_v24, %v689_v22  ;;  %v814_v29 = vadd.f32 %v803_v6, %v778_v17  ;;  %v618_v22 = vmul.f32 %v615_v52, %v3373_v62  ;;  %v905_v52 = vmul.f32 %v901_v42, %v3461_v0 }
 0x1b9   : > { %574 = vrot.lane.b32.xlu1 %v565_v7, %s2974_s29 }
 0x1ba   : > { %576 = vrot.lane.b32.xlu0 %v566_v56, %s2974_s29  ;;  %v781_v58 = vadd.f32 %v777_v46, %v741_v38  ;;  %v902_v38 = vmul.f32 %v901_v42, %v3439_v48 }
 0x1bb   : > { %v805_v12 = vpop.permute.xlu1 %804  ;;  %v807_v55 = vpop.permute.xlu0 %806 }
 0x1bc   : > { %v815_v4 = vadd.f32 %v805_v12, %v779_v43  ;;  %v816_v17 = vadd.f32 %v807_v55, %v780_v23  ;;  %v692_v12 = vmul.f32 %v691_v61, %v3392_v19 }
 0x1bd   : > { %624 = vrot.lane.b32.xlu1 %v616_v9, %s2975_s9  ;;  %v904_v9 = vmul.f32 %v901_v42, %v3448_v54 }
 0x1be   : > { %626 = vrot.lane.b32.xlu0 %v617_v16, %s2975_s9 }
 0x1bf   : > { %v855_v30 = vpop.permute.xlu1 %854  ;;  %v857_v34 = vpop.permute.xlu0 %856 }
 0x1c0   : > { %v866_v24 = vadd.f32 %v855_v30, %v814_v29  ;;  %v867_v7 = vadd.f32 %v857_v34, %v815_v4  ;;  %v693_v4 = vmul.f32 %v691_v61, %v3399_v25  ;;  %v694_v34 = vmul.f32 %v691_v61, %v3401_v26 }
 0x1c1   : > { %578 = vrot.lane.b32.xlu1 %v567_v35, %s2974_s29 }
 0x1c2   : > { %628 = vrot.lane.b32.xlu0 %v618_v22, %s2975_s9  ;;  %v906_v43 = vadd.f32 %v902_v38, %v866_v24  ;;  %v907_v6 = vadd.f32 %v903_v57, %v867_v7  ;;  %v744_v24 = vmul.f32 %v743_v14, %v3392_v19  ;;  %v745_v7 = vmul.f32 %v743_v14, %v3399_v25 }
 0x1c3   : > { %v809_v56 = vpop.permute.xlu1 %808  ;;  %v859_v46 = vpop.permute.xlu0 %858  ;;  %v1029_v38 = vstv %s2432_s15  ;;  %v819_v25 = vstv %s2423_s18  ;;  %s2449_s15 = sld [smem:[#allocation3 + $0xa02]] }
 0x1c4   : > { %v868_v62 = vadd.f32 %v859_v46, %v816_v17  ;;  %v817_v16 = vadd.f32 %v809_v56, %v781_v58  ;;  %v695_v46 = vmul.f32 %v691_v61, %v3411_v33  ;;  %v1031_v19 = vmul.f32 %v1029_v38, %v3485_v20  ;;  %s2453_s18 = sld [smem:[#allocation3 + $0xa81]] }
 0x1c5   : > { %630 = vrot.lane.b32.xlu1 %v619_v28, %s2975_s9  ;;  %v746_v28 = vmul.f32 %v743_v14, %v3401_v26  ;;  %v747_v61 = vmul.f32 %v743_v14, %v3411_v33  ;;  %v871_v33 = vstv %s2425_s13  ;;  %v1033_v14 = vmul.f32 %v1029_v38, %v3497_v31  ;;  %s2409_s13 = sld [smem:[#allocation3 + $0x600]] }
 0x1c6   : > { %700 = vrot.lane.b32.xlu0 %v692_v12, %s2974_s29  ;;  %v908_v23 = vadd.f32 %v904_v9, %v868_v62  ;;  %v1030_v9 = vmul.f32 %v1029_v38, %v3479_v15 }
 0x1c7   : > { %v861_v55 = vpop.permute.xlu1 %860  ;;  %v931_v29 = vpop.permute.xlu0 %930 }
 0x1c8   : > { %v869_v30 = vadd.f32 %v861_v55, %v817_v16  ;;  %v942_v57 = vadd.f32 %v931_v29, %v906_v43 }
 0x1c9   : > { %702 = vrot.lane.b32.xlu1 %v693_v4, %s2974_s29  ;;  %v820_v4 = vmul.f32 %v819_v25, %v3417_v36 }
 0x1ca   : > { %704 = vrot.lane.b32.xlu0 %v694_v34, %s2974_s29  ;;  %v909_v35 = vadd.f32 %v905_v52, %v869_v30  ;;  %v1032_v30 = vmul.f32 %v1029_v38, %v3487_v21 }
 0x1cb   : > { %v933_v58 = vpop.permute.xlu1 %932  ;;  %v935_v22 = vpop.permute.xlu0 %934 }
 0x1cc   : > { %v943_v17 = vadd.f32 %v933_v58, %v907_v6  ;;  %v944_v43 = vadd.f32 %v935_v22, %v908_v23  ;;  %v821_v22 = vmul.f32 %v819_v25, %v3423_v40 }
 0x1cd   : > { %752 = vrot.lane.b32.xlu1 %v744_v24, %s2975_s9 }
 0x1ce   : > { %754 = vrot.lane.b32.xlu0 %v745_v7, %s2975_s9  ;;  %v822_v7 = vmul.f32 %v819_v25, %v3425_v41 }
 0x1cf   : > { %v983_v42 = vpop.permute.xlu1 %982  ;;  %v985_v56 = vpop.permute.xlu0 %984 }
 0x1d0   : > { %v994_v62 = vadd.f32 %v983_v42, %v942_v57  ;;  %v995_v12 = vadd.f32 %v985_v56, %v943_v17  ;;  %v872_v42 = vmul.f32 %v871_v33, %v3417_v36  ;;  %v873_v56 = vmul.f32 %v871_v33, %v3423_v40 }
 0x1d1   : > { %706 = vrot.lane.b32.xlu1 %v695_v46, %s2974_s29  ;;  %v1157_v46 = vstv %s2438_s23  ;;  %v947_v40 = vstv %s2429_s17  ;;  %s3757_s23 = sld [smem:[#allocation3 + $0xa82]] }
 0x1d2   : > { %756 = vrot.lane.b32.xlu0 %v746_v28, %s2975_s9  ;;  %v1034_v6 = vadd.f32 %v1030_v9, %v994_v62  ;;  %v1035_v16 = vadd.f32 %v1031_v19, %v995_v12  ;;  %v823_v9 = vmul.f32 %v819_v25, %v3435_v47  ;;  %v874_v19 = vmul.f32 %v871_v33, %v3425_v41  ;;  %s3770_s17 = sld [smem:[#allocation3 + $0x680]] }
 0x1d3   : > { %v937_v55 = vpop.permute.xlu1 %936  ;;  %v987_v29 = vpop.permute.xlu0 %986  ;;  %v1159_v36 = vmul.f32 %v1157_v46, %v3509_v44  ;;  %v875_v25 = vmul.f32 %v871_v33, %v3435_v47  ;;  %v999_v47 = vstv %s2431_s11  ;;  %v1161_v33 = vmul.f32 %v1157_v46, %v3521_v59  ;;  %s3780_s11 = sld [smem:[#allocation3 + $0xb01]] }
 0x1d4   : > { %v996_v26 = vadd.f32 %v987_v29, %v944_v43  ;;  %v945_v34 = vadd.f32 %v937_v55, %v909_v35  ;;  %v1158_v29 = vmul.f32 %v1157_v46, %v3503_v37 }
 0x1d5   : > { %758 = vrot.lane.b32.xlu1 %v747_v61, %s2975_s9 }
 0x1d6   : > { %828 = vrot.lane.b32.xlu0 %v820_v4, %s2974_s29  ;;  %v1036_v23 = vadd.f32 %v1032_v30, %v996_v26  ;;  %v948_v30 = vmul.f32 %v947_v40, %v3439_v48 }
 0x1d7   : > { %v989_v52 = vpop.permute.xlu1 %988  ;;  %v1059_v58 = vpop.permute.xlu0 %1058 }
 0x1d8   : > { %v997_v24 = vadd.f32 %v989_v52, %v945_v34  ;;  %v1070_v28 = vadd.f32 %v1059_v58, %v1034_v6  ;;  %v1160_v34 = vmul.f32 %v1157_v46, %v3513_v45 }
 0x1d9   : > { %830 = vrot.lane.b32.xlu1 %v821_v22, %s2974_s29 }
 0x1da   : > { %832 = vrot.lane.b32.xlu0 %v822_v7, %s2974_s29  ;;  %v1037_v57 = vadd.f32 %v1033_v14, %v997_v24  ;;  %v949_v24 = vmul.f32 %v947_v40, %v3446_v53  ;;  %v950_v14 = vmul.f32 %v947_v40, %v3448_v54 }
 0x1db   : > { %v1061_v35 = vpop.permute.xlu1 %1060  ;;  %v1063_v17 = vpop.permute.xlu0 %1062 }
 0x1dc   : > { %v1071_v62 = vadd.f32 %v1061_v35, %v1035_v16  ;;  %v1072_v6 = vadd.f32 %v1063_v17, %v1036_v23  ;;  %v1000_v17 = vmul.f32 %v999_v47, %v3439_v48 }
 0x1dd   : > { %880 = vrot.lane.b32.xlu1 %v872_v42, %s2975_s9 }
 0x1de   : > { %882 = vrot.lane.b32.xlu0 %v873_v56, %s2975_s9  ;;  %v1001_v56 = vmul.f32 %v999_v47, %v3446_v53  ;;  %v1075_v53 = vstv %s2435_s3  ;;  %s3807_s3 = sld [smem:[#allocation3 + $0x800]] }
 0x1df   : > { %v1111_v38 = vpop.permute.xlu1 %1110  ;;  %v1113_v12 = vpop.permute.xlu0 %1112 }
 0x1e0   : > { %v1122_v43 = vadd.f32 %v1111_v38, %v1070_v28  ;;  %v1123_v55 = vadd.f32 %v1113_v12, %v1071_v62  ;;  %v1285_v28 = vstv %s2444_s2  ;;  %v951_v12 = vmul.f32 %v947_v40, %v3461_v0  ;;  %s3799_s2 = sld [smem:[#allocation3 + $0x700]] }
 0x1e1   : > { %834 = vrot.lane.b32.xlu1 %v823_v9, %s2974_s29  ;;  %v1003_v40 = vmul.f32 %v999_v47, %v3461_v0  ;;  %v1078_v0 = vmul.f32 %v1075_v53, %v3487_v21 }
 0x1e2   : > { %884 = vrot.lane.b32.xlu0 %v874_v19, %s2975_s9  ;;  %v1162_v16 = vadd.f32 %v1158_v29, %v1122_v43  ;;  %v1163_v61 = vadd.f32 %v1159_v36, %v1123_v55  ;;  %v1002_v43 = vmul.f32 %v999_v47, %v3448_v54  ;;  %v1286_v55 = vmul.f32 %v1285_v28, %v3532_v13 }
 0x1e3   : > { %v1065_v26 = vpop.permute.xlu1 %1064  ;;  %v1115_v4 = vpop.permute.xlu0 %1114  ;;  %v1287_v29 = vmul.f32 %v1285_v28, %v3543_v18  ;;  %v1076_v54 = vmul.f32 %v1075_v53, %v3479_v15 }
 0x1e4   : > { %v1124_v41 = vadd.f32 %v1115_v4, %v1072_v6  ;;  %v1073_v52 = vadd.f32 %v1065_v26, %v1037_v57 }
 0x1e5   : > { %886 = vrot.lane.b32.xlu1 %v875_v25, %s2975_s9  ;;  %v1288_v25 = vmul.f32 %v1285_v28, %v3546_v27 }
 0x1e6   : > { %956 = vrot.lane.b32.xlu0 %v948_v30, %s2974_s29  ;;  %v1164_v23 = vadd.f32 %v1160_v34, %v1124_v41  ;;  %v1077_v34 = vmul.f32 %v1075_v53, %v3485_v20 }
 0x1e7   : > { %v1117_v58 = vpop.permute.xlu1 %1116  ;;  %v1187_v22 = vpop.permute.xlu0 %1186 }
 0x1e8   : > { %v1125_v7 = vadd.f32 %v1117_v58, %v1073_v52  ;;  %v1198_v62 = vadd.f32 %v1187_v22, %v1162_v16  ;;  %v1127_v22 = vstv %s2437_s12  ;;  %s3813_s12 = sld [smem:[#allocation3 + $0x880]] }
 0x1e9   : > { %958 = vrot.lane.b32.xlu1 %v949_v24, %s2974_s29  ;;  %v1289_v24 = vmul.f32 %v1285_v28, %v3555_v8  ;;  %v1128_v47 = vmul.f32 %v1127_v22, %v3479_v15  ;;  %v1079_v28 = vmul.f32 %v1075_v53, %v3497_v31 }
 0x1ea   : > { %960 = vrot.lane.b32.xlu0 %v950_v14, %s2974_s29  ;;  %v1165_v35 = vadd.f32 %v1161_v33, %v1125_v7 }
 0x1eb   : > { %v1189_v57 = vpop.permute.xlu1 %1188 }
 0x1ec   : > { %v1191_v42 = vpop.permute.xlu0 %1190  ;;  %v1199_v38 = vadd.f32 %v1189_v57, %v1163_v61  ;;  %v1413_v57 = vstv %s2450_s10  ;;  %s2445_s10 = sld [smem:[#allocation3 + $0xa00]] }
 0x1ed   : > { %1008 = vrot.lane.b32.xlu1 %v1000_v17, %s2975_s9  ;;  %v1200_v6 = vadd.f32 %v1191_v42, %v1164_v23 }
 0x1ee   : > { %1010 = vrot.lane.b32.xlu0 %v1001_v56, %s2975_s9 }
 0x1ef   : > { %v1239_v46 = vpop.permute.xlu1 %1238 }
 0x1f0   : > { %v1250_v9 = vadd.f32 %v1239_v46, %v1198_v62  ;;  %v1241_v19 = vpop.permute.xlu0 %1240  ;;  %v1130_v46 = vmul.f32 %v1127_v22, %v3487_v21 }
 0x1f1   : > { %v1251_v48 = vadd.f32 %v1241_v19, %v1199_v38  ;;  %962 = vrot.lane.b32.xlu1 %v951_v12, %s2974_s29  ;;  %v1414_v12 = vmul.f32 %v1413_v57, %v3564_v39 }
 0x1f2   : > { %1012 = vrot.lane.b32.xlu0 %v1002_v43, %s2975_s9  ;;  %v1290_v36 = vadd.f32 %v1286_v55, %v1250_v9  ;;  %v1415_v9 = vmul.f32 %v1413_v57, %v3569_v49 }
 0x1f3   : > { %v1193_v16 = vpop.permute.xlu1 %1192  ;;  %v1291_v61 = vadd.f32 %v1287_v29, %v1251_v48  ;;  %v1131_v48 = vmul.f32 %v1127_v22, %v3497_v31 }
 0x1f4   : > { %v1243_v26 = vpop.permute.xlu0 %1242  ;;  %v1201_v41 = vadd.f32 %v1193_v16, %v1165_v35  ;;  %v1129_v35 = vmul.f32 %v1127_v22, %v3485_v20  ;;  %v1203_v20 = vstv %s2441_s0  ;;  %s2457_s0 = sld [smem:[#allocation3 + $0xb00]] }
 0x1f5   : > { %v1252_v4 = vadd.f32 %v1243_v26, %v1200_v6  ;;  %1014 = vrot.lane.b32.xlu1 %v1003_v40, %s2975_s9  ;;  %v1204_v21 = vmul.f32 %v1203_v20, %v3503_v37  ;;  %v1416_v6 = vmul.f32 %v1413_v57, %v3572_v50  ;;  %v1206_v31 = vmul.f32 %v1203_v20, %v3513_v45 }
 0x1f6   : > { %1084 = vrot.lane.b32.xlu0 %v1076_v54, %s2974_s29 }
 0x1f7   : > { %v1245_v30 = vpop.permute.xlu1 %1244  ;;  %v1292_v52 = vadd.f32 %v1288_v25, %v1252_v4  ;;  %v1255_v25 = vstv %s2443_s21  ;;  %s3956_s21 = sld [smem:[#allocation9 + %s3039_s28]] }
 0x1f8   : > { %v1253_v23 = vadd.f32 %v1245_v30, %v1201_v41  ;;  %v1315_v58 = vpop.permute.xlu0 %1314  ;;  %v1417_v41 = vmul.f32 %v1413_v57, %v3583_v32 }
 0x1f9   : > { %1086 = vrot.lane.b32.xlu1 %v1077_v34, %s2974_s29  ;;  %v1326_v17 = vadd.f32 %v1315_v58, %v1290_v36  ;;  %v1257_v58 = vmul.f32 %v1255_v25, %v3509_v44 }
 0x1fa   : > { %1088 = vrot.lane.b32.xlu0 %v1078_v0, %s2974_s29  ;;  %v1293_v7 = vadd.f32 %v1289_v24, %v1253_v23  ;;  %v1541_v0 = vstv %s2456_s14  ;;  %s3959_s14 = sld [smem:[#allocation10 + %s3039_s28]] }
 0x1fb   : > { %v1317_v14 = vpop.permute.xlu1 %1316  ;;  %v1542_v57 = vmul.f32 %v1541_v0, %v3593_v51 }
 0x1fc   : > { %v1319_v33 = vpop.permute.xlu0 %1318  ;;  %v1327_v42 = vadd.f32 %v1317_v14, %v1291_v61  ;;  %v1205_v61 = vmul.f32 %v1203_v20, %v3509_v44  ;;  %v1207_v14 = vmul.f32 %v1203_v20, %v3521_v59  ;;  %v1331_v44 = vstv %s2447_s30 }
 0x1fd   : > { %1136 = vrot.lane.b32.xlu1 %v1128_v47, %s2975_s9  ;;  %v1328_v43 = vadd.f32 %v1319_v33, %v1292_v52  ;;  %v1256_v52 = vmul.f32 %v1255_v25, %v3503_v37  ;;  %p2144_p5 = scmp.ge.f32.partialorder %s3956_s21, 0.0  ;;  %p2145_p1 = scmp.lt.f32.partialorder %s3956_s21, 32.0 }
 0x1fe   : > { %1138 = vrot.lane.b32.xlu0 %v1129_v35, %s2975_s9  ;;  %v1258_v35 = vmul.f32 %v1255_v25, %v3513_v45  ;;  %v1332_v45 = vmul.f32 %v1331_v44, %v3532_v13  ;;  %s2482_s30 = sadd.f32 -7.0, %s3956_s21 }
 0x1ff   : > { %v1367_v56 = vpop.permute.xlu1 %1366  ;;  %p2146_p3 = pnand %p2145_p1, %p2144_p5 }
 0x200   : > { %v1378_v62 = vadd.f32 %v1367_v56, %v1326_v17  ;;  %v1369_v38 = vpop.permute.xlu0 %1368  ;;  %v1543_v17 = vmul.f32 %v1541_v0, %v3599_v5  ;;  %p2148_p8 = scmp.ge.f32.partialorder %s3959_s14, 0.0  ;;  %p2151_p13 = scmp.lt.f32.partialorder %s3959_s14, 32.0 }
 0x201   : > { %v1379_v15 = vadd.f32 %v1369_v38, %v1327_v42  ;;  %1090 = vrot.lane.b32.xlu1 %v1079_v28, %s2974_s29  ;;  %p2147_p2 = pneg %p2146_p3 }
 0x202   : > { %1140 = vrot.lane.b32.xlu0 %v1130_v46, %s2975_s9  ;;  %v1418_v19 = vadd.f32 %v1414_v12, %v1378_v62  ;;  %v1259_v62 = vmul.f32 %v1255_v25, %v3521_v59  ;;  %v1334_v59 = vmul.f32 %v1331_v44, %v3546_v27 }
 0x203   : > { %v1321_v55 = vpop.permute.xlu1 %1320  ;;  %v1419_v53 = vadd.f32 %v1415_v9, %v1379_v15  ;;  %v1544_v15 = vmul.f32 %v1541_v0, %v3455_v60  ;;  %p3980_p0 = pnand %p2148_p8, %p2147_p2 }
 0x204   : > { %v1371_v29 = vpop.permute.xlu0 %1370  ;;  %v1329_v16 = vadd.f32 %v1321_v55, %v1293_v7 }
 0x205   : > { %v1380_v36 = vadd.f32 %v1371_v29, %v1328_v43  ;;  %1142 = vrot.lane.b32.xlu1 %v1131_v48, %s2975_s9  ;;  %v1545_v29 = vmul.f32 %v1541_v0, %v3457_v63  ;;  %v527_v0 = vstv %s2409_s13  ;;  %p2150_p4 = pneg %p3980_p0 }
 0x206   : > { %1212 = vrot.lane.b32.xlu0 %v1204_v21, %s2974_s29 }
 0x207   : > { %v1373_v40 = vpop.permute.xlu1 %1372  ;;  %v1420_v26 = vadd.f32 %v1416_v6, %v1380_v36  ;;  %p3994_p6 = pnand %p2151_p13, %p2150_p4 }
 0x208   : > { %v1381_v54 = vadd.f32 %v1373_v40, %v1329_v16  ;;  %v1443_v4 = vpop.permute.xlu0 %1442 }
 0x209   : > { %1214 = vrot.lane.b32.xlu1 %v1205_v61, %s2974_s29  ;;  %v1454_v22 = vadd.f32 %v1443_v4, %v1418_v19  ;;  %v1333_v19 = vmul.f32 %v1331_v44, %v3543_v18 }
 0x20a   : > { %1216 = vrot.lane.b32.xlu0 %v1206_v31, %s2974_s29  ;;  %v1421_v30 = vadd.f32 %v1417_v41, %v1381_v54 }
 0x20b   : > { %v1445_v34 = vpop.permute.xlu1 %1444 }
 0x20c   : > { %v1447_v23 = vpop.permute.xlu0 %1446  ;;  %v1455_v24 = vadd.f32 %v1445_v34, %v1419_v53  ;;  %v1383_v53 = vstv %s2449_s15  ;;  %s2120_s15 = sadd.f32 8.0, %s3956_s21 }
 0x20d   : > { %1264 = vrot.lane.b32.xlu1 %v1256_v52, %s2975_s9  ;;  %v1456_v56 = vadd.f32 %v1447_v23, %v1420_v26  ;;  %v1384_v36 = vmul.f32 %v1383_v53, %v3532_v13  ;;  %v1385_v16 = vmul.f32 %v1383_v53, %v3543_v18  ;;  %v1335_v26 = vmul.f32 %v1331_v44, %v3555_v8 }
 0x20e   : > { %1266 = vrot.lane.b32.xlu0 %v1257_v58, %s2975_s9  ;;  %v1386_v31 = vmul.f32 %v1383_v53, %v3546_v27  ;;  %v1459_v18 = vstv %s2453_s18  ;;  %v1387_v52 = vmul.f32 %v1383_v53, %v3555_v8  ;;  %s2483_s18 = sadd.f32 -7.0, %s3959_s14 }
 0x20f   : > { %v1495_v7 = vpop.permute.xlu1 %1494  ;;  %v1460_v27 = vmul.f32 %v1459_v18, %v3564_v39 }
 0x210   : > { %v1506_v47 = vadd.f32 %v1495_v7, %v1454_v22  ;;  %v1497_v33 = vpop.permute.xlu0 %1496 }
 0x211   : > { %v1507_v37 = vadd.f32 %v1497_v33, %v1455_v24  ;;  %1218 = vrot.lane.b32.xlu1 %v1207_v14, %s2974_s29 }
 0x212   : > { %1268 = vrot.lane.b32.xlu0 %v1258_v35, %s2975_s9  ;;  %v1546_v42 = vadd.f32 %v1542_v57, %v1506_v47  ;;  %v2693_v35 = vld [vmem:[#allocation2] sm:$0xff] }
 0x213   : > { %v1449_v28 = vpop.permute.xlu1 %1448  ;;  %v1547_v38 = vadd.f32 %v1543_v17, %v1507_v37  ;;  %v528_v57 = vmul.f32 %v2693_v35, %v527_v0  ;;  %v1461_v37 = vmul.f32 %v1459_v18, %v3569_v49 }
 0x214   : > { %v1499_v46 = vpop.permute.xlu0 %1498  ;;  %v1457_v20 = vadd.f32 %v1449_v28, %v1421_v30 }
 0x215   : > { %v1508_v12 = vadd.f32 %v1499_v46, %v1456_v56  ;;  %1270 = vrot.lane.b32.xlu1 %v1259_v62, %s2975_s9  ;;  %v1511_v56 = vstv %s3757_s23  ;;  %v2694_v46 = vld [vmem:[#allocation2 + $0x8] sm:$0xff]  ;;  %s2137_s23 = sadd.f32 8.0, %s3959_s14 }
 0x216   : > { %1340 = vrot.lane.b32.xlu0 %v1332_v45, %s2974_s29  ;;  %v529_v45 = vmul.f32 %v2694_v46, %v527_v0 }
 0x217   : > { %v1501_v9 = vpop.permute.xlu1 %1500  ;;  %v1548_v43 = vadd.f32 %v1544_v15, %v1508_v12 }
 0x218   : > { %v1509_v55 = vadd.f32 %v1501_v9, %v1457_v20  ;;  %v1571_v48 = vpop.permute.xlu0 %1570  ;;  %v2695_v20 = vld [vmem:[#allocation2 + $0x10] sm:$0xff] }
 0x219   : > { %1342 = vrot.lane.b32.xlu1 %v1333_v19, %s2974_s29  ;;  %v1582_v40 = vadd.f32 %v1571_v48, %v1546_v42  ;;  %v1462_v42 = vmul.f32 %v1459_v18, %v3572_v50  ;;  %v530_v9 = vmul.f32 %v2695_v20, %v527_v0  ;;  %v1512_v19 = vmul.f32 %v1511_v56, %v3564_v39 }
 0x21a   : > { %1344 = vrot.lane.b32.xlu0 %v1334_v59, %s2974_s29  ;;  %v1549_v60 = vadd.f32 %v1545_v29, %v1509_v55  ;;  %v1513_v59 = vmul.f32 %v1511_v56, %v3569_v49  ;;  %v655_v29 = vstv %s3770_s17  ;;  %v1640_v20 = vmul.f32 %v3463_v1, %v3593_v51  ;;  %s2484_s17 = scalar_select %p3994_p6, 0, 1 }
 0x21b   : > { %v1573_v21 = vpop.permute.xlu1 %1572 }
 0x21c   : > { %v1575_v6 = vpop.permute.xlu0 %1574  ;;  %v1583_v61 = vadd.f32 %v1573_v21, %v1547_v38 }
 0x21d   : > { %1392 = vrot.lane.b32.xlu1 %v1384_v36, %s2975_s9  ;;  %v1584_v41 = vadd.f32 %v1575_v6, %v1548_v43  ;;  %v1463_v36 = vmul.f32 %v1459_v18, %v3583_v32 }
 0x21e   : > { %1394 = vrot.lane.b32.xlu0 %v1385_v16, %s2975_s9  ;;  %v1514_v16 = vmul.f32 %v1511_v56, %v3572_v50 }
 0x21f   : > { %v1623_v63 = vpop.permute.xlu1 %1622 }
 0x220   : > { %v3754_v54 = vadd.f32 %v1623_v63, %v1582_v40  ;;  %v1625_v4 = vpop.permute.xlu0 %1624  ;;  %v2696_v40 = vld [vmem:[#allocation2 + $0x1] sm:$0xff]  ;;  %v3793_v63 = vstv %s3780_s11 }
 0x221   : > { %v3759_v13 = vadd.f32 %v1625_v4, %v1583_v61  ;;  %1346 = vrot.lane.b32.xlu1 %v1335_v26, %s2974_s29  ;;  %v656_v61 = vmul.f32 %v2696_v40, %v655_v29  ;;  %v2697_v26 = vld [vmem:[#allocation2 + $0x9] sm:$0xff]  ;;  %v1589_v35 = vmul.f32 %v3793_v63, %v3599_v5 }
 0x222   : > { %v1918_v25 = vand.u32 2147483647, %v3754_v54  ;;  %1396 = vrot.lane.b32.xlu0 %v1386_v31, %s2975_s9  ;;  %v657_v4 = vmul.f32 %v2697_v26, %v655_v29  ;;  %v2698_v31 = vld [vmem:[#allocation2 + $0x18] sm:$0xff]  ;;  %vm1962_vm8 = vcmp.ge.f32.partialorder %v3754_v54, 0.0 }
 0x223   : > { %v1919_v30 = vand.u32 2147483647, %v3759_v13  ;;  %v1577_v34 = vpop.permute.xlu1 %1576  ;;  %vm1963_vm9 = vcmp.ge.f32.partialorder %v3759_v13, 0.0  ;;  %v2705_v26 = vld [vmem:[#allocation2 + $0x1a] sm:$0xff] }
 0x224   : > { %v1922_v23 = vsub.f32 0.0, %v1918_v25  ;;  %v1627_v58 = vpop.permute.xlu0 %1626  ;;  %v1585_v14 = vadd.f32 %v1577_v34, %v1549_v60  ;;  %v531_v25 = vmul.f32 %v2698_v31, %v527_v0 }
 0x225   : > { %v1923_v22 = vsub.f32 0.0, %v1919_v30  ;;  %v3767_v24 = vadd.f32 %v1627_v58, %v1584_v41  ;;  %1398 = vrot.lane.b32.xlu1 %v1387_v52, %s2975_s9  ;;  %v1515_v30 = vmul.f32 %v1511_v56, %v3583_v32 }
 0x226   : > { %v1926_v7 = vmul.f32 1.442695, %v1922_v23  ;;  %1468 = vrot.lane.b32.xlu0 %v1460_v27, %s2974_s29  ;;  %v1588_v23 = vmul.f32 %v3793_v63, %v3593_v51  ;;  %v2703_v51 = vld [vmem:[#allocation2 + $0xa] sm:$0xff] }
 0x227   : > { %v1928_v47 = vmul.f32 1.442695, %v1923_v22  ;;  %v1920_v8 = vand.u32 2147483647, %v3767_v24  ;;  %v1629_v33 = vpop.permute.xlu1 %1628  ;;  %v2699_v22 = vld [vmem:[#allocation2 + $0x11] sm:$0xff]  ;;  %vm1964_vm10 = vcmp.ge.f32.partialorder %v3767_v24, 0.0 }
 0x228   : > { %2657 = vpow2.f32 %v1926_v7  ;;  %v3775_v44 = vadd.f32 %v1629_v33, %v1585_v14  ;;  %v573_v17 = vpop.permute.xlu0 %572  ;;  %v658_v0 = vmul.f32 %v2699_v22, %v655_v29  ;;  %v3845_v22 = vld [vmem:[%s3246_s20] sm:$0xff] }
 0x229   : > { %2659 = vpow2.f32 %v1928_v47  ;;  %v1924_v28 = vsub.f32 0.0, %v1920_v8  ;;  %v584_v62 = vadd.f32 %v573_v17, %v528_v57  ;;  %1470 = vrot.lane.b32.xlu1 %v1461_v37, %s2974_s29 }
 0x22a   : > { %v1921_v38 = vand.u32 2147483647, %v3775_v44  ;;  %1472 = vrot.lane.b32.xlu0 %v1462_v42, %s2974_s29  ;;  %v3815_v42 = vld [vmem:[#allocation2 + $0x62] sm:$0xff]  ;;  %vm1965_vm11 = vcmp.ge.f32.partialorder %v3775_v44, 0.0 }
 0x22b   : > { %v1930_v12 = vmul.f32 1.442695, %v1924_v28  ;;  %v575_v15 = vpop.permute.xlu1 %574  ;;  %v1590_v56 = vmul.f32 %v3815_v42, %v3793_v63  ;;  %v2701_v28 = vld [vmem:[#allocation2 + $0x19] sm:$0xff] }
 0x22c   : > { %v1925_v43 = vsub.f32 0.0, %v1921_v38  ;;  %v585_v55 = vadd.f32 %v575_v15, %v529_v45  ;;  %v577_v48 = vpop.permute.xlu0 %576 }
 0x22d   : > { %2661 = vpow2.f32 %v1930_v12  ;;  %v586_v53 = vadd.f32 %v577_v48, %v530_v9  ;;  %1520 = vrot.lane.b32.xlu1 %v1512_v19, %s2975_s9 }
 0x22e   : > { %v1932_v60 = vmul.f32 1.442695, %v1925_v43  ;;  %1522 = vrot.lane.b32.xlu0 %v1513_v59, %s2975_s9  ;;  %v783_v43 = vstv %s3799_s2 }
 0x22f   : > { %v625_v21 = vpop.permute.xlu1 %624 }
 0x230   : > { %2663 = vpow2.f32 %v1932_v60  ;;  %v636_v6 = vadd.f32 %v625_v21, %v584_v62  ;;  %v627_v39 = vpop.permute.xlu0 %626  ;;  %v659_v62 = vmul.f32 %v2701_v28, %v655_v29  ;;  %v911_v29 = vstv %s3807_s3  ;;  %v2702_v21 = vld [vmem:[#allocation2 + $0x2] sm:$0xff] }
 0x231   : > { %v637_v49 = vadd.f32 %v627_v39, %v585_v55  ;;  %1474 = vrot.lane.b32.xlu1 %v1463_v36, %s2974_s29  ;;  %v784_v36 = vmul.f32 %v2702_v21, %v783_v43  ;;  %v3833_v39 = vstv %s3813_s12 }
 0x232   : > { %1524 = vrot.lane.b32.xlu0 %v1514_v16, %s2975_s9  ;;  %v660_v41 = vadd.f32 %v656_v61, %v636_v6  ;;  %v785_v6 = vmul.f32 %v2703_v51, %v783_v43  ;;  %v2704_v61 = vld [vmem:[#allocation2 + $0x12] sm:$0xff] }
 0x233   : > { %v579_v18 = vpop.permute.xlu1 %578  ;;  %v661_v34 = vadd.f32 %v657_v4, %v637_v49  ;;  %v786_v49 = vmul.f32 %v2704_v61, %v783_v43  ;;  %v3835_v4 = vmul.f32 %v2705_v26, %v783_v43 }
 0x234   : > { %v587_v52 = vadd.f32 %v579_v18, %v531_v25  ;;  %v629_v50 = vpop.permute.xlu0 %628 }
 0x235   : > { %v2658_v58 = vpop.eup %2657  ;;  %v638_v27 = vadd.f32 %v629_v50, %v586_v53  ;;  %1526 = vrot.lane.b32.xlu1 %v1515_v30, %s2975_s9  ;;  %v2707_v30 = vld [vmem:[#allocation2 + $0x30] sm:$0xff] }
 0x236   : > { %v2660_v7 = vpop.eup %2659  ;;  %v1946_v14 = vadd.f32 1.0, %v2658_v58  ;;  %v3803_v47 = vsel %vm1962_vm8, 1.0, %v2658_v58  ;;  %1596 = vrot.lane.b32.xlu0 %v1588_v23, %s2974_s29  ;;  %v2708_v58 = vld [vmem:[#allocation2 + $0x38] sm:$0xff] }
 0x237   : > { %v1947_v32 = vadd.f32 1.0, %v2660_v7  ;;  %v3809_v8 = vsel %vm1963_vm9, 1.0, %v2660_v7  ;;  %v631_v33 = vpop.permute.xlu1 %630  ;;  %v662_v57 = vadd.f32 %v658_v0, %v638_v27  ;;  %v3842_v27 = vmul.f32 %v2708_v58, %v911_v29 }
 0x238   : > { %2665 = vlog2.f32 %v1946_v14  ;;  %v639_v37 = vadd.f32 %v631_v33, %v587_v52  ;;  %v701_v17 = vpop.permute.xlu0 %700  ;;  %v1934_v52 = vmax.f32 %v3754_v54, 0.0  ;;  %v1938_v0 = vmul.f32 %v3845_v22, %v3754_v54  ;;  %v3858_v54 = vld [vmem:[%s3246_s20 + $0x10] sm:$0xff] }
 0x239   : > { %2667 = vrcp.f32 %v1946_v14  ;;  %v712_v38 = vadd.f32 %v701_v17, %v660_v41  ;;  %1598 = vrot.lane.b32.xlu1 %v1589_v35, %s2974_s29  ;;  %v2706_v41 = vld [vmem:[#allocation2 + $0x28] sm:$0xff]  ;;  %v1935_v7 = vmax.f32 %v3759_v13, 0.0  ;;  %v3851_v14 = vld [vmem:[%s3246_s20 + $0x8] sm:$0xff] }
 0x23a   : > { %v2662_v46 = vpop.eup %2661  ;;  %2669 = vlog2.f32 %v1947_v32  ;;  %1600 = vrot.lane.b32.xlu0 %v1590_v56, %s2974_s29  ;;  %v663_v5 = vadd.f32 %v659_v62, %v639_v37  ;;  %v3837_v18 = vmul.f32 %v2706_v41, %v911_v29  ;;  %v1936_v37 = vmax.f32 %v3767_v24, 0.0 }
 0x23b   : > { %2671 = vrcp.f32 %v1947_v32  ;;  %v1948_v45 = vadd.f32 1.0, %v2662_v46  ;;  %v3822_v12 = vsel %vm1964_vm10, 1.0, %v2662_v46  ;;  %v703_v15 = vpop.permute.xlu1 %702  ;;  %v1939_v32 = vmul.f32 %v3851_v14, %v3759_v13 }
 0x23c   : > { %v713_v9 = vadd.f32 %v703_v15, %v661_v34  ;;  %v705_v19 = vpop.permute.xlu0 %704  ;;  %v3839_v34 = vmul.f32 %v2707_v30, %v911_v29  ;;  %v1940_v46 = vmul.f32 %v3858_v54, %v3767_v24  ;;  %v3864_v15 = vld [vmem:[%s3246_s20 + $0x18] sm:$0xff]  ;;  %v1942_v21 = vsub.f32 %v1934_v52, %v1938_v0  ;;  %s2439_s20 = sld [smem:[#allocation3 + $0x900]] }
 0x23d   : > { %v2664_v55 = vpop.eup %2663  ;;  %2673 = vrcp.f32 %v1948_v45  ;;  %v714_v48 = vadd.f32 %v705_v19, %v662_v57  ;;  %1648 = vrot.lane.b32.xlu1 %v1640_v20, %s2975_s9  ;;  %v1941_v13 = vmul.f32 %v3864_v15, %v3775_v44 }
 0x23e   : > { %v1949_v59 = vadd.f32 1.0, %v2664_v55  ;;  %v3829_v53 = vsel %vm1965_vm11, 1.0, %v2664_v55  ;;  %2675 = vlog2.f32 %v1948_v45  ;;  %v1937_v45 = vmax.f32 %v3775_v44, 0.0 }
 0x23f   : > { %v753_v60 = vpop.permute.xlu1 %752  ;;  %v1943_v44 = vsub.f32 %v1935_v7, %v1939_v32  ;;  %v1944_v30 = vsub.f32 %v1936_v37, %v1940_v46 }
 0x240   : > { %2677 = vrcp.f32 %v1949_v59  ;;  %v764_v16 = vadd.f32 %v753_v60, %v712_v38  ;;  %v755_v40 = vpop.permute.xlu0 %754 }
 0x241   : > { %v765_v31 = vadd.f32 %v755_v40, %v713_v9  ;;  %v2530_v25 = vpop.f32.mrf.mxu1  ;;  %2679 = vlog2.f32 %v1949_v59 }
 0x242   : > { %v1899_v50 = vmul.f32 0.0010405828, %v2530_v25  ;;  %v788_v23 = vadd.f32 %v784_v36, %v764_v16  ;;  %v2713_v16 = vld [vmem:[#allocation2 + $0x40] sm:$0xff] }
 0x243   : > { %v1879_v33 = vpop.f32.mrf.mxu1  ;;  %v707_v35 = vpop.permute.xlu1 %706  ;;  %v789_v57 = vadd.f32 %v785_v6, %v765_v31  ;;  %v3870_v40 = vmul.f32 %v2713_v16, %v911_v29 }
 0x244   : > { %v1903_v17 = vsub.f32 %v1899_v50, %v3851_v14  ;;  %v1898_v56 = vmul.f32 0.0010405828, %v1879_v33  ;;  %v715_v28 = vadd.f32 %v707_v35, %v663_v5  ;;  %v757_v62 = vpop.permute.xlu0 %756  ;;  %v1945_v50 = vsub.f32 %v1937_v45, %v1941_v13 }
 0x245   : > { %v2666_v38 = vpop.eup %2665  ;;  %v766_v20 = vadd.f32 %v757_v62, %v714_v48  ;;  %v2533_v9 = vpop.f32.mrf.mxu1 }
 0x246   : > { %v2668_v19 = vpop.eup %2667  ;;  %v1951_v43 = vmul.f32 0.6931472, %v2666_v38  ;;  %v1907_v55 = vand.u32 2147483647, %v1903_v17  ;;  %v1902_v5 = vsub.f32 %v1898_v56, %v3845_v22  ;;  %v1901_v59 = vmul.f32 0.0010405828, %v2533_v9 }
 0x247   : > { %v2670_v60 = vpop.eup %2669  ;;  %v1974_v36 = vmul.f32 %v2668_v19, %v3803_v47  ;;  %v1889_v24 = vpop.f32.mrf.mxu1  ;;  %v790_v6 = vadd.f32 %v786_v49, %v766_v20 }
 0x248   : > { %v759_v51 = vpop.permute.xlu1 %758  ;;  %v2672_v61 = vpop.eup %2671  ;;  %v1953_v48 = vmul.f32 0.6931472, %v2670_v60  ;;  %v1911_v26 = vmul.f32 5.0, %v1907_v55  ;;  %v1906_v31 = vand.u32 2147483647, %v1902_v5  ;;  %v1905_v52 = vsub.f32 %v1901_v59, %v3864_v15 }
 0x249   : > { %v829_v25 = vpop.permute.xlu0 %828  ;;  %v1975_v41 = vmul.f32 %v2672_v61, %v3809_v8  ;;  %v1958_v47 = vadd.f32 %v1951_v43, %v1942_v21  ;;  %v2018_v0 = vmul.f32 %v3845_v22, %v1974_v36  ;;  %v1900_v33 = vmul.f32 0.0010405828, %v1889_v24 }
 0x24a   : > { %v2674_v58 = vpop.eup %2673  ;;  %v1910_v49 = vmul.f32 5.0, %v1906_v31  ;;  %v1959_v35 = vadd.f32 %v1953_v48, %v1943_v44  ;;  %v3878_v32 = vadd.f32 1.0, %v1911_v26  ;;  %v1909_v17 = vand.u32 2147483647, %v1905_v52 }
 0x24b   : > { %v2676_v29 = vpop.eup %2675  ;;  %v3876_v7 = vmul.f32 %v2674_v58, %v3822_v12  ;;  %v1904_v37 = vsub.f32 %v1900_v33, %v3858_v54  ;;  %v767_v62 = vadd.f32 %v759_v51, %v715_v28  ;;  %v840_v38 = vadd.f32 %v829_v25, %v788_v23 }
 0x24c   : > { %v831_v56 = vpop.permute.xlu1 %830  ;;  %v3880_v8 = vadd.f32 1.0, %v1910_v49  ;;  %v1913_v13 = vmul.f32 5.0, %v1909_v17  ;;  %v1955_v19 = vmul.f32 0.6931472, %v2676_v29  ;;  %v2042_v60 = vadd.f32 %v3845_v22, %v1974_v36 }
 0x24d   : > { %v833_v46 = vpop.permute.xlu0 %832  ;;  %v2678_v45 = vpop.eup %2677  ;;  %v841_v20 = vadd.f32 %v831_v56, %v789_v57  ;;  %v1908_v55 = vand.u32 2147483647, %v1904_v37  ;;  %v791_v5 = vadd.f32 %v3835_v4, %v767_v62  ;;  %v1979_v23 = vmul.f32 %v1959_v35, %v3878_v32 }
 0x24e   : > { %v842_v9 = vadd.f32 %v833_v46, %v790_v6  ;;  %v2680_v43 = vpop.eup %2679  ;;  %v1977_v12 = vmul.f32 %v2678_v45, %v3829_v53  ;;  %v1978_v59 = vmul.f32 %v1958_v47, %v3880_v8  ;;  %v1917_v21 = vadd.f32 1.0, %v1913_v13 }
 0x24f   : > { %v1957_v28 = vmul.f32 0.6931472, %v2680_v43  ;;  %v1912_v51 = vmul.f32 5.0, %v1908_v55  ;;  %v1960_v6 = vadd.f32 %v1955_v19, %v1944_v30  ;;  %v1983_v48 = vsel %vm1703_vm0, %v1979_v23, 0.0 }
 0x250   : > { %v881_v24 = vpop.permute.xlu1 %880  ;;  %v1982_v61 = vsel %vm1703_vm0, %v1978_v59, 0.0  ;;  %v1998_v4 = vsel %vm1703_vm0, %v3880_v8, 0.0  ;;  %v1999_v31 = vsel %vm1703_vm0, %v3878_v32, 0.0  ;;  %v2019_v25 = vmul.f32 %v3851_v14, %v1975_v41 }
 0x251   : > { %v892_v16 = vadd.f32 %v881_v24, %v840_v38  ;;  %v883_v57 = vpop.permute.xlu0 %882  ;;  %v1961_v53 = vadd.f32 %v1957_v28, %v1945_v50  ;;  %v1916_v26 = vadd.f32 1.0, %v1912_v51  ;;  %v1984_v36 = vadd.f32 %v1983_v48, %v1982_v61 }
 0x252   : > { %v893_v44 = vadd.f32 %v883_v57, %v841_v20  ;;  %v2043_v30 = vadd.f32 %v3851_v14, %v1975_v41  ;;  %v2020_v29 = vmul.f32 %v3858_v54, %v3876_v7  ;;  %v2000_v17 = vadd.f32 %v1999_v31, %v1998_v4 }
 0x253   : > { %v916_v22 = vadd.f32 %v3837_v18, %v892_v16  ;;  %v1981_v58 = vmul.f32 %v1961_v53, %v1917_v21  ;;  %v1980_v33 = vmul.f32 %v1960_v6, %v1916_v26  ;;  %v2021_v18 = vmul.f32 %v3864_v15, %v1977_v12 }
 0x254   : > { %v835_v52 = vpop.permute.xlu1 %834  ;;  %v917_v50 = vadd.f32 %v3839_v34, %v893_v44  ;;  %v2003_v56 = vsel %vm1703_vm0, %v1917_v21, 0.0  ;;  %v2022_v37 = vmul.f32 %v2018_v0, %v3880_v8  ;;  %v2001_v41 = vsel %vm1703_vm0, %v1916_v26, 0.0 }
 0x255   : > { %v843_v47 = vadd.f32 %v835_v52, %v791_v5  ;;  %v885_v49 = vpop.permute.xlu0 %884  ;;  %v1985_v14 = vsel %vm1703_vm0, %v1980_v33, 0.0  ;;  %v2023_v34 = vmul.f32 %v2019_v25, %v3878_v32  ;;  %v2024_v62 = vmul.f32 %v2020_v29, %v1916_v26 }
 0x256   : > { %v894_v35 = vadd.f32 %v885_v49, %v842_v9  ;;  %v1986_v46 = vadd.f32 %v1985_v14, %v1984_v36  ;;  %v2025_v13 = vmul.f32 %v2021_v18, %v1917_v21  ;;  %v2026_v20 = vsel %vm1703_vm0, %v2022_v37, 0.0 }
 0x257   : > { %v1987_v43 = vsel %vm1703_vm0, %v1981_v58, 0.0  ;;  %v2027_v0 = vsel %vm1703_vm0, %v2023_v34, 0.0  ;;  %v2029_v55 = vsel %vm1703_vm0, %v2024_v62, 0.0  ;;  %v2044_v28 = vadd.f32 %v3858_v54, %v3876_v7  ;;  %v2715_v58 = vld [vmem:[#allocation2 + $0x31] sm:$0xff] }
 0x258   : > { %v887_v38 = vpop.permute.xlu1 %886  ;;  %v918_v45 = vadd.f32 %v3842_v27, %v894_v35  ;;  %v1988_v59 = vadd.f32 %v1987_v43, %v1986_v46  ;;  %v2028_v24 = vadd.f32 %v2027_v0, %v2026_v20  ;;  %v2045_v27 = vadd.f32 %v3864_v15, %v1977_v12 }
 0x259   : > { %v895_v9 = vadd.f32 %v887_v38, %v843_v47  ;;  %v957_v19 = vpop.permute.xlu0 %956  ;;  %v2046_v51 = vmul.f32 %v2042_v60, %v3880_v8  ;;  %v2047_v16 = vmul.f32 %v2043_v30, %v3878_v32  ;;  %v2002_v6 = vadd.f32 %v2001_v41, %v2000_v17  ;;  %v2714_v30 = vld [vmem:[#allocation2 + $0x29] sm:$0xff]  ;;  %v2717_v38 = vld [vmem:[#allocation2 + $0x41] sm:$0xff] }
 0x25a   : > { %v968_v5 = vadd.f32 %v957_v19, %v916_v22  ;;  %1989 = vadd.xlane.f32.xlu0 %v1988_v59  ;;  %v2030_v61 = vadd.f32 %v2029_v55, %v2028_v24  ;;  %v2031_v44 = vsel %vm1703_vm0, %v2025_v13, 0.0  ;;  %v2048_v53 = vmul.f32 %v2044_v28, %v1916_v26 }
 0x25b   : > { %v919_v23 = vadd.f32 %v3870_v40, %v895_v9  ;;  %v2049_v22 = vmul.f32 %v2045_v27, %v1917_v21  ;;  %v2050_v54 = vsel %vm1703_vm0, %v2046_v51, 0.0  ;;  %v2051_v40 = vsel %vm1703_vm0, %v2047_v16, 0.0  ;;  %v2720_v27 = vld [vmem:[#allocation2 + $0x2a] sm:$0xff] }
 0x25c   : > { %v959_v57 = vpop.permute.xlu1 %958  ;;  %v3920_v15 = vadd.f32 %v2031_v44, %v2030_v61  ;;  %v2052_v8 = vadd.f32 %v2051_v40, %v2050_v54  ;;  %v2053_v32 = vsel %vm1703_vm0, %v2048_v53, 0.0  ;;  %v2004_v60 = vadd.f32 %v2003_v56, %v2002_v6  ;;  %v2716_v56 = vld [vmem:[#allocation2 + $0x39] sm:$0xff] }
 0x25d   : > { %v969_v48 = vadd.f32 %v959_v57, %v917_v50  ;;  %v961_v4 = vpop.permute.xlu0 %960  ;;  %v1040_v26 = vmul.f32 %v2714_v30, %v3833_v39  ;;  %v2055_v21 = vsel %vm1703_vm0, %v2049_v22, 0.0  ;;  %v1041_v50 = vmul.f32 %v2715_v58, %v3833_v39  ;;  %v2721_v57 = vld [vmem:[#allocation2 + $0x32] sm:$0xff]  ;;  %v2722_v22 = vld [vmem:[#allocation2 + $0x3a] sm:$0xff] }
 0x25e   : > { %v970_v7 = vadd.f32 %v961_v4, %v918_v45  ;;  %v2054_v36 = vadd.f32 %v2053_v32, %v2052_v8  ;;  %v1042_v37 = vmul.f32 %v2716_v56, %v3833_v39  ;;  %v1043_v46 = vmul.f32 %v2717_v38, %v3833_v39  ;;  %v2723_v32 = vld [vmem:[#allocation2 + $0x42] sm:$0xff] }
 0x25f   : > { %v1167_v0 = vstv %s2439_s20 }
 0x260   : > { %v1009_v12 = vpop.permute.xlu1 %1008  ;;  %v3926_v47 = vadd.f32 %v2055_v21, %v2054_v36  ;;  %v1168_v51 = vmul.f32 %v2720_v27, %v1167_v0  ;;  %v1169_v6 = vmul.f32 %v2721_v57, %v1167_v0  ;;  %v1170_v54 = vmul.f32 %v2722_v22, %v1167_v0  ;;  %v2728_v57 = vld [vmem:[#allocation2 + $0x51] sm:$0xff] }
 0x261   : > { %v1020_v31 = vadd.f32 %v1009_v12, %v968_v5  ;;  %v1011_v25 = vpop.permute.xlu0 %1010  ;;  %2005 = vadd.xlane.f32.xlu1 %v2004_v60  ;;  %v3930_v5 = vld [vmem:[#allocation2 + $0x5a] sm:$0xff]  ;;  %v1171_v12 = vmul.f32 %v2723_v32, %v1167_v0  ;;  %v1295_v21 = vstv %s2445_s10 }
 0x262   : > { %v1021_v52 = vadd.f32 %v1011_v25, %v969_v48  ;;  %v1641_v59 = vmul.f32 %v3930_v5, %v3463_v1 }
 0x263   : > { %v1044_v49 = vadd.f32 %v1040_v26, %v1020_v31 }
 0x264   : > { %v963_v33 = vpop.permute.xlu1 %962  ;;  %v1045_v29 = vadd.f32 %v1041_v50, %v1021_v52 }
 0x265   : > { %v971_v18 = vadd.f32 %v963_v33, %v919_v23  ;;  %v1013_v35 = vpop.permute.xlu0 %1012  ;;  %v3934_v23 = vld [vmem:[#allocation2 + $0x6a] sm:$0xff] }
 0x266   : > { %v1022_v17 = vadd.f32 %v1013_v35, %v970_v7  ;;  %v1591_v39 = vmul.f32 %v3934_v23, %v3793_v63 }
 0x268   : > { %v1015_v14 = vpop.permute.xlu1 %1014  ;;  %v1046_v41 = vadd.f32 %v1042_v37, %v1022_v17 }
 0x269   : > { %v1023_v34 = vadd.f32 %v1015_v14, %v971_v18  ;;  %v1085_v62 = vpop.permute.xlu0 %1084  ;;  %v2725_v18 = vld [vmem:[#allocation2 + $0x58] sm:$0xff] }
 0x26a   : > { %v1096_v45 = vadd.f32 %v1085_v62, %v1044_v49  ;;  %v2724_v49 = vld [vmem:[#allocation2 + $0x50] sm:$0xff]  ;;  %v1297_v35 = vmul.f32 %v2725_v18, %v1295_v21  ;;  %v2726_v62 = vld [vmem:[#allocation2 + $0x60] sm:$0xff] }
 0x26b   : > { %v1047_v13 = vadd.f32 %v1043_v46, %v1023_v34  ;;  %v1296_v33 = vmul.f32 %v2724_v49, %v1295_v21  ;;  %v1298_v38 = vmul.f32 %v2726_v62, %v1295_v21 }
 0x26c   : > { %v1087_v20 = vpop.permute.xlu1 %1086 }
 0x26d   : > { %v1097_v9 = vadd.f32 %v1087_v20, %v1045_v29  ;;  %v1089_v19 = vpop.permute.xlu0 %1088 }
 0x26e   : > { %v1098_v43 = vadd.f32 %v1089_v19, %v1046_v41 }
 0x270   : > { %v1137_v55 = vpop.permute.xlu1 %1136  ;;  %1650 = vrot.lane.b32.xlu0 %v1641_v59, %s2975_s9 }
 0x271   : > { %v1148_v24 = vadd.f32 %v1137_v55, %v1096_v45  ;;  %v1139_v28 = vpop.permute.xlu0 %1138 }
 0x272   : > { %v1149_v16 = vadd.f32 %v1139_v28, %v1097_v9  ;;  %1602 = vrot.lane.b32.xlu1 %v1591_v39, %s2974_s29  ;;  %s2451_s29 = sld [smem:[#allocation3 + $0xa80]]  ;;  %v2727_v9 = vld [vmem:[#allocation2 + $0x68] sm:$0xff] }
 0x273   : > { %v1172_v61 = vadd.f32 %v1168_v51, %v1148_v24  ;;  %v1299_v19 = vmul.f32 %v2727_v9, %v1295_v21 }
 0x274   : > { %v1091_v44 = vpop.permute.xlu1 %1090  ;;  %v1173_v53 = vadd.f32 %v1169_v6, %v1149_v16 }
 0x275   : > { %v1099_v1 = vadd.f32 %v1091_v44, %v1047_v13  ;;  %v1141_v48 = vpop.permute.xlu0 %1140  ;;  %v2729_v44 = vld [vmem:[#allocation2 + $0x59] sm:$0xff] }
 0x276   : > { %v1150_v4 = vadd.f32 %v1141_v48, %v1098_v43 }
 0x278   : > { %v1143_v40 = vpop.permute.xlu1 %1142  ;;  %v1174_v63 = vadd.f32 %v1170_v54, %v1150_v4  ;;  %v1423_v39 = vstv %s2451_s29 }
 0x279   : > { %v1151_v7 = vadd.f32 %v1143_v40, %v1099_v1  ;;  %v1213_v8 = vpop.permute.xlu0 %1212  ;;  %v1424_v6 = vmul.f32 %v2728_v57, %v1423_v39 }
 0x27a   : > { %v1224_v60 = vadd.f32 %v1213_v8, %v1172_v61 }
 0x27b   : > { %v1175_v36 = vadd.f32 %v1171_v12, %v1151_v7 }
 0x27c   : > { %v1215_v31 = vpop.permute.xlu1 %1214 }
 0x27d   : > { %v1225_v25 = vadd.f32 %v1215_v31, %v1173_v53  ;;  %v1217_v30 = vpop.permute.xlu0 %1216  ;;  %v1425_v53 = vmul.f32 %v2729_v44, %v1423_v39  ;;  %v3992_v44 = vstv %s2120_s15 }
 0x27e   : > { %v1226_v26 = vadd.f32 %v1217_v30, %v1174_v63  ;;  %v2730_v63 = vld [vmem:[#allocation2 + $0x61] sm:$0xff] }
 0x27f   : > { %v1426_v7 = vmul.f32 %v2730_v63, %v1423_v39 }
 0x280   : > { %v1265_v52 = vpop.permute.xlu1 %1264 }
 0x281   : > { %v1276_v58 = vadd.f32 %v1265_v52, %v1224_v60  ;;  %v1267_v50 = vpop.permute.xlu0 %1266  ;;  %v2731_v60 = vld [vmem:[#allocation2 + $0x69] sm:$0xff] }
 0x282   : > { %v1277_v29 = vadd.f32 %v1267_v50, %v1225_v25 }
 0x283   : > { %v1300_v17 = vadd.f32 %v1296_v33, %v1276_v58  ;;  %v1551_v58 = vstv %s2457_s0 }
 0x284   : > { %v1219_v56 = vpop.permute.xlu1 %1218  ;;  %v1301_v37 = vadd.f32 %v1297_v35, %v1277_v29  ;;  %v2732_v29 = vld [vmem:[#allocation2 + $0x52] sm:$0xff]  ;;  %v1554_v62 = vmul.f32 %v3815_v42, %v1551_v58  ;;  %v3966_v42 = vstv %s3956_s21 }
 0x285   : > { %v1227_v14 = vadd.f32 %v1219_v56, %v1175_v36  ;;  %v1269_v41 = vpop.permute.xlu0 %1268  ;;  %v1427_v36 = vmul.f32 %v2731_v60, %v1423_v39  ;;  %v1552_v18 = vmul.f32 %v2732_v29, %v1551_v58 }
 0x286   : > { %v1278_v34 = vadd.f32 %v1269_v41, %v1226_v26 }
 0x288   : > { %v1271_v46 = vpop.permute.xlu1 %1270  ;;  %v1302_v45 = vadd.f32 %v1298_v38, %v1278_v34 }
 0x289   : > { %v1279_v13 = vadd.f32 %v1271_v46, %v1227_v14  ;;  %v1341_v20 = vpop.permute.xlu0 %1340 }
 0x28a   : > { %v1352_v43 = vadd.f32 %v1341_v20, %v1300_v17 }
 0x28b   : > { %v1303_v0 = vadd.f32 %v1299_v19, %v1279_v13  ;;  %v1555_v13 = vmul.f32 %v3934_v23, %v1551_v58  ;;  %v2091_v23 = vstv %s3959_s14  ;;  %v4186_v19 = vld [vmem:[#allocation27_spill] sm:$0xff] }
 0x28c   : > { %v1343_v55 = vpop.permute.xlu1 %1342 }
 0x28d   : > { %v1353_v59 = vadd.f32 %v1343_v55, %v1301_v37  ;;  %v1345_v24 = vpop.permute.xlu0 %1344 }
 0x28e   : > { %v1354_v28 = vadd.f32 %v1345_v24, %v1302_v45 }
 0x28f   : > { %2033 = vadd.xlane.f32.xlu0 %v3920_v15 }
 0x290   : > { %v1393_v27 = vpop.permute.xlu1 %1392 }
 0x291   : > { %v1404_v51 = vadd.f32 %v1393_v27, %v1352_v43  ;;  %v1395_v16 = vpop.permute.xlu0 %1394  ;;  %v2078_v43 = vcvt.s32.f32 %v4186_v19 }
 0x292   : > { %v1405_v61 = vadd.f32 %v1395_v16, %v1353_v59 }
 0x293   : > { %v1428_v1 = vadd.f32 %v1424_v6, %v1404_v51  ;;  %v2084_v59 = vsub.f32 %v2078_v43, %v3966_v42  ;;  %vm2123_vm2 = vcmp.lt.f32.partialorder %v2078_v43, %v3992_v44 }
 0x294   : > { %v1347_v48 = vpop.permute.xlu1 %1346  ;;  %v1429_v4 = vadd.f32 %v1425_v53, %v1405_v61  ;;  %v3990_v61 = vstv %s2482_s30  ;;  %s2485_s30 = sshll.u32 %s3039_s28, 4 }
 0x295   : > { %v1355_v22 = vadd.f32 %v1347_v48, %v1303_v0  ;;  %v1397_v54 = vpop.permute.xlu0 %1396  ;;  %v4007_v48 = vstv %s2137_s23  ;;  %vm2117_vm1 = vcmp.ge.f32.partialorder %v2078_v43, %v3990_v61 }
 0x296   : > { %v1406_v40 = vadd.f32 %v1397_v54, %v1354_v28  ;;  %2057 = vadd.xlane.f32.xlu1 %v3926_v47  ;;  %v1553_v47 = vmul.f32 %v3930_v5, %v1551_v58  ;;  %vm2127_vm5 = vmand %vm2117_vm1, %vm2123_vm2 }
 0x298   : > { %v1399_v8 = vpop.permute.xlu1 %1398  ;;  %v1430_v15 = vadd.f32 %v1426_v7, %v1406_v40 }
 0x299   : > { %v1407_v32 = vadd.f32 %v1399_v8, %v1355_v22  ;;  %v1469_v12 = vpop.permute.xlu0 %1468  ;;  %v4016_v22 = vstv %s2484_s17 }
 0x29a   : > { %v1480_v31 = vadd.f32 %v1469_v12, %v1428_v1  ;;  %v4001_v1 = vstv %s2483_s18  ;;  %vm2156_vm7 = vcmp.eq.s32.totalorder %v4016_v22, 1  ;;  %s393_s18 = scalar_lea.vmem [#allocation15], %s3234_s1 }
 0x29b   : > { %v1431_v25 = vadd.f32 %v1427_v36, %v1407_v32  ;;  %s2211_s13 = sshll.u32 %s393_s18, 4  ;;  %s4080_s13 = int_to_ptr.vmem [resolvable:$true] %s2211_s13 }
 0x29c   : > { %v1471_v30 = vpop.permute.xlu1 %1470 }
 0x29d   : > { %v1481_v26 = vadd.f32 %v1471_v30, %v1429_v4  ;;  %v1473_v21 = vpop.permute.xlu0 %1472 }
 0x29e   : > { %v1482_v52 = vadd.f32 %v1473_v21, %v1430_v15 }
 0x2a0   : > { %v1521_v50 = vpop.permute.xlu1 %1520 }
 0x2a1   : > { %v1532_v49 = vadd.f32 %v1521_v50, %v1480_v31  ;;  %v1523_v33 = vpop.permute.xlu0 %1522 }
 0x2a2   : > { %v1533_v35 = vadd.f32 %v1523_v33, %v1481_v26 }
 0x2a3   : > { %v1556_v17 = vadd.f32 %v1552_v18, %v1532_v49 }
 0x2a4   : > { %v1475_v56 = vpop.permute.xlu1 %1474  ;;  %v3943_v37 = vadd.f32 %v1553_v47, %v1533_v35 }
 0x2a5   : > { %v1483_v14 = vadd.f32 %v1475_v56, %v1431_v25  ;;  %v1525_v41 = vpop.permute.xlu0 %1524  ;;  %1652 = vrot.lane.b32.xlu0 %v3469_v10, %s2975_s9  ;;  %v2077_v10 = vcvt.s32.f32 %v3253_v2 }
 0x2a6   : > { %v1534_v34 = vadd.f32 %v1525_v41, %v1482_v52  ;;  %v4189_v41 = vld [vmem:[#allocation26_spill] sm:$0xff] }
 0x2a7   : > { %1654 = vrot.lane.b32.xlu1 %v3473_v11, %s2975_s9  ;;  %v3963_v11 = vcvt.s32.f32 %v3255_v3  ;;  %v2083_v0 = vsub.f32 %v2077_v10, %v3966_v42  ;;  %v2088_v3 = vmul.f32 %v2084_v59, %v2084_v59  ;;  %vm2116_vm12 = vcmp.ge.f32.partialorder %v2077_v10, %v3990_v61 }
 0x2a8   : > { %v1527_v38 = vpop.permute.xlu1 %1526  ;;  %v3950_v46 = vadd.f32 %v1554_v62, %v1534_v34  ;;  %vm2122_vm13 = vcmp.lt.f32.partialorder %v2077_v10, %v3992_v44  ;;  %v2079_v34 = vcvt.s32.f32 %v4189_v41 }
 0x2a9   : > { %v1535_v5 = vadd.f32 %v1527_v38, %v1483_v14  ;;  %v1597_v45 = vpop.permute.xlu0 %1596  ;;  %v2092_v55 = vsub.f32 %v3963_v11, %v2091_v23  ;;  %v2087_v2 = vmul.f32 %v2083_v0, %v2083_v0  ;;  %vm2126_vm14 = vmand %vm2116_vm12, %vm2122_vm13  ;;  %vm2132_vm15 = vcmp.ge.f32.partialorder %v3963_v11, %v4001_v1 }
 0x2aa   : > { %v1608_v20 = vadd.f32 %v1597_v45, %v1556_v17  ;;  %vm2133_vm3 = vmand %vm2126_vm14, %vm2132_vm15  ;;  %vm2139_vm4 = vcmp.lt.f32.partialorder %v3963_v11, %v4007_v48  ;;  %vm2118_vm12 = vcmp.ge.f32.partialorder %v2079_v34, %v3990_v61  ;;  %vm2124_vm13 = vcmp.lt.f32.partialorder %v2079_v34, %v3992_v44 }
 0x2ab   : > { %v3953_v9 = vadd.f32 %v1555_v13, %v1535_v5  ;;  %v3975_v24 = vmul.f32 %v2092_v55, %v2092_v55  ;;  %vm2140_vm6 = vmand %vm2133_vm3, %vm2139_vm4  ;;  %v2085_v5 = vsub.f32 %v2079_v34, %v3966_v42  ;;  %v4190_v13 = vld [vmem:[#allocation25_spill] sm:$0xff] }
 0x2ac   : > { %v1599_v4 = vpop.permute.xlu1 %1598  ;;  %vm2134_vm8 = vmand %vm2127_vm5, %vm2132_vm15 }
 0x2ad   : > { %v2094_v28 = vadd.f32 %v3975_v24, %v2087_v2  ;;  %v2095_v27 = vadd.f32 %v3975_v24, %v2088_v3  ;;  %v4025_v54 = vpop.permute.xlu0 %1600  ;;  %vm2157_vm9 = vmand %vm2140_vm6, %vm2156_vm7  ;;  %v1609_v60 = vadd.f32 %v1599_v4, %v3943_v37  ;;  %v2089_v10 = vmul.f32 %v2085_v5, %v2085_v5 }
 0x2ae   : > { %vm2141_vm10 = vmand %vm2134_vm8, %vm2139_vm4 }
 0x2af   : > { %v2098_v39 = vsub.f32 0.0, %v2094_v28  ;;  %v2099_v16 = vsub.f32 0.0, %v2095_v27  ;;  %vm2158_vm11 = vmand %vm2141_vm10, %vm2156_vm7  ;;  %v2096_v19 = vadd.f32 %v3975_v24, %v2089_v10 }
 0x2b0   : > { %v1649_v40 = vpop.permute.xlu1 %1648  ;;  %vm2128_vm14 = vmand %vm2118_vm12, %vm2124_vm13 }
 0x2b1   : > { %v2102_v51 = vmul.f32 0.125, %v2098_v39  ;;  %v2103_v6 = vmul.f32 0.125, %v2099_v16  ;;  %v1660_v7 = vadd.f32 %v1649_v40, %v1608_v20  ;;  %v2080_v20 = vcvt.s32.f32 %v4190_v13  ;;  %vm2135_vm1 = vmand %vm2128_vm14, %vm2132_vm15 }
 0x2b2   : > { %v2100_v0 = vsub.f32 0.0, %v2096_v19  ;;  %vm2142_vm5 = vmand %vm2135_vm1, %vm2139_vm4 }
 0x2b3   : > { %v2106_v57 = vmul.f32 1.442695, %v2102_v51  ;;  %v2108_v53 = vmul.f32 1.442695, %v2103_v6  ;;  %v2086_v23 = vsub.f32 %v2080_v20, %v3966_v42  ;;  %vm2119_vm2 = vcmp.ge.f32.partialorder %v2080_v20, %v3990_v61  ;;  %vm2159_vm8 = vmand %vm2142_vm5, %vm2156_vm7 }
 0x2b4   : > { %v2104_v59 = vmul.f32 0.125, %v2100_v0  ;;  %vm2125_vm3 = vcmp.lt.f32.partialorder %v2080_v20, %v3992_v44  ;;  %v1610_v51 = vadd.f32 %v4025_v54, %v3950_v46 }
 0x2b5   : > { %2681 = vpow2.f32 %v2106_v57  ;;  %v2090_v43 = vmul.f32 %v2086_v23, %v2086_v23  ;;  %vm2129_vm6 = vmand %vm2119_vm2, %vm2125_vm3 }
 0x2b6   : > { %2683 = vpow2.f32 %v2108_v53  ;;  %v2110_v3 = vmul.f32 1.442695, %v2104_v59 }
 0x2b7   : > { %v2097_v55 = vadd.f32 %v3975_v24, %v2090_v43 }
 0x2b8   : > { %2685 = vpow2.f32 %v2110_v3 }
 0x2b9   : > { %v2101_v2 = vsub.f32 0.0, %v2097_v55 }
 0x2bb   : > { %v2105_v28 = vmul.f32 0.125, %v2101_v2 }
 0x2bd   : > { %v2112_v39 = vmul.f32 1.442695, %v2105_v28 }
 0x2bf   : > { %2687 = vpow2.f32 %v2112_v39 }
 0x2c2   : > { %v2682_v63 = vpop.eup %2681 }
 0x2c3   : > { %v2161_v8 = vsel %vm2157_vm9, %v2682_v63, 0.0  ;;  %v2684_v32 = vpop.eup %2683  ;;  %vm2136_vm9 = vmand %vm2129_vm6, %vm2132_vm15 }
 0x2c4   : > { %v2165_v36 = vsub.f32 %v1660_v7, %v2161_v8  ;;  %v2162_v25 = vsel %vm2158_vm11, %v2684_v32, 0.0  ;;  %vm2143_vm10 = vmand %vm2136_vm9, %vm2139_vm4 }
 0x2c5   : > { %v2686_v24 = vpop.eup %2685  ;;  %vm2160_vm11 = vmand %vm2143_vm10, %vm2156_vm7 }
 0x2c6   : > { %v2169_v58 = vmul.f32 %v2165_v36, %v2165_v36  ;;  %v2163_v16 = vsel %vm2159_vm8, %v2686_v24, 0.0 }
 0x2c8   : > { %v2173_v47 = vsel %vm1703_vm0, %v2169_v58, 0.0 }
 0x2cc   : > { %v2688_v44 = vpop.eup %2687 }
 0x2cd   : > { %v2164_v63 = vsel %vm2160_vm11, %v2688_v44, 0.0 }
 0x2e3   : > { %v1990_v15 = vpop.xlane.xlu0 %1989 }
 0x2e4   : > { %v1991_v12 = vrot.slane %v1990_v15, 4 }
 0x2e6   : > { %v1992_v31 = vadd.f32 %v1991_v12, %v1990_v15 }
 0x2e7   : > { %v1651_v30 = vpop.permute.xlu0 %1650 }
 0x2e8   : > { %v1993_v26 = vrot.slane %v1992_v31, 2  ;;  %v1661_v21 = vadd.f32 %v1651_v30, %v1609_v60 }
 0x2ea   : > { %v2006_v52 = vpop.xlane.xlu1 %2005  ;;  %v2166_v50 = vsub.f32 %v1661_v21, %v2162_v25  ;;  %v1994_v33 = vadd.f32 %v1993_v26, %v1992_v31 }
 0x2eb   : > { %v2007_v49 = vrot.slane %v2006_v52, 4 }
 0x2ec   : > { %v2170_v29 = vmul.f32 %v2166_v50, %v2166_v50  ;;  %v1995_v35 = vrot.slane %v1994_v33, 1 }
 0x2ed   : > { %v2008_v18 = vadd.f32 %v2007_v49, %v2006_v52 }
 0x2ee   : > { %v2174_v17 = vsel %vm1703_vm0, %v2170_v29, 0.0  ;;  %v1996_v37 = vadd.f32 %v1995_v35, %v1994_v33  ;;  %v1603_v27 = vpop.permute.xlu1 %1602 }
 0x2ef   : > { %v2009_v56 = vrot.slane %v2008_v18, 2  ;;  %v2175_v14 = vadd.f32 %v2174_v17, %v2173_v47  ;;  %v1611_v1 = vadd.f32 %v1603_v27, %v3953_v9 }
 0x2f0   : > { %2537 = vpush %v1996_v37 }
 0x2f1   : > { %v2010_v62 = vadd.f32 %v2009_v56, %v2008_v18 }
 0x2f3   : > { %v2011_v38 = vrot.slane %v2010_v62, 1 }
 0x2f5   : > { %v2012_v45 = vadd.f32 %v2011_v38, %v2010_v62 }
 0x2f7   : > { %2539 = vpush %v2012_v45 }
 0x318   : > { %v2034_v42 = vpop.xlane.xlu0 %2033 }
 0x319   : > { %v2035_v40 = vrot.slane %v2034_v42, 4 }
 0x31b   : > { %v2036_v48 = vadd.f32 %v2035_v40, %v2034_v42 }
 0x31c   : > { %v1653_v57 = vpop.permute.xlu0 %1652 }
 0x31d   : > { %v1662_v6 = vadd.f32 %v1653_v57, %v1610_v51  ;;  %v2037_v60 = vrot.slane %v2036_v48, 2 }
 0x31f   : > { %v2058_v61 = vpop.xlane.xlu1 %2057  ;;  %v2167_v53 = vsub.f32 %v1662_v6, %v2163_v16  ;;  %v2038_v25 = vadd.f32 %v2037_v60, %v2036_v48 }
 0x320   : > { %v2059_v54 = vrot.slane %v2058_v61, 4 }
 0x321   : > { %v2171_v4 = vmul.f32 %v2167_v53, %v2167_v53  ;;  %s4067_s11 = spop %2537  ;;  %v2039_v26 = vrot.slane %v2038_v25, 1 }
 0x322   : > { %v2060_v32 = vadd.f32 %v2059_v54, %v2058_v61 }
 0x323   : > { %v1655_v7 = vpop.permute.xlu1 %1654  ;;  %v2176_v46 = vsel %vm1703_vm0, %v2171_v4, 0.0  ;;  %v2040_v58 = vadd.f32 %v2039_v26, %v2038_v25 }
 0x324   : > { %v1663_v8 = vadd.f32 %v1655_v7, %v1611_v1  ;;  %v2177_v15 = vadd.f32 %v2176_v46, %v2175_v14  ;;  %v2061_v31 = vrot.slane %v2060_v32, 2 }
 0x326   : > { %v2168_v11 = vsub.f32 %v1663_v8, %v2164_v63  ;;  %v2062_v30 = vadd.f32 %v2061_v31, %v2060_v32 }
 0x328   : > { %v2172_v12 = vmul.f32 %v2168_v11, %v2168_v11  ;;  %s2540_s2 = spop %2539  ;;  %v2063_v21 = vrot.slane %v2062_v30, 1 }
 0x329   : > { %v2014_v22 = vstv %s2540_s2 }
 0x32a   : > { %2689 = vrcp.f32 %v2014_v22  ;;  %v2178_v9 = vsel %vm1703_vm0, %v2172_v12, 0.0  ;;  %v2064_v50 = vadd.f32 %v2063_v21, %v2062_v30 }
 0x32b   : > { %v2179_v36 = vadd.f32 %v2178_v9, %v2177_v15 }
 0x32d   : > { %2180 = vadd.xlane.f32.xlu0 %v2179_v36 }
 0x337   : > { %v2690_v52 = vpop.eup %2689 }
 0x338   : > { %2541 = vpush %v2690_v52 }
 0x339   : > { %2543 = vpush %v2040_v58 }
 0x33a   : > { %2545 = vpush %v2064_v50 }
 0x369   : > { %s2542_s3 = spop %2541 }
 0x36a   : > { %s2544_s12 = spop %2543  ;;  %s2017_s9 = smul.f32 %s2542_s3, %s4067_s11 }
 0x36b   : > { %s2546_s20 = spop %2545  ;;  %s2066_s0 = sadd.f32 1.0, %s2544_s12 }
 0x36c   : > { %s2067_s10 = ssub.f32 %s2546_s20, %s2544_s12  ;;  %s4078_s20 = scalar_lea.hbm %s4152_s6, %s2485_s30 }
 0x36d   : > { %s2195_s11 = scalar_lea.sflag [#allocation5], %s3234_s1  ;;  %s2849_s3 = scalar_lea.vmem %s4080_s13, 16 }
 0x36e   : > { %s2068_s29 = sadd.f32 1.0, %s2067_s10  ;;  %p2850_p9 = scmp.ne.s32.totalorder %s4080_s13, %s2849_s3 }
 0x36f   : > { %s2976_s12 = smov [#allocation15]  }
 0x370   : > { %v2069_v49 = vstv %s2068_s29  ;;  %p2851_p10 = pnand %p2850_p9, %p3133_p7  ;;  %s2853_s10 = sshll.u32 %s2976_s12, 4  ;;  %s2854_s10 = int_to_ptr.vmem [resolvable:$false] %s2853_s10 }
 0x371   : > { %2691 = vrcp.f32 %v2069_v49  ;;  %s2855_s29 = scalar_lea.vmem %s2854_s10, 32  ;;  %p2856_p12 = scmp.lt.s32.totalorder %s4080_s13, %s2854_s10 }
 0x372   : > { %p2852_p11 = pneg %p2851_p10  ;;  %p2857_p5 = scmp.lt.s32.totalorder %s2855_s29, %s2849_s3 }
 0x374   : > { %p2858_p1 = por %p2857_p5, %p2856_p12 }
 0x376   : > { %p2859_p3 = pnand %p2858_p1, %p2852_p11 }
 0x37e   : > { %v2692_v33 = vpop.eup %2691 }
 0x37f   : > { %2547 = vpush %v2692_v33 }
 0x3b0   : > { %s2548_s21 = spop %2547 }
 0x3b1   : > { %s2072_s14 = smul.f32 %s2548_s21, %s2066_s0 }
 0x3b3   : > { %s2073_s15 = ssub.f32 1.0, %s2072_s14 }
 0x3b5   : > { %s2074_s23 = sadd.f32 %s2073_s15, %s2017_s9 }
 0x3b6   : > { %v2181_v29 = vpop.xlane.xlu0 %2180 }
 0x3b7   : > { %v2190_v18 = vstv %s2074_s23  ;;  %v2182_v35 = vrot.slane %v2181_v29, 4 }
 0x3b8   : > { %2191 = vst [vmem:[%s393_s18] sm:$0x1] %v2190_v18 }
 0x3b9   : > { %v2183_v47 = vadd.f32 %v2182_v35, %v2181_v29 }
 0x3ba   : > { %2862 = shalt.err (!%p2859_p3)
}
 0x3bb   : > { %s2863_s0 = scalar_lea.hbm %s4078_s20, 16  ;;  %s2867_s9 = scalar_lea.hbm %s4152_s6, 32 }
 0x3bc   : > { %p2864_p2 = scmp.ne.s32.totalorder %s4078_s20, %s2863_s0  ;;  %p2868_p4 = scmp.lt.s32.totalorder %s4078_s20, %s4152_s6 }
 0x3bd   : > { %p2869_p13 = scmp.lt.s32.totalorder %s2867_s9, %s2863_s0 }
 0x3be   : > { %p2865_p8 = pnand %p2864_p2, %p3133_p7 }
 0x3bf   : > { %p2870_p6 = por %p2869_p13, %p2868_p4 }
 0x3c0   : > { %p2866_p0 = pneg %p2865_p8 }
 0x3c2   : > { %p2871_p9 = pnand %p2870_p6, %p2866_p0 }
 0x3c4   : > { %2874 = shalt.err (!%p2871_p9)
}
 0x3c5   : > { %2571 = dma.vmem_to_hbm [thread:$0]  (%p3133_p7), %s4080_s13, 16, %s4078_s20, %s2195_s11   ;;  %v2184_v17 = vrot.slane %v2183_v47, 2 }
 0x3c6   : > { %s399_s23 = scalar_lea.vmem [#allocation16], %s3234_s1  ;;  %s4109_s29 = scalar_lea.hbm %s4153_s7, %s2485_s30 }
 0x3c7   : > { %v2185_v56 = vadd.f32 %v2184_v17, %v2183_v47  ;;  %s2224_s17 = sshll.u32 %s399_s23, 4  ;;  %s2199_s13 = scalar_lea.sflag [#allocation17], %s3234_s1  ;;  %s2225_s17 = int_to_ptr.vmem [resolvable:$true] %s2224_s17 }
 0x3c8   : > { %s2875_s20 = scalar_lea.vmem %s2225_s17, 16  ;;  %s2977_s11 = smov [#allocation16]  }
 0x3c9   : > { %v2186_v37 = vrot.slane %v2185_v56, 1  ;;  %p2876_p10 = scmp.ne.s32.totalorder %s2225_s17, %s2875_s20  ;;  %s2879_s0 = sshll.u32 %s2977_s11, 4  ;;  %s2880_s0 = int_to_ptr.vmem [resolvable:$false] %s2879_s0 }
 0x3ca   : > { %s2881_s21 = scalar_lea.vmem %s2880_s0, 32  ;;  %p2882_p5 = scmp.lt.s32.totalorder %s2225_s17, %s2880_s0 }
 0x3cb   : > { %v2187_v14 = vadd.f32 %v2186_v37, %v2185_v56  ;;  %p2877_p11 = pnand %p2876_p10, %p3133_p7  ;;  %p2883_p1 = scmp.lt.s32.totalorder %s2881_s21, %s2875_s20 }
 0x3cd   : > { %2549 = vpush %v2187_v14  ;;  %p2878_p12 = pneg %p2877_p11  ;;  %p2884_p3 = por %p2883_p1, %p2882_p5 }
 0x3cf   : > { %p2885_p2 = pnand %p2884_p3, %p2878_p12 }
 0x3fe   : > { %s2550_s2 = spop %2549 }
 0x3ff   : > { %s2189_s3 = smul.f32 0.0009765625, %s2550_s2 }
 0x401   : > { %v2192_v41 = vstv %s2189_s3 }
 0x402   : > { %2193 = vst [vmem:[%s399_s23] sm:$0x1] %v2192_v41 }
 0x403   : > { %2888 = shalt.err (!%p2885_p2)
}
 0x404   : > { %s2889_s28 = scalar_lea.hbm %s4109_s29, 16  ;;  %s2893_s14 = scalar_lea.hbm %s4153_s7, 32 }
 0x405   : > { %p2890_p8 = scmp.ne.s32.totalorder %s4109_s29, %s2889_s28  ;;  %p2894_p13 = scmp.lt.s32.totalorder %s4109_s29, %s4153_s7 }
 0x406   : > { %p2895_p6 = scmp.lt.s32.totalorder %s2893_s14, %s2889_s28 }
 0x407   : > { %p2891_p0 = pnand %p2890_p8, %p3133_p7 }
 0x408   : > { %p2896_p9 = por %p2895_p6, %p2894_p13 }
 0x409   : > { %p2892_p4 = pneg %p2891_p0 }
 0x40b   : > { %p2897_p10 = pnand %p2896_p9, %p2892_p4 }
 0x40d   : > { %2900 = shalt.err (!%p2897_p10)
}
 0x40e   : > { %2572 = dma.vmem_to_hbm [thread:$0]  (%p3133_p7), %s2225_s17, 16, %s4109_s29, %s2199_s13  }
 0x40f PF: > { %s2236_s18 = sand.u32 1, %s2947_s24   ;;  %p4191_p11 = scmp.ne.s32.totalorder %s4165_s8, 0 }
 0x410   : > { %p4192_p12 = scmp.ge.s32.totalorder %s2959_s27, 2  ;;  %s2237_s23 = scalar_lea.sflag [#allocation5], %s2236_s18 }
 0x412   : > { %p2596_p5 = pnand %p4192_p12, %p4191_p11 }
 0x414   : > { %p2597_p1 = pneg %p2596_p5 }
 0x416   : > { %2938 = dma.done.wait (%p2597_p1), %s2237_s23, 16  }
 0x417   : > { %2940 = vsyncadd (%p2597_p1), %s2237_s23, 4294967280  ;;  %s2245_s2 = scalar_lea.sflag [#allocation17], %s2236_s18 }
 0x418   : > { %2942 = dma.done.wait (%p2597_p1), %s2245_s2, 16  }
 0x419   : > { %2944 = vsyncadd (%p2597_p1), %s2245_s2, 4294967280  ;;  %p30_p7 = scmp.ge.s32.totalorder %s3120_s19, 4   ;;  %s4193_s24 = smov %s2951_s25 }
 0x41a   : > { %s4194_s25 = smov %s2955_s26  ;;  %s4195_s26 = smov %s3129_s16 }
 0x41b   : > { %s4196_s27 = smov %s3120_s19  ;;  %32 = sbr.rel (!%p30_p7) target bundleno = 17 (0x11), region = 140 }
 0x420   :  { %2249 = vsyncpa [#allocation4], 1 }
 0x421   :  { %2251 = vsyncpa [#allocation4 + $0x1], 1 }
 0x422   :  { %2252 = vsyncpa [#allocation14], 1 }
 0x423   :  { %2254 = vsyncpa [#allocation14 + $0x1], 1 }
 0x424   :  { %2255 = vsyncpa [#allocation5], 1 }
 0x425   :  { %2257 = vsyncpa [#allocation5 + $0x1], 1 }
 0x426   :  { %2258 = vsyncpa [#allocation17], 1 }
 0x427   :  { %2260 = vsyncpa [#allocation17 + $0x1], 1 }
 0x428   :  { %2261 = vsyncpa [#allocation6], 1 }
 0x429   :  { %2263 = vsyncpa [#allocation6 + $0x1], 1 }
 0x42a   :  { %2264 = vsyncpa [#allocation8], 1 }
 0x42b   :  { %2265 = vsyncpa [#allocation11], 1 }

</bundles_post_ra>
